<compile_context>
chip_gen: v5e
topology: v5e:2x2
jax: 0.10.0
libtpu: 0.0.40
codegen_flags: <defaults>
</compile_context>

<pallas_src>
import functools

import numpy as np
import jax
import jax.numpy as jnp
from jax import lax
from jax.experimental import pallas as pl
from jax.experimental.pallas import tpu as pltpu

OUT_DIM = {2: 39, 4: 35, 6: 31}
OUT_DIM_64 = {2: 29, 4: 25, 6: 21}

_ALIGN = 16                      # channel padding -> bf16 sublane-tile aligned
_LANE = 128
_VMEM_LIMIT = 32 * 1024 * 1024   # explicit, safe on v5e/v6e/v7x


def _round_up(x, m):
    return (x + m - 1) // m * m


# ------------------------- fused conv-stack kernel -------------------------
# One grid step = one image. All layers run back to back on VMEM-resident
# activations; per layer: build im2col slab (T*Cin, L_out) from shifted views,
# then one bf16 matmul W(Fp, T*Cin) @ slab with fused bias + ReLU.

def _conv_stack_kernel(*refs, layer_meta, Fp, L_final, L_pad, n_chunk=512):
    n = len(layer_meta)
    x_ref = refs[0]
    w_refs = [refs[1 + 2 * i] for i in range(n)]
    b_refs = [refs[2 + 2 * i] for i in range(n)]
    o_ref = refs[1 + 2 * n]
    slab_ref = refs[2 + 2 * n]
    act_ref = refs[3 + 2 * n]

    for i, (Cin, T, offsets, _L_in, L_out) in enumerate(layer_meta):
        src = x_ref if i == 0 else act_ref
        # Fused im2col: stack the T statically shifted views into the slab.
        for t, off in enumerate(offsets):
            slab_ref[t * Cin:(t + 1) * Cin, :L_out] = src[:Cin, off:off + L_out]

        w_i = w_refs[i][...]                      # (Fp, T*Cin) bf16
        b_i = b_refs[i][...]                      # (Fp, 1)     f32
        last = (i + 1 == n)
        dst = o_ref if last else act_ref

        # One MXU matmul per lane chunk (bounds the f32 result live range).
        for c0 in range(0, L_out, n_chunk):
            cw = min(n_chunk, L_out - c0)
            y = jnp.dot(w_i, slab_ref[:T * Cin, c0:c0 + cw],
                        preferred_element_type=jnp.float32)
            y = jnp.maximum(y + b_i, 0.0)
            dst[:, c0:c0 + cw] = y.astype(jnp.bfloat16)

    # Explicit zero fill of the FC K-padding tail (never leave garbage lanes).
    if L_pad > L_final:
        o_ref[:, L_final:] = jnp.zeros((Fp, L_pad - L_final), jnp.bfloat16)


def pallas_conv_stack(x, conv_ws, conv_bs, meta):
    B, C0p, L0 = x.shape
    Fp, L_pad = meta["Fp"], meta["L_pad"]
    layer_meta = meta["layer_meta"]
    slab_rows = max(T * Cin for (Cin, T, _, _, _) in layer_meta)
    slab_cols = _round_up(layer_meta[0][4], _LANE)   # largest L_out (layer 0)

    in_specs = [pl.BlockSpec((None, C0p, L0), lambda i: (i, 0, 0))]
    operands = [x]
    for w, b in zip(conv_ws, conv_bs):
        in_specs.append(pl.BlockSpec(w.shape, lambda i: (0, 0)))   # resident
        in_specs.append(pl.BlockSpec(b.shape, lambda i: (0, 0)))
        operands += [w, b]

    kernel = functools.partial(_conv_stack_kernel, layer_meta=layer_meta,
                               Fp=Fp, L_final=meta["L_final"], L_pad=L_pad)
    return pl.pallas_call(
        kernel,
        out_shape=jax.ShapeDtypeStruct((B, Fp, L_pad), jnp.bfloat16),
        grid=(B,),
        in_specs=in_specs,
        out_specs=pl.BlockSpec((None, Fp, L_pad), lambda i: (i, 0, 0)),
        scratch_shapes=[pltpu.VMEM((slab_rows, slab_cols), jnp.bfloat16),
                        pltpu.VMEM((Fp, slab_cols), jnp.bfloat16)],
        compiler_params=pltpu.CompilerParams(
            dimension_semantics=("parallel",),
            vmem_limit_bytes=_VMEM_LIMIT),
    )(*operands)


# ------------------ fused FC + bias + LayerNorm + tanh ------------------

def _fc_ln_tanh_kernel(x_ref, w_ref, b_ref, g_ref, bb_ref, o_ref, acc_ref, *,
                       eps, apply_tanh, n_valid):
    k = pl.program_id(1)

    @pl.when(k == 0)
    def _():
        acc_ref[...] = jnp.zeros_like(acc_ref)

    acc_ref[...] += jnp.dot(x_ref[...], w_ref[...],
                            preferred_element_type=jnp.float32)

    @pl.when(k == pl.num_programs(1) - 1)
    def _():
        y = acc_ref[...] + b_ref[...]                       # (tm, Npad)
        col = lax.broadcasted_iota(jnp.int32, y.shape, 1)
        valid = col < n_valid                               # mask padded lanes
        inv_n = 1.0 / float(n_valid)
        mean = jnp.sum(jnp.where(valid, y, 0.0), -1, keepdims=True) * inv_n
        d = jnp.where(valid, y - mean, 0.0)
        var = jnp.sum(d * d, -1, keepdims=True) * inv_n
        z = d * lax.rsqrt(var + eps)
        z = z * g_ref[...] + bb_ref[...]                    # padded lanes -> 0
        if apply_tanh:
            z = jnp.tanh(z)
        o_ref[...] = z


def _pick_tm(B):
    # >=2 steps on the parallel axis when possible (v7x dual TC), 8-sublane tiles.
    for c in (256, 128, 64, 32, 16, 8):
        if B % c == 0 and c <= B // 2:
            return c
    return B           # small batches: single parallel step, full-dim block


def _pick_tk(Kp):
    for c in (2048, 1024, 512, 256, 128):
        if Kp % c == 0:
            return c
    return Kp


def pallas_fc_ln_tanh(flat, w_eff, b, g, beta, *, n_valid, eps=1e-5,
                      apply_tanh=True):
    B, Kp = flat.shape
    _, Npad = w_eff.shape
    tm = _pick_tm(B)
    tk = _pick_tk(Kp)
    kernel = functools.partial(_fc_ln_tanh_kernel, eps=eps,
                               apply_tanh=apply_tanh, n_valid=n_valid)
    return pl.pallas_call(
        kernel,
        out_shape=jax.ShapeDtypeStruct((B, Npad), jnp.float32),
        grid=(B // tm, Kp // tk),
        in_specs=[
            pl.BlockSpec((tm, tk), lambda i, k: (i, k)),
            pl.BlockSpec((tk, Npad), lambda i, k: (k, 0)),
            pl.BlockSpec((1, Npad), lambda i, k: (0, 0)),
            pl.BlockSpec((1, Npad), lambda i, k: (0, 0)),
            pl.BlockSpec((1, Npad), lambda i, k: (0, 0)),
        ],
        out_specs=pl.BlockSpec((tm, Npad), lambda i, k: (i, 0)),
        scratch_shapes=[pltpu.VMEM((tm, Npad), jnp.float32)],
        compiler_params=pltpu.CompilerParams(
            dimension_semantics=("parallel", "arbitrary"),
            vmem_limit_bytes=_VMEM_LIMIT),
    )(flat, w_eff, b, g, beta)


# ----------------------------- parameters -----------------------------

def init_params(key, obs_shape, feature_dim, num_layers, num_filters):
    C, H, W = obs_shape
    out_dim = OUT_DIM_64[num_layers] if W == 64 else OUT_DIM[num_layers]
    keys = jax.random.split(key, 2 * num_layers + 2)
    params = {}
    in_ch = C
    for i in range(num_layers):
        fan_in = in_ch * 9
        bound = 1.0 / float(fan_in) ** 0.5
        params[f"conv{i}_w"] = jax.random.uniform(
            keys[2 * i], (num_filters, in_ch, 3, 3), jnp.float32, -bound, bound)
        params[f"conv{i}_b"] = jax.random.uniform(
            keys[2 * i + 1], (num_filters,), jnp.float32, -bound, bound)
        in_ch = num_filters
    fc_in = num_filters * out_dim * out_dim
    bound = 1.0 / float(fc_in) ** 0.5
    params["fc_w"] = jax.random.uniform(
        keys[-2], (feature_dim, fc_in), jnp.float32, -bound, bound)
    params["fc_b"] = jax.random.uniform(
        keys[-1], (feature_dim,), jnp.float32, -bound, bound)
    params["ln_g"] = jnp.ones((feature_dim,), jnp.float32)
    params["ln_b"] = jnp.zeros((feature_dim,), jnp.float32)
    return params


def prepare_params(params, obs_shape, feature_dim, num_layers, num_filters):
    """One-time weight transforms: fold 1/255, phase-decompose conv0, stack conv
    taps as (Fp, T*Cin) bf16, pad channels to 16, and absorb the NCHW flatten
    order / garbage-column masking / K & N padding into a bf16 fc weight."""
    C, H, W = obs_shape
    assert H % 2 == 0 and W % 2 == 0
    Hp, Wp = H // 2, W // 2
    F = num_filters
    Fp = _round_up(F, _ALIGN)
    C0 = 4 * C
    C0p = _round_up(C0, _ALIGN)
    L0 = Hp * Wp

    prep = {}
    # conv0: 3x3/stride-2 over C channels -> 2x2/stride-1 over 4C phase channels.
    w0 = np.asarray(params["conv0_w"], np.float32) / 255.0
    w0_eff = np.zeros((Fp, 4 * C0p), np.float32)
    for t, (a, b2) in enumerate(((0, 0), (0, 1), (1, 0), (1, 1))):
        for ph in range(2):
            for pw in range(2):
                kh, kw = 2 * a + ph, 2 * b2 + pw
                if kh < 3 and kw < 3:
                    for c in range(C):
                        w0_eff[:F, t * C0p + c * 4 + ph * 2 + pw] = w0[:, c, kh, kw]
    conv_ws = [jnp.asarray(w0_eff, jnp.bfloat16)]
    b0 = np.zeros((Fp, 1), np.float32)
    b0[:F, 0] = np.asarray(params["conv0_b"], np.float32)
    conv_bs = [jnp.asarray(b0)]

    # conv1..: 3x3/stride-1, tap-stacked (Fp, 9*Fp)
    for i in range(1, num_layers):
        wi = np.asarray(params[f"conv{i}_w"], np.float32)
        wi_eff = np.zeros((Fp, 9 * Fp), np.float32)
        for t, (a, c2) in enumerate([(a, c2) for a in range(3) for c2 in range(3)]):
            wi_eff[:F, t * Fp:t * Fp + F] = wi[:, :, a, c2]
        conv_ws.append(jnp.asarray(wi_eff, jnp.bfloat16))
        bi = np.zeros((Fp, 1), np.float32)
        bi[:F, 0] = np.asarray(params[f"conv{i}_b"], np.float32)
        conv_bs.append(jnp.asarray(bi))
    prep["conv_ws"] = conv_ws
    prep["conv_bs"] = conv_bs

    # Geometry of the row-flattened conv stack (valid prefix lengths per layer).
    layer_meta = []
    L_in, Cin = L0, C0p
    for i in range(num_layers):
        if i == 0:
            offsets = tuple(a * Wp + b2 for a in range(2) for b2 in range(2))
        else:
            offsets = tuple(a * Wp + c2 for a in range(3) for c2 in range(3))
        L_out = L_in - max(offsets)
        layer_meta.append((Cin, len(offsets), offsets, L_in, L_out))
        L_in, Cin = L_out, Fp
    out_dim = OUT_DIM_64[num_layers] if W == 64 else OUT_DIM[num_layers]
    L_final = (out_dim - 1) * Wp + out_dim
    assert L_final == layer_meta[-1][4]
    L_pad = _round_up(L_final, _LANE)
    Kp = Fp * L_pad
    Npad = _round_up(max(feature_dim, _LANE), _LANE)

    # FC weight: absorb NCHW flatten order, garbage columns, K padding, N padding.
    OHW = out_dim * out_dim
    fcT = np.asarray(params["fc_w"], np.float32).T          # (F*OHW, feature_dim)
    w_eff = np.zeros((Fp, L_pad, Npad), np.float32)
    p = np.arange(L_final)
    rr, cc = p // Wp, p % Wp
    col_ok = cc < out_dim
    idx = rr * out_dim + np.minimum(cc, out_dim - 1)
    for f in range(F):
        rows_w = fcT[f * OHW + idx]
        rows_w = np.where(col_ok[:, None], rows_w, 0.0)
        w_eff[f, :L_final, :feature_dim] = rows_w
    prep["fc_w"] = jnp.asarray(w_eff.reshape(Fp * L_pad, Npad), jnp.bfloat16)

    def _pad_vec(v):
        out = np.zeros((1, Npad), np.float32)
        out[0, :feature_dim] = np.asarray(v, np.float32)
        return jnp.asarray(out)

    prep["fc_b"] = _pad_vec(params["fc_b"])
    prep["ln_g"] = _pad_vec(params["ln_g"])
    prep["ln_b"] = _pad_vec(params["ln_b"])

    meta = dict(C=C, Hp=Hp, Wp=Wp, C0=C0, C0p=C0p, Fp=Fp, L0=L0,
                L_final=L_final, L_pad=L_pad, Kp=Kp, Npad=Npad,
                feature_dim=feature_dim, out_dim=out_dim,
                layer_meta=tuple(layer_meta), num_layers=num_layers)
    return prep, meta


# ----------------------------- forward -----------------------------

def encoder_forward(obs, prep, *, meta, output_logits=False):
    B = obs.shape[0]
    C, Hp, Wp = meta["C"], meta["Hp"], meta["Wp"]
    C0, C0p = meta["C0"], meta["C0p"]

    # Space-to-depth phase split (turns the stride-2 conv into stride-1),
    # done once on a bf16 copy; /255 is folded into conv0's weights.
    # TODO(synk): this small transpose could be folded into the conv0 DMA
    # (index arithmetic on a uint8 HBM ref) to avoid the XLA copy entirely.
    x = obs.astype(jnp.bfloat16).reshape(B, C, Hp, 2, Wp, 2)
    x = x.transpose(0, 1, 3, 5, 2, 4).reshape(B, C0, Hp * Wp)
    if C0p > C0:
        x = jnp.pad(x, ((0, 0), (0, C0p - C0), (0, 0)))

    conv_out = pallas_conv_stack(x, prep["conv_ws"], prep["conv_bs"], meta)
    flat = conv_out.reshape(B, meta["Kp"])          # contiguous -> free reshape
    y = pallas_fc_ln_tanh(flat, prep["fc_w"], prep["fc_b"],
                          prep["ln_g"], prep["ln_b"],
                          n_valid=meta["feature_dim"],
                          apply_tanh=not output_logits)
    return y[:, :meta["feature_dim"]]


def reference_forward(obs_nchw, params, num_layers, output_logits=False):
    x = obs_nchw.astype(jnp.float32) / 255.0
    strides = [(2, 2)] + [(1, 1)] * (num_layers - 1)
    for i in range(num_layers):
        x = lax.conv_general_dilated(x, params[f"conv{i}_w"], strides[i], "VALID",
                                     dimension_numbers=("NCHW", "OIHW", "NCHW"))
        x = jax.nn.relu(x + params[f"conv{i}_b"][None, :, None, None])
    flat = x.reshape(x.shape[0], -1)
    fc = flat @ params["fc_w"].T + params["fc_b"]
    mean = fc.mean(-1, keepdims=True)
    var = ((fc - mean) ** 2).mean(-1, keepdims=True)
    y = (fc - mean) / jnp.sqrt(var + 1e-5) * params["ln_g"] + params["ln_b"]
    return y if output_logits else jnp.tanh(y)


if __name__ == "__main__":
    # TODO(synk): reparameterize / detach / logging / copy_conv_weights are
    # training- or host-side utilities, not forward compute; not implemented.
    obs_shape = (3, 64, 64)   # (C, H, W); W==64 -> OUT_DIM_64 table
    feature_dim = 32
    num_layers = 2
    num_filters = 4
    batch = 2

    key = jax.random.PRNGKey(0)
    pkey, okey = jax.random.split(key)
    params = init_params(pkey, obs_shape, feature_dim, num_layers, num_filters)
    prep, meta = prepare_params(params, obs_shape, feature_dim, num_layers,
                                num_filters)
    obs = jax.random.uniform(okey, (batch,) + obs_shape, jnp.float32, 0.0, 255.0)

    fwd = jax.jit(functools.partial(encoder_forward, meta=meta))
    out = jax.block_until_ready(fwd(obs, prep))

    ref = reference_forward(obs, params, num_layers)
    assert out.shape == (batch, feature_dim), out.shape
    # bf16 end-to-end (obs, conv taps, FC) vs an f32 reference through LayerNorm.
    assert jnp.allclose(out, ref, atol=4e-2, rtol=4e-2), \
        float(jnp.max(jnp.abs(out - ref)))
    print("KERNEL_OK")
</pallas_src>

<mosaic_0001>
module attributes {stable_mosaic.version = 11 : i64} {
  func.func @_conv_stack_kernel(%arg0: i32, %arg1: memref<1x16x1024xbf16, #tpu.memory_space<vmem>>, %arg2: memref<16x64xbf16, #tpu.memory_space<vmem>>, %arg3: memref<16x1xf32, #tpu.memory_space<vmem>>, %arg4: memref<16x144xbf16, #tpu.memory_space<vmem>>, %arg5: memref<16x1xf32, #tpu.memory_space<vmem>>, %arg6: memref<1x16x1024xbf16, #tpu.memory_space<vmem>>, %arg7: memref<144x1024xbf16, #tpu.memory_space<vmem>>, %arg8: memref<16x1024xbf16, #tpu.memory_space<vmem>>) attributes {dimension_semantics = [#tpu.dimension_semantics<parallel>], iteration_bounds = array<i64: 2>, scalar_prefetch = 0 : i64, scratch_operands = 2 : i64, tpu.core_type = #tpu.core_type<tc>, window_params = [{transform_indices = @transform_0, window_bounds = array<i64: 1, 16, 1024>}, {pipeline_mode = #tpu.pipeline_mode<synchronous>, transform_indices = @transform_1, window_bounds = array<i64: 16, 64>}, {pipeline_mode = #tpu.pipeline_mode<synchronous>, transform_indices = @transform_2, window_bounds = array<i64: 16, 1>}, {pipeline_mode = #tpu.pipeline_mode<synchronous>, transform_indices = @transform_3, window_bounds = array<i64: 16, 144>}, {pipeline_mode = #tpu.pipeline_mode<synchronous>, transform_indices = @transform_4, window_bounds = array<i64: 16, 1>}, {transform_indices = @transform_5, window_bounds = array<i64: 1, 16, 1024>}]} {
    %c0 = arith.constant 0 : index
    %c0_0 = arith.constant 0 : index
    %c0_1 = arith.constant 0 : index
    %0 = vector.load %arg1[%c0, %c0_0, %c0_1] : memref<1x16x1024xbf16, #tpu.memory_space<vmem>>, vector<1x16x991xbf16>
    %1 = vector.shape_cast %0 : vector<1x16x991xbf16> to vector<16x991xbf16>
    %c0_2 = arith.constant 0 : index
    %c0_3 = arith.constant 0 : index
    %2 = vector.load %arg7[%c0_2, %c0_3] : memref<144x1024xbf16, #tpu.memory_space<vmem>>, vector<16x991xbf16>
    tpu.vector_store %arg7[%c0_2, %c0_3], %1 {strides = array<i32>} : memref<144x1024xbf16, #tpu.memory_space<vmem>>, vector<16x991xbf16>,
    %c0_4 = arith.constant 0 : index
    %c0_5 = arith.constant 0 : index
    %c1 = arith.constant 1 : index
    %3 = vector.load %arg1[%c0_4, %c0_5, %c1] : memref<1x16x1024xbf16, #tpu.memory_space<vmem>>, vector<1x16x991xbf16>
    %4 = vector.shape_cast %3 : vector<1x16x991xbf16> to vector<16x991xbf16>
    %c16 = arith.constant 16 : index
    %c0_6 = arith.constant 0 : index
    %5 = vector.load %arg7[%c16, %c0_6] : memref<144x1024xbf16, #tpu.memory_space<vmem>>, vector<16x991xbf16>
    tpu.vector_store %arg7[%c16, %c0_6], %4 {strides = array<i32>} : memref<144x1024xbf16, #tpu.memory_space<vmem>>, vector<16x991xbf16>,
    %c0_7 = arith.constant 0 : index
    %c0_8 = arith.constant 0 : index
    %c32 = arith.constant 32 : index
    %6 = vector.load %arg1[%c0_7, %c0_8, %c32] : memref<1x16x1024xbf16, #tpu.memory_space<vmem>>, vector<1x16x991xbf16>
    %7 = vector.shape_cast %6 : vector<1x16x991xbf16> to vector<16x991xbf16>
    %c32_9 = arith.constant 32 : index
    %c0_10 = arith.constant 0 : index
    %8 = vector.load %arg7[%c32_9, %c0_10] : memref<144x1024xbf16, #tpu.memory_space<vmem>>, vector<16x991xbf16>
    tpu.vector_store %arg7[%c32_9, %c0_10], %7 {strides = array<i32>} : memref<144x1024xbf16, #tpu.memory_space<vmem>>, vector<16x991xbf16>,
    %c0_11 = arith.constant 0 : index
    %c0_12 = arith.constant 0 : index
    %c33 = arith.constant 33 : index
    %9 = vector.load %arg1[%c0_11, %c0_12, %c33] : memref<1x16x1024xbf16, #tpu.memory_space<vmem>>, vector<1x16x991xbf16>
    %10 = vector.shape_cast %9 : vector<1x16x991xbf16> to vector<16x991xbf16>
    %c48 = arith.constant 48 : index
    %c0_13 = arith.constant 0 : index
    %11 = vector.load %arg7[%c48, %c0_13] : memref<144x1024xbf16, #tpu.memory_space<vmem>>, vector<16x991xbf16>
    tpu.vector_store %arg7[%c48, %c0_13], %10 {strides = array<i32>} : memref<144x1024xbf16, #tpu.memory_space<vmem>>, vector<16x991xbf16>,
    %c0_14 = arith.constant 0 : index
    %c0_15 = arith.constant 0 : index
    %12 = vector.load %arg2[%c0_14, %c0_15] : memref<16x64xbf16, #tpu.memory_space<vmem>>, vector<16x64xbf16>
    %c0_16 = arith.constant 0 : index
    %c0_17 = arith.constant 0 : index
    %13 = vector.load %arg3[%c0_16, %c0_17] : memref<16x1xf32, #tpu.memory_space<vmem>>, vector<16x1xf32>
    %c0_18 = arith.constant 0 : index
    %c0_19 = arith.constant 0 : index
    %14 = vector.load %arg7[%c0_18, %c0_19] : memref<144x1024xbf16, #tpu.memory_space<vmem>>, vector<64x512xbf16>
    %cst = arith.constant dense<0.000000e+00> : vector<16x512xf32>
    %15 = tpu.matmul %12, %14, %cst {dimension_numbers = #tpu.dot_dimension_numbers<[1], [0], [0], [1], [0, 0, 1, 1], [], []>} : vector<16x64xbf16>, vector<64x512xbf16>, vector<16x512xf32> -> vector<16x512xf32>
    %16 = vector.broadcast %13 : vector<16x1xf32> to vector<16x512xf32>
    %17 = arith.addf %15, %16 : vector<16x512xf32>
    %cst_20 = arith.constant 0.000000e+00 : f32
    %18 = vector.broadcast %cst_20 : f32 to vector<16x512xf32>
    %19 = arith.maximumf %17, %18 : vector<16x512xf32>
    %20 = arith.truncf %19 : vector<16x512xf32> to vector<16x512xbf16>
    %c0_21 = arith.constant 0 : index
    %c0_22 = arith.constant 0 : index
    %21 = vector.load %arg8[%c0_21, %c0_22] : memref<16x1024xbf16, #tpu.memory_space<vmem>>, vector<16x512xbf16>
    tpu.vector_store %arg8[%c0_21, %c0_22], %20 {strides = array<i32>} : memref<16x1024xbf16, #tpu.memory_space<vmem>>, vector<16x512xbf16>,
    %c0_23 = arith.constant 0 : index
    %c512 = arith.constant 512 : index
    %22 = vector.load %arg7[%c0_23, %c512] : memref<144x1024xbf16, #tpu.memory_space<vmem>>, vector<64x479xbf16>
    %cst_24 = arith.constant dense<0.000000e+00> : vector<16x479xf32>
    %23 = tpu.matmul %12, %22, %cst_24 {dimension_numbers = #tpu.dot_dimension_numbers<[1], [0], [0], [1], [0, 0, 1, 1], [], []>} : vector<16x64xbf16>, vector<64x479xbf16>, vector<16x479xf32> -> vector<16x479xf32>
    %24 = vector.broadcast %13 : vector<16x1xf32> to vector<16x479xf32>
    %25 = arith.addf %23, %24 : vector<16x479xf32>
    %cst_25 = arith.constant 0.000000e+00 : f32
    %26 = vector.broadcast %cst_25 : f32 to vector<16x479xf32>
    %27 = arith.maximumf %25, %26 : vector<16x479xf32>
    %28 = arith.truncf %27 : vector<16x479xf32> to vector<16x479xbf16>
    %c0_26 = arith.constant 0 : index
    %c512_27 = arith.constant 512 : index
    %29 = vector.load %arg8[%c0_26, %c512_27] : memref<16x1024xbf16, #tpu.memory_space<vmem>>, vector<16x479xbf16>
    tpu.vector_store %arg8[%c0_26, %c512_27], %28 {strides = array<i32>} : memref<16x1024xbf16, #tpu.memory_space<vmem>>, vector<16x479xbf16>,
    %c0_28 = arith.constant 0 : index
    %c0_29 = arith.constant 0 : index
    %30 = vector.load %arg8[%c0_28, %c0_29] : memref<16x1024xbf16, #tpu.memory_space<vmem>>, vector<16x925xbf16>
    %c0_30 = arith.constant 0 : index
    %c0_31 = arith.constant 0 : index
    %31 = vector.load %arg7[%c0_30, %c0_31] : memref<144x1024xbf16, #tpu.memory_space<vmem>>, vector<16x925xbf16>
    tpu.vector_store %arg7[%c0_30, %c0_31], %30 {strides = array<i32>} : memref<144x1024xbf16, #tpu.memory_space<vmem>>, vector<16x925xbf16>,
    %c0_32 = arith.constant 0 : index
    %c1_33 = arith.constant 1 : index
    %32 = vector.load %arg8[%c0_32, %c1_33] : memref<16x1024xbf16, #tpu.memory_space<vmem>>, vector<16x925xbf16>
    %c16_34 = arith.constant 16 : index
    %c0_35 = arith.constant 0 : index
    %33 = vector.load %arg7[%c16_34, %c0_35] : memref<144x1024xbf16, #tpu.memory_space<vmem>>, vector<16x925xbf16>
    tpu.vector_store %arg7[%c16_34, %c0_35], %32 {strides = array<i32>} : memref<144x1024xbf16, #tpu.memory_space<vmem>>, vector<16x925xbf16>,
    %c0_36 = arith.constant 0 : index
    %c2 = arith.constant 2 : index
    %34 = vector.load %arg8[%c0_36, %c2] : memref<16x1024xbf16, #tpu.memory_space<vmem>>, vector<16x925xbf16>
    %c32_37 = arith.constant 32 : index
    %c0_38 = arith.constant 0 : index
    %35 = vector.load %arg7[%c32_37, %c0_38] : memref<144x1024xbf16, #tpu.memory_space<vmem>>, vector<16x925xbf16>
    tpu.vector_store %arg7[%c32_37, %c0_38], %34 {strides = array<i32>} : memref<144x1024xbf16, #tpu.memory_space<vmem>>, vector<16x925xbf16>,
    %c0_39 = arith.constant 0 : index
    %c32_40 = arith.constant 32 : index
    %36 = vector.load %arg8[%c0_39, %c32_40] : memref<16x1024xbf16, #tpu.memory_space<vmem>>, vector<16x925xbf16>
    %c48_41 = arith.constant 48 : index
    %c0_42 = arith.constant 0 : index
    %37 = vector.load %arg7[%c48_41, %c0_42] : memref<144x1024xbf16, #tpu.memory_space<vmem>>, vector<16x925xbf16>
    tpu.vector_store %arg7[%c48_41, %c0_42], %36 {strides = array<i32>} : memref<144x1024xbf16, #tpu.memory_space<vmem>>, vector<16x925xbf16>,
    %c0_43 = arith.constant 0 : index
    %c33_44 = arith.constant 33 : index
    %38 = vector.load %arg8[%c0_43, %c33_44] : memref<16x1024xbf16, #tpu.memory_space<vmem>>, vector<16x925xbf16>
    %c64 = arith.constant 64 : index
    %c0_45 = arith.constant 0 : index
    %39 = vector.load %arg7[%c64, %c0_45] : memref<144x1024xbf16, #tpu.memory_space<vmem>>, vector<16x925xbf16>
    tpu.vector_store %arg7[%c64, %c0_45], %38 {strides = array<i32>} : memref<144x1024xbf16, #tpu.memory_space<vmem>>, vector<16x925xbf16>,
    %c0_46 = arith.constant 0 : index
    %c34 = arith.constant 34 : index
    %40 = vector.load %arg8[%c0_46, %c34] : memref<16x1024xbf16, #tpu.memory_space<vmem>>, vector<16x925xbf16>
    %c80 = arith.constant 80 : index
    %c0_47 = arith.constant 0 : index
    %41 = vector.load %arg7[%c80, %c0_47] : memref<144x1024xbf16, #tpu.memory_space<vmem>>, vector<16x925xbf16>
    tpu.vector_store %arg7[%c80, %c0_47], %40 {strides = array<i32>} : memref<144x1024xbf16, #tpu.memory_space<vmem>>, vector<16x925xbf16>,
    %c0_48 = arith.constant 0 : index
    %c64_49 = arith.constant 64 : index
    %42 = vector.load %arg8[%c0_48, %c64_49] : memref<16x1024xbf16, #tpu.memory_space<vmem>>, vector<16x925xbf16>
    %c96 = arith.constant 96 : index
    %c0_50 = arith.constant 0 : index
    %43 = vector.load %arg7[%c96, %c0_50] : memref<144x1024xbf16, #tpu.memory_space<vmem>>, vector<16x925xbf16>
    tpu.vector_store %arg7[%c96, %c0_50], %42 {strides = array<i32>} : memref<144x1024xbf16, #tpu.memory_space<vmem>>, vector<16x925xbf16>,
    %c0_51 = arith.constant 0 : index
    %c65 = arith.constant 65 : index
    %44 = vector.load %arg8[%c0_51, %c65] : memref<16x1024xbf16, #tpu.memory_space<vmem>>, vector<16x925xbf16>
    %c112 = arith.constant 112 : index
    %c0_52 = arith.constant 0 : index
    %45 = vector.load %arg7[%c112, %c0_52] : memref<144x1024xbf16, #tpu.memory_space<vmem>>, vector<16x925xbf16>
    tpu.vector_store %arg7[%c112, %c0_52], %44 {strides = array<i32>} : memref<144x1024xbf16, #tpu.memory_space<vmem>>, vector<16x925xbf16>,
    %c0_53 = arith.constant 0 : index
    %c66 = arith.constant 66 : index
    %46 = vector.load %arg8[%c0_53, %c66] : memref<16x1024xbf16, #tpu.memory_space<vmem>>, vector<16x925xbf16>
    %c128 = arith.constant 128 : index
    %c0_54 = arith.constant 0 : index
    %47 = vector.load %arg7[%c128, %c0_54] : memref<144x1024xbf16, #tpu.memory_space<vmem>>, vector<16x925xbf16>
    tpu.vector_store %arg7[%c128, %c0_54], %46 {strides = array<i32>} : memref<144x1024xbf16, #tpu.memory_space<vmem>>, vector<16x925xbf16>,
    %c0_55 = arith.constant 0 : index
    %c0_56 = arith.constant 0 : index
    %48 = vector.load %arg4[%c0_55, %c0_56] : memref<16x144xbf16, #tpu.memory_space<vmem>>, vector<16x144xbf16>
    %c0_57 = arith.constant 0 : index
    %c0_58 = arith.constant 0 : index
    %49 = vector.load %arg5[%c0_57, %c0_58] : memref<16x1xf32, #tpu.memory_space<vmem>>, vector<16x1xf32>
    %c0_59 = arith.constant 0 : index
    %c0_60 = arith.constant 0 : index
    %50 = vector.load %arg7[%c0_59, %c0_60] : memref<144x1024xbf16, #tpu.memory_space<vmem>>, vector<144x512xbf16>
    %cst_61 = arith.constant dense<0.000000e+00> : vector<16x512xf32>
    %51 = tpu.matmul %48, %50, %cst_61 {dimension_numbers = #tpu.dot_dimension_numbers<[1], [0], [0], [1], [0, 0, 1, 1], [], []>} : vector<16x144xbf16>, vector<144x512xbf16>, vector<16x512xf32> -> vector<16x512xf32>
    %52 = vector.broadcast %49 : vector<16x1xf32> to vector<16x512xf32>
    %53 = arith.addf %51, %52 : vector<16x512xf32>
    %cst_62 = arith.constant 0.000000e+00 : f32
    %54 = vector.broadcast %cst_62 : f32 to vector<16x512xf32>
    %55 = arith.maximumf %53, %54 : vector<16x512xf32>
    %56 = arith.truncf %55 : vector<16x512xf32> to vector<16x512xbf16>
    %c0_63 = arith.constant 0 : index
    %c0_64 = arith.constant 0 : index
    %c0_65 = arith.constant 0 : index
    %57 = vector.load %arg6[%c0_63, %c0_64, %c0_65] : memref<1x16x1024xbf16, #tpu.memory_space<vmem>>, vector<1x16x512xbf16>
    %58 = vector.shape_cast %57 : vector<1x16x512xbf16> to vector<16x512xbf16>
    %59 = vector.shape_cast %56 : vector<16x512xbf16> to vector<1x16x512xbf16>
    tpu.vector_store %arg6[%c0_63, %c0_64, %c0_65], %59 {strides = array<i32>} : memref<1x16x1024xbf16, #tpu.memory_space<vmem>>, vector<1x16x512xbf16>,
    %c0_66 = arith.constant 0 : index
    %c512_67 = arith.constant 512 : index
    %60 = vector.load %arg7[%c0_66, %c512_67] : memref<144x1024xbf16, #tpu.memory_space<vmem>>, vector<144x413xbf16>
    %cst_68 = arith.constant dense<0.000000e+00> : vector<16x413xf32>
    %61 = tpu.matmul %48, %60, %cst_68 {dimension_numbers = #tpu.dot_dimension_numbers<[1], [0], [0], [1], [0, 0, 1, 1], [], []>} : vector<16x144xbf16>, vector<144x413xbf16>, vector<16x413xf32> -> vector<16x413xf32>
    %62 = vector.broadcast %49 : vector<16x1xf32> to vector<16x413xf32>
    %63 = arith.addf %61, %62 : vector<16x413xf32>
    %cst_69 = arith.constant 0.000000e+00 : f32
    %64 = vector.broadcast %cst_69 : f32 to vector<16x413xf32>
    %65 = arith.maximumf %63, %64 : vector<16x413xf32>
    %66 = arith.truncf %65 : vector<16x413xf32> to vector<16x413xbf16>
    %c0_70 = arith.constant 0 : index
    %c0_71 = arith.constant 0 : index
    %c512_72 = arith.constant 512 : index
    %67 = vector.load %arg6[%c0_70, %c0_71, %c512_72] : memref<1x16x1024xbf16, #tpu.memory_space<vmem>>, vector<1x16x413xbf16>
    %68 = vector.shape_cast %67 : vector<1x16x413xbf16> to vector<16x413xbf16>
    %69 = vector.shape_cast %66 : vector<16x413xbf16> to vector<1x16x413xbf16>
    tpu.vector_store %arg6[%c0_70, %c0_71, %c512_72], %69 {strides = array<i32>} : memref<1x16x1024xbf16, #tpu.memory_space<vmem>>, vector<1x16x413xbf16>,
    %cst_73 = arith.constant 0.000000e+00 : bf16
    %70 = vector.broadcast %cst_73 : bf16 to vector<16x99xbf16>
    %c0_74 = arith.constant 0 : index
    %c0_75 = arith.constant 0 : index
    %c925 = arith.constant 925 : index
    %71 = vector.load %arg6[%c0_74, %c0_75, %c925] : memref<1x16x1024xbf16, #tpu.memory_space<vmem>>, vector<1x16x99xbf16>
    %72 = vector.shape_cast %71 : vector<1x16x99xbf16> to vector<16x99xbf16>
    %73 = vector.shape_cast %70 : vector<16x99xbf16> to vector<1x16x99xbf16>
    tpu.vector_store %arg6[%c0_74, %c0_75, %c925], %73 {strides = array<i32>} : memref<1x16x1024xbf16, #tpu.memory_space<vmem>>, vector<1x16x99xbf16>,
    return
  }
  func.func @transform_0(%arg0: i32) -> (i32, i32, i32) {
    %c0_i32 = arith.constant 0 : i32
    %c0_i32_0 = arith.constant 0 : i32
    %c0_i32_1 = arith.constant 0 : i32
    return %arg0, %c0_i32, %c0_i32_0 : i32, i32, i32
  }
  func.func @transform_1(%arg0: i32) -> (i32, i32) {
    %c0_i32 = arith.constant 0 : i32
    %c0_i32_0 = arith.constant 0 : i32
    %c0_i32_1 = arith.constant 0 : i32
    return %c0_i32, %c0_i32_0 : i32, i32
  }
  func.func @transform_2(%arg0: i32) -> (i32, i32) {
    %c0_i32 = arith.constant 0 : i32
    %c0_i32_0 = arith.constant 0 : i32
    %c0_i32_1 = arith.constant 0 : i32
    return %c0_i32, %c0_i32_0 : i32, i32
  }
  func.func @transform_3(%arg0: i32) -> (i32, i32) {
    %c0_i32 = arith.constant 0 : i32
    %c0_i32_0 = arith.constant 0 : i32
    %c0_i32_1 = arith.constant 0 : i32
    return %c0_i32, %c0_i32_0 : i32, i32
  }
  func.func @transform_4(%arg0: i32) -> (i32, i32) {
    %c0_i32 = arith.constant 0 : i32
    %c0_i32_0 = arith.constant 0 : i32
    %c0_i32_1 = arith.constant 0 : i32
    return %c0_i32, %c0_i32_0 : i32, i32
  }
  func.func @transform_5(%arg0: i32) -> (i32, i32, i32) {
    %c0_i32 = arith.constant 0 : i32
    %c0_i32_0 = arith.constant 0 : i32
    %c0_i32_1 = arith.constant 0 : i32
    return %arg0, %c0_i32, %c0_i32_0 : i32, i32, i32
  }
}

module attributes {stable_mosaic.version = 11 : i64} {
  func.func @_fc_ln_tanh_kernel(%arg0: i32, %arg1: i32, %arg2: memref<2x2048xbf16, #tpu.memory_space<vmem>>, %arg3: memref<2048x128xbf16, #tpu.memory_space<vmem>>, %arg4: memref<1x128xf32, #tpu.memory_space<vmem>>, %arg5: memref<1x128xf32, #tpu.memory_space<vmem>>, %arg6: memref<1x128xf32, #tpu.memory_space<vmem>>, %arg7: memref<2x128xf32, #tpu.memory_space<vmem>>, %arg8: memref<2x128xf32, #tpu.memory_space<vmem>>) attributes {dimension_semantics = [#tpu.dimension_semantics<parallel>, #tpu.dimension_semantics<arbitrary>], iteration_bounds = array<i64: 1, 8>, scalar_prefetch = 0 : i64, scratch_operands = 1 : i64, tpu.core_type = #tpu.core_type<tc>, window_params = [{transform_indices = @transform_0, window_bounds = array<i64: 2, 2048>}, {transform_indices = @transform_1, window_bounds = array<i64: 2048, 128>}, {pipeline_mode = #tpu.pipeline_mode<synchronous>, transform_indices = @transform_2, window_bounds = array<i64: 1, 128>}, {pipeline_mode = #tpu.pipeline_mode<synchronous>, transform_indices = @transform_3, window_bounds = array<i64: 1, 128>}, {pipeline_mode = #tpu.pipeline_mode<synchronous>, transform_indices = @transform_4, window_bounds = array<i64: 1, 128>}, {transform_indices = @transform_5, window_bounds = array<i64: 2, 128>}]} {
    %c0_i32 = arith.constant 0 : i32
    %0 = arith.cmpi eq, %arg1, %c0_i32 : i32
    %1 = arith.extui %0 : i1 to i32
    %c0_i32_0 = arith.constant 0 : i32
    %2 = arith.cmpi ne, %1, %c0_i32_0 : i32
    scf.if %2 {
      %cst_9 = arith.constant 0.000000e+00 : f32
      %12 = vector.broadcast %cst_9 : f32 to vector<2x128xf32>
      %c0_10 = arith.constant 0 : index
      %c0_11 = arith.constant 0 : index
      %13 = vector.load %arg8[%c0_10, %c0_11] : memref<2x128xf32, #tpu.memory_space<vmem>>, vector<2x128xf32>
      tpu.vector_store %arg8[%c0_10, %c0_11], %12 {strides = array<i32>} : memref<2x128xf32, #tpu.memory_space<vmem>>, vector<2x128xf32>,
    } else {
    }
    %c0 = arith.constant 0 : index
    %c0_1 = arith.constant 0 : index
    %3 = vector.load %arg8[%c0, %c0_1] : memref<2x128xf32, #tpu.memory_space<vmem>>, vector<2x128xf32>
    %c0_2 = arith.constant 0 : index
    %c0_3 = arith.constant 0 : index
    %4 = vector.load %arg2[%c0_2, %c0_3] : memref<2x2048xbf16, #tpu.memory_space<vmem>>, vector<2x2048xbf16>
    %c0_4 = arith.constant 0 : index
    %c0_5 = arith.constant 0 : index
    %5 = vector.load %arg3[%c0_4, %c0_5] : memref<2048x128xbf16, #tpu.memory_space<vmem>>, vector<2048x128xbf16>
    %cst = arith.constant dense<0.000000e+00> : vector<2x128xf32>
    %6 = tpu.matmul %4, %5, %cst {dimension_numbers = #tpu.dot_dimension_numbers<[1], [0], [0], [1], [0, 0, 1, 1], [], []>} : vector<2x2048xbf16>, vector<2048x128xbf16>, vector<2x128xf32> -> vector<2x128xf32>
    %7 = arith.addf %3, %6 : vector<2x128xf32>
    %c0_6 = arith.constant 0 : index
    %c0_7 = arith.constant 0 : index
    %8 = vector.load %arg8[%c0_6, %c0_7] : memref<2x128xf32, #tpu.memory_space<vmem>>, vector<2x128xf32>
    tpu.vector_store %arg8[%c0_6, %c0_7], %7 {strides = array<i32>} : memref<2x128xf32, #tpu.memory_space<vmem>>, vector<2x128xf32>,
    %c7_i32 = arith.constant 7 : i32
    %9 = arith.cmpi eq, %arg1, %c7_i32 : i32
    %10 = arith.extui %9 : i1 to i32
    %c0_i32_8 = arith.constant 0 : i32
    %11 = arith.cmpi ne, %10, %c0_i32_8 : i32
    scf.if %11 {
      %c0_9 = arith.constant 0 : index
      %c0_10 = arith.constant 0 : index
      %12 = vector.load %arg8[%c0_9, %c0_10] : memref<2x128xf32, #tpu.memory_space<vmem>>, vector<2x128xf32>
      %c0_11 = arith.constant 0 : index
      %c0_12 = arith.constant 0 : index
      %13 = vector.load %arg4[%c0_11, %c0_12] : memref<1x128xf32, #tpu.memory_space<vmem>>, vector<1x128xf32>
      %14 = vector.broadcast %13 : vector<1x128xf32> to vector<2x128xf32>
      %15 = arith.addf %12, %14 : vector<2x128xf32>
      %16 = tpu.iota {dimensions = array<i32: 1>} : vector<2x128xi32>
      %c32_i32 = arith.constant 32 : i32
      %17 = vector.broadcast %c32_i32 : i32 to vector<2x128xi32>
      %18 = arith.cmpi slt, %16, %17 : vector<2x128xi32>
      %cst_13 = arith.constant 0.000000e+00 : f32
      %19 = vector.broadcast %cst_13 : f32 to vector<2x128xf32>
      %20 = arith.select %18, %15, %19 : vector<2x128xi1>, vector<2x128xf32>
      %cst_14 = arith.constant dense<0.000000e+00> : vector<2xf32>
      %21 = vector.multi_reduction <add>, %20, %cst_14 [1] : vector<2x128xf32> to vector<2xf32>
      %22 = vector.shape_cast %21 : vector<2xf32> to vector<2x1xf32>
      %cst_15 = arith.constant 3.125000e-02 : f32
      %23 = vector.broadcast %cst_15 : f32 to vector<2x1xf32>
      %24 = arith.mulf %22, %23 : vector<2x1xf32>
      %25 = vector.broadcast %24 : vector<2x1xf32> to vector<2x128xf32>
      %26 = arith.subf %15, %25 : vector<2x128xf32>
      %cst_16 = arith.constant 0.000000e+00 : f32
      %27 = vector.broadcast %cst_16 : f32 to vector<2x128xf32>
      %28 = arith.select %18, %26, %27 : vector<2x128xi1>, vector<2x128xf32>
      %29 = arith.mulf %28, %28 : vector<2x128xf32>
      %cst_17 = arith.constant dense<0.000000e+00> : vector<2xf32>
      %30 = vector.multi_reduction <add>, %29, %cst_17 [1] : vector<2x128xf32> to vector<2xf32>
      %31 = vector.shape_cast %30 : vector<2xf32> to vector<2x1xf32>
      %cst_18 = arith.constant 3.125000e-02 : f32
      %32 = vector.broadcast %cst_18 : f32 to vector<2x1xf32>
      %33 = arith.mulf %31, %32 : vector<2x1xf32>
      %cst_19 = arith.constant 9.99999974E-6 : f32
      %34 = vector.broadcast %cst_19 : f32 to vector<2x1xf32>
      %35 = arith.addf %33, %34 : vector<2x1xf32>
      %36 = math.rsqrt %35 : vector<2x1xf32>
      %37 = vector.broadcast %36 : vector<2x1xf32> to vector<2x128xf32>
      %38 = arith.mulf %28, %37 : vector<2x128xf32>
      %c0_20 = arith.constant 0 : index
      %c0_21 = arith.constant 0 : index
      %39 = vector.load %arg5[%c0_20, %c0_21] : memref<1x128xf32, #tpu.memory_space<vmem>>, vector<1x128xf32>
      %40 = vector.broadcast %39 : vector<1x128xf32> to vector<2x128xf32>
      %41 = arith.mulf %38, %40 : vector<2x128xf32>
      %c0_22 = arith.constant 0 : index
      %c0_23 = arith.constant 0 : index
      %42 = vector.load %arg6[%c0_22, %c0_23] : memref<1x128xf32, #tpu.memory_space<vmem>>, vector<1x128xf32>
      %43 = vector.broadcast %42 : vector<1x128xf32> to vector<2x128xf32>
      %44 = arith.addf %41, %43 : vector<2x128xf32>
      %45 = math.tanh %44 : vector<2x128xf32>
      %c0_24 = arith.constant 0 : index
      %c0_25 = arith.constant 0 : index
      %46 = vector.load %arg7[%c0_24, %c0_25] : memref<2x128xf32, #tpu.memory_space<vmem>>, vector<2x128xf32>
      tpu.vector_store %arg7[%c0_24, %c0_25], %45 {strides = array<i32>} : memref<2x128xf32, #tpu.memory_space<vmem>>, vector<2x128xf32>,
    } else {
    }
    return
  }
  func.func @transform_0(%arg0: i32, %arg1: i32) -> (i32, i32) {
    %c0_i32 = arith.constant 0 : i32
    return %arg0, %arg1 : i32, i32
  }
  func.func @transform_1(%arg0: i32, %arg1: i32) -> (i32, i32) {
    %c0_i32 = arith.constant 0 : i32
    %c0_i32_0 = arith.constant 0 : i32
    return %arg1, %c0_i32 : i32, i32
  }
  func.func @transform_2(%arg0: i32, %arg1: i32) -> (i32, i32) {
    %c0_i32 = arith.constant 0 : i32
    %c0_i32_0 = arith.constant 0 : i32
    %c0_i32_1 = arith.constant 0 : i32
    return %c0_i32, %c0_i32_0 : i32, i32
  }
  func.func @transform_3(%arg0: i32, %arg1: i32) -> (i32, i32) {
    %c0_i32 = arith.constant 0 : i32
    %c0_i32_0 = arith.constant 0 : i32
    %c0_i32_1 = arith.constant 0 : i32
    return %c0_i32, %c0_i32_0 : i32, i32
  }
  func.func @transform_4(%arg0: i32, %arg1: i32) -> (i32, i32) {
    %c0_i32 = arith.constant 0 : i32
    %c0_i32_0 = arith.constant 0 : i32
    %c0_i32_1 = arith.constant 0 : i32
    return %c0_i32, %c0_i32_0 : i32, i32
  }
  func.func @transform_5(%arg0: i32, %arg1: i32) -> (i32, i32) {
    %c0_i32 = arith.constant 0 : i32
    %c0_i32_0 = arith.constant 0 : i32
    return %arg0, %c0_i32 : i32, i32
  }
}

</mosaic_0001>

<bundles_post_ra>
// kernel: encoder_forward.3
= control target key start
LH: loop header
LB: loop body
LE: loop exit
PB: predicated region body
PF: predicated region fallthrough
CT: control target
= control target key end

     0   :  { %10 = vsyncpa [#allocation4], 0  ;;  %s2447_s18 = smov 0   ;;  %s2449_s19 = smov 0   ;;  %s2635_s0 = inlined_call_operand.vmem [shape: bf16[2,16384], index: 0, kind: input, shape index: {}]   ;;  %s2636_s1 = inlined_call_operand.vmem [shape: bf16[16384,128], index: 1, kind: input, shape index: {}]   ;;  %s2637_s2 = inlined_call_operand.vmem [shape: f32[1,128], index: 2, kind: input, shape index: {}]   ;;  %s2638_s3 = inlined_call_operand.vmem [shape: f32[1,128], index: 3, kind: input, shape index: {}]   ;;  %s2639_s4 = inlined_call_operand.vmem [shape: f32[1,128], index: 4, kind: input, shape index: {}]   ;;  %s2640_s5 = inlined_call_operand.hbm [shape: f32[2,128], index: 5, kind: output, shape index: {}]  }
   0x1   :  { %s2451_s20 = smov 0  }
   0x2 LB: > { %s1667_s21 = sadd.s32 4294967295, %s2413_s20   ;;  %s25_s22 = sadd.s32 1, %s2409_s19  ;;  %s2413_s20 = sphi %s2451_s20, %s16_s20   ;;  %s2409_s19 = sphi %s2449_s19, %s2642_s19   ;;  %s2405_s18 = sphi %s2447_s18, %s2641_s18  }
   0x3   : > { %p26_p0 = scmp.ge.s32.totalorder %s25_s22, 8  ;;  %p1670_p1 = scmp.ge.s32.totalorder %s2413_s20, 1 }
   0x4   : > { %p217_p2 = scmp.lt.s32.totalorder %s2413_s20, 9 }
   0x5   : > { %s2644_s22 = smov (%p26_p0, %s25_s22), 0 }
   0x6   : > { %p218_p3 = pnand %p1670_p1, %p217_p2 }
   0x7   : > { %s1671_s23 = sshll.u32 (!%p218_p3), %s2405_s18, 4  ;;  %s1672_s24 = sshll.u32 (!%p218_p3), %s2405_s18, 8 }
   0x8   : > { %221 = sbr.rel (%p218_p3) target bundleno = 584 (0x248), region = 40  ;;  %p251_p4 = scmp.lt.s32.totalorder (!%p218_p3), %s1671_s23, 127 }
   0x9   : > { %p258_p5 = scmp.lt.s32.totalorder (!%p218_p3), %s1672_s24, 2047  ;;  %p1674_p6 = scmp.ne.s32.totalorder (!%p218_p3), %s2405_s18, 0 }
   0xd   : > { %s2646_s23 = smov (!%p251_p4, %s1671_s23), 127  ;;  %s2648_s24 = smov (!%p258_p5, %s1672_s24), 2047 }
   0xe   : > { %s2473_s27 = scalar_lea.vmem %s2635_s0, %s2646_s23  ;;  %s1673_s28 = sshll.u32 %s2648_s24, 2 }
   0xf   : > { %s2478_s6 = scalar_lea.vmem %s2636_s1, %s1673_s28  ;;  %266 = sbr.rel (%p1674_p6) target bundleno = 22 (0x16), region = 44 }
  0x14   : > { %v2415_v0 = vmov 0.0  }
  0x15   : > { %267 = vst [vmem:[#allocation2] sm:$0x3] %v2415_v0 }
  0x16 PF: > { %v2199_v1 = vld [vmem:[%s2478_s6 + $0x38] sm:$0xff]  ;;  %v2198_v5 = vld [vmem:[%s2478_s6 + $0x30] sm:$0xff]  ;;  %v2197_v9 = vld [vmem:[%s2478_s6 + $0x28] sm:$0xff]  ;;  %p2187_p7 = scmp.ne.s32.totalorder %s2405_s18, 7 }
  0x17   : > { %v2207_v2 = vld [vmem:[%s2478_s6 + $0x78] sm:$0xff]  ;;  %1331 = vmatpush.bf16.msra.mxu0 %v2199_v1  ;;  %v2206_v6 = vld [vmem:[%s2478_s6 + $0x70] sm:$0xff]  ;;  %v2205_v10 = vld [vmem:[%s2478_s6 + $0x68] sm:$0xff] }
  0x18   : > { %v2215_v3 = vld [vmem:[%s2478_s6 + $0xb8] sm:$0xff]  ;;  %1344 = vmatpush.bf16.msra.mxu1 %v2207_v2  ;;  %v2214_v7 = vld [vmem:[%s2478_s6 + $0xb0] sm:$0xff]  ;;  %v2213_v11 = vld [vmem:[%s2478_s6 + $0xa8] sm:$0xff] }
  0x19   : > { %v2223_v4 = vld [vmem:[%s2478_s6 + $0xf8] sm:$0xff]  ;;  %1357 = vmatpush.bf16.msra.mxu2 %v2215_v3  ;;  %v2222_v8 = vld [vmem:[%s2478_s6 + $0xf0] sm:$0xff]  ;;  %v2221_v12 = vld [vmem:[%s2478_s6 + $0xe8] sm:$0xff] }
  0x1a   : > { %1370 = vmatpush.bf16.msra.mxu3 %v2223_v4  ;;  %v2196_v13 = vld [vmem:[%s2478_s6 + $0x20] sm:$0xff]  ;;  %v2195_v17 = vld [vmem:[%s2478_s6 + $0x18] sm:$0xff]  ;;  %v2194_v22 = vld [vmem:[%s2478_s6 + $0x10] sm:$0xff] }
  0x1b   : > { %1332 = vmatpush.bf16.msra.mxu0 %v2198_v5  ;;  %v2204_v14 = vld [vmem:[%s2478_s6 + $0x60] sm:$0xff]  ;;  %v2203_v18 = vld [vmem:[%s2478_s6 + $0x58] sm:$0xff]  ;;  %v2202_v23 = vld [vmem:[%s2478_s6 + $0x50] sm:$0xff] }
  0x1c   : > { %1345 = vmatpush.bf16.msra.mxu1 %v2206_v6  ;;  %v2212_v15 = vld [vmem:[%s2478_s6 + $0xa0] sm:$0xff]  ;;  %v2211_v19 = vld [vmem:[%s2478_s6 + $0x98] sm:$0xff]  ;;  %v2210_v24 = vld [vmem:[%s2478_s6 + $0x90] sm:$0xff] }
  0x1d   : > { %1358 = vmatpush.bf16.msra.mxu2 %v2214_v7  ;;  %v2220_v16 = vld [vmem:[%s2478_s6 + $0xe0] sm:$0xff]  ;;  %v2219_v20 = vld [vmem:[%s2478_s6 + $0xd8] sm:$0xff]  ;;  %v2218_v25 = vld [vmem:[%s2478_s6 + $0xd0] sm:$0xff] }
  0x1e   : > { %1371 = vmatpush.bf16.msra.mxu3 %v2222_v8  ;;  %v269_v21 = vld [vmem:[%s2473_s27] sm:$0xff]  ;;  %v2193_v26 = vld [vmem:[%s2478_s6 + $0x8] sm:$0xff]  ;;  %v2231_v34 = vld [vmem:[%s2478_s6 + $0x138] sm:$0xff] }
  0x1f   : > { %1333 = vmatpush.bf16.msra.mxu0 %v2197_v9  ;;  %528 = vst [vmem:[#allocation1] ss:$9 sm:$0xff] %v269_v21  ;;  %v2201_v27 = vld [vmem:[%s2478_s6 + $0x48] sm:$0xff]  ;;  %v2192_v30 = vld [vmem:[%s2478_s6] sm:$0xff]  ;;  %v2239_v35 = vld [vmem:[%s2478_s6 + $0x178] sm:$0xff] }
  0x20   : > { %1346 = vmatpush.bf16.msra.mxu1 %v2205_v10  ;;  %v2209_v28 = vld [vmem:[%s2478_s6 + $0x88] sm:$0xff]  ;;  %v2200_v31 = vld [vmem:[%s2478_s6 + $0x40] sm:$0xff]  ;;  %v2247_v36 = vld [vmem:[%s2478_s6 + $0x1b8] sm:$0xff] }
  0x21   : > { %1359 = vmatpush.bf16.msra.mxu2 %v2213_v11  ;;  %v2217_v29 = vld [vmem:[%s2478_s6 + $0xc8] sm:$0xff]  ;;  %v2208_v32 = vld [vmem:[%s2478_s6 + $0x80] sm:$0xff]  ;;  %v2255_v37 = vld [vmem:[%s2478_s6 + $0x1f8] sm:$0xff] }
  0x22   : > { %1372 = vmatpush.bf16.msra.mxu3 %v2221_v12  ;;  %v2216_v33 = vld [vmem:[%s2478_s6 + $0xc0] sm:$0xff]  ;;  %v2230_v38 = vld [vmem:[%s2478_s6 + $0x130] sm:$0xff]  ;;  %v2229_v46 = vld [vmem:[%s2478_s6 + $0x128] sm:$0xff] }
  0x23   : > { %1334 = vmatpush.bf16.msra.mxu0 %v2196_v13  ;;  %v2238_v41 = vld [vmem:[%s2478_s6 + $0x170] sm:$0xff]  ;;  %v2237_v47 = vld [vmem:[%s2478_s6 + $0x168] sm:$0xff]  ;;  %v2228_v55 = vld [vmem:[%s2478_s6 + $0x120] sm:$0xff] }
  0x24   : > { %1347 = vmatpush.bf16.msra.mxu1 %v2204_v14  ;;  %v2246_v44 = vld [vmem:[%s2478_s6 + $0x1b0] sm:$0xff]  ;;  %v2245_v48 = vld [vmem:[%s2478_s6 + $0x1a8] sm:$0xff]  ;;  %v2236_v56 = vld [vmem:[%s2478_s6 + $0x160] sm:$0xff] }
  0x25   : > { %1360 = vmatpush.bf16.msra.mxu2 %v2212_v15  ;;  %v2254_v45 = vld [vmem:[%s2478_s6 + $0x1f0] sm:$0xff]  ;;  %v2253_v49 = vld [vmem:[%s2478_s6 + $0x1e8] sm:$0xff]  ;;  %v2244_v57 = vld [vmem:[%s2478_s6 + $0x1a0] sm:$0xff] }
  0x26   : > { %1373 = vmatpush.bf16.msra.mxu3 %v2220_v16  ;;  %v531_v39 = vld [vmem:[#allocation1 + $0x12] sm:$0xff]  ;;  %v529_v40 = vld [vmem:[#allocation1] sm:$0xff]  ;;  %v530_v43 = vld [vmem:[#allocation1 + $0x9] sm:$0xff] }
  0x27   : > { %1335 = vmatpush.bf16.msra.mxu0 %v2195_v17  ;;  %v532_v42 = vld [vmem:[#allocation1 + $0x1b] sm:$0xff]  ;;  %v533_v51 = vld [vmem:[#allocation1 + $0x24] sm:$0xff]  ;;  %v534_v54 = vld [vmem:[#allocation1 + $0x2d] sm:$0xff] }
  0x28   : > { %1348 = vmatpush.bf16.msra.mxu1 %v2203_v18  ;;  %v535_v50 = vld [vmem:[#allocation1 + $0x36] sm:$0xff]  ;;  %v536_v52 = vld [vmem:[#allocation1 + $0x3f] sm:$0xff]  ;;  %v270_v53 = vld [vmem:[%s2473_s27 + $0x8] sm:$0xff] }
  0x29   : > { %1361 = vmatpush.bf16.msra.mxu2 %v2211_v19  ;;  %538 = vst [vmem:[#allocation1] ss:$9 sm:$0xff] %v270_v53  ;;  %v2252_v58 = vld [vmem:[%s2478_s6 + $0x1e0] sm:$0xff]  ;;  %v2227_v59 = vld [vmem:[%s2478_s6 + $0x118] sm:$0xff]  ;;  %v2226_v63 = vld [vmem:[%s2478_s6 + $0x110] sm:$0xff] }
  0x2a   : > { %1374 = vmatpush.bf16.msra.mxu3 %v2219_v20  ;;  %v2235_v60 = vld [vmem:[%s2478_s6 + $0x158] sm:$0xff]  ;;  %v2234_v0 = vld [vmem:[%s2478_s6 + $0x150] sm:$0xff]  ;;  %v2225_v3 = vld [vmem:[%s2478_s6 + $0x108] sm:$0xff] }
  0x2b   : > { %1336 = vmatpush.bf16.msra.mxu0 %v2194_v22  ;;  %v2243_v61 = vld [vmem:[%s2478_s6 + $0x198] sm:$0xff]  ;;  %v2242_v1 = vld [vmem:[%s2478_s6 + $0x190] sm:$0xff]  ;;  %v2233_v4 = vld [vmem:[%s2478_s6 + $0x148] sm:$0xff] }
  0x2c   : > { %1349 = vmatpush.bf16.msra.mxu1 %v2202_v23  ;;  %v2251_v62 = vld [vmem:[%s2478_s6 + $0x1d8] sm:$0xff]  ;;  %v2250_v2 = vld [vmem:[%s2478_s6 + $0x1d0] sm:$0xff]  ;;  %v2241_v5 = vld [vmem:[%s2478_s6 + $0x188] sm:$0xff] }
  0x2d   : > { %1362 = vmatpush.bf16.msra.mxu2 %v2210_v24  ;;  %v2249_v6 = vld [vmem:[%s2478_s6 + $0x1c8] sm:$0xff]  ;;  %v2224_v7 = vld [vmem:[%s2478_s6 + $0x100] sm:$0xff]  ;;  %v2263_v11 = vld [vmem:[%s2478_s6 + $0x238] sm:$0xff] }
  0x2e   : > { %1375 = vmatpush.bf16.msra.mxu3 %v2218_v25  ;;  %v2232_v8 = vld [vmem:[%s2478_s6 + $0x140] sm:$0xff]  ;;  %v2271_v12 = vld [vmem:[%s2478_s6 + $0x278] sm:$0xff]  ;;  %v2262_v15 = vld [vmem:[%s2478_s6 + $0x230] sm:$0xff] }
  0x2f   : > { %1337 = vmatpush.bf16.msra.mxu0 %v2193_v26  ;;  %v2240_v9 = vld [vmem:[%s2478_s6 + $0x180] sm:$0xff]  ;;  %v2279_v13 = vld [vmem:[%s2478_s6 + $0x2b8] sm:$0xff]  ;;  %v2270_v16 = vld [vmem:[%s2478_s6 + $0x270] sm:$0xff] }
  0x30   : > { %1350 = vmatpush.bf16.msra.mxu1 %v2201_v27  ;;  %v2248_v10 = vld [vmem:[%s2478_s6 + $0x1c0] sm:$0xff]  ;;  %v2287_v14 = vld [vmem:[%s2478_s6 + $0x2f8] sm:$0xff]  ;;  %v2278_v17 = vld [vmem:[%s2478_s6 + $0x2b0] sm:$0xff] }
  0x31   : > { %1363 = vmatpush.bf16.msra.mxu2 %v2209_v28  ;;  %v2286_v18 = vld [vmem:[%s2478_s6 + $0x2f0] sm:$0xff]  ;;  %v2261_v19 = vld [vmem:[%s2478_s6 + $0x228] sm:$0xff]  ;;  %v2260_v23 = vld [vmem:[%s2478_s6 + $0x220] sm:$0xff] }
  0x32   : > { %1376 = vmatpush.bf16.msra.mxu3 %v2217_v29  ;;  %v2269_v20 = vld [vmem:[%s2478_s6 + $0x268] sm:$0xff]  ;;  %v2268_v24 = vld [vmem:[%s2478_s6 + $0x260] sm:$0xff]  ;;  %v2259_v27 = vld [vmem:[%s2478_s6 + $0x218] sm:$0xff] }
  0x33   : > { %1338 = vmatpush.bf16.msra.mxu0 %v2192_v30  ;;  %v2277_v21 = vld [vmem:[%s2478_s6 + $0x2a8] sm:$0xff]  ;;  %v2276_v25 = vld [vmem:[%s2478_s6 + $0x2a0] sm:$0xff]  ;;  %v2267_v28 = vld [vmem:[%s2478_s6 + $0x258] sm:$0xff] }
  0x34   : > { %1351 = vmatpush.bf16.msra.mxu1 %v2200_v31  ;;  %v2285_v22 = vld [vmem:[%s2478_s6 + $0x2e8] sm:$0xff]  ;;  %v2284_v26 = vld [vmem:[%s2478_s6 + $0x2e0] sm:$0xff]  ;;  %v2275_v29 = vld [vmem:[%s2478_s6 + $0x298] sm:$0xff] }
  0x35   : > { %1364 = vmatpush.bf16.msra.mxu2 %v2208_v32  ;;  %v2283_v30 = vld [vmem:[%s2478_s6 + $0x2d8] sm:$0xff]  ;;  %v2258_v31 = vld [vmem:[%s2478_s6 + $0x210] sm:$0xff] }
  0x36   : > { %1377 = vmatpush.bf16.msra.mxu3 %v2216_v33  ;;  %1339 = vmatmul.bf16.vlgmr.msra.gmra.mxu0 %v529_v40  ;;  %v2266_v32 = vld [vmem:[%s2478_s6 + $0x250] sm:$0xff]  ;;  %v2264_v40 = vld [vmem:[%s2478_s6 + $0x240] sm:$0xff] }
  0x37   : > { %1383 = vmatpush.bf16.msrb.mxu0 %v2231_v34  ;;  %1352 = vmatmul.bf16.vlgmr.msra.gmra.mxu1 %v530_v43  ;;  %v2274_v33 = vld [vmem:[%s2478_s6 + $0x290] sm:$0xff]  ;;  %v2295_v43 = vld [vmem:[%s2478_s6 + $0x338] sm:$0xff] }
  0x38   : > { %1396 = vmatpush.bf16.msrb.mxu1 %v2239_v35  ;;  %1365 = vmatmul.bf16.vlgmr.msra.gmra.mxu2 %v531_v39  ;;  %v2282_v34 = vld [vmem:[%s2478_s6 + $0x2d0] sm:$0xff]  ;;  %v2257_v35 = vld [vmem:[%s2478_s6 + $0x208] sm:$0xff]  ;;  %v2256_v39 = vld [vmem:[%s2478_s6 + $0x200] sm:$0xff] }
  0x39   : > { %1409 = vmatpush.bf16.msrb.mxu2 %v2247_v36  ;;  %1378 = vmatmul.bf16.vlgmr.msra.gmra.mxu3 %v532_v42  ;;  %v2265_v36 = vld [vmem:[%s2478_s6 + $0x248] sm:$0xff]  ;;  %v2280_v42 = vld [vmem:[%s2478_s6 + $0x2c0] sm:$0xff]  ;;  %v2310_v53 = vld [vmem:[%s2478_s6 + $0x3b0] sm:$0xff] }
  0x3a   : > { %1422 = vmatpush.bf16.msrb.mxu3 %v2255_v37  ;;  %v2273_v37 = vld [vmem:[%s2478_s6 + $0x288] sm:$0xff] }
  0x3b   : > { %1384 = vmatpush.bf16.msrb.mxu0 %v2230_v38  ;;  %v2281_v38 = vld [vmem:[%s2478_s6 + $0x2c8] sm:$0xff] }
  0x3c   : > { %1397 = vmatpush.bf16.msrb.mxu1 %v2238_v41  ;;  %v2272_v41 = vld [vmem:[%s2478_s6 + $0x280] sm:$0xff] }
  0x3d   : > { %1410 = vmatpush.bf16.msrb.mxu2 %v2246_v44  ;;  %v2303_v44 = vld [vmem:[%s2478_s6 + $0x378] sm:$0xff] }
  0x3e   : > { %1423 = vmatpush.bf16.msrb.mxu3 %v2254_v45  ;;  %v2311_v45 = vld [vmem:[%s2478_s6 + $0x3b8] sm:$0xff] }
  0x3f   : > { %1385 = vmatpush.bf16.msrb.mxu0 %v2229_v46  ;;  %v2319_v46 = vld [vmem:[%s2478_s6 + $0x3f8] sm:$0xff] }
  0x40   : > { %1398 = vmatpush.bf16.msrb.mxu1 %v2237_v47  ;;  %v539_v47 = vld [vmem:[#allocation1] sm:$0xff] }
  0x41   : > { %1411 = vmatpush.bf16.msrb.mxu2 %v2245_v48  ;;  %v541_v48 = vld [vmem:[#allocation1 + $0x12] sm:$0xff] }
  0x42   : > { %1424 = vmatpush.bf16.msrb.mxu3 %v2253_v49  ;;  %v540_v49 = vld [vmem:[#allocation1 + $0x9] sm:$0xff] }
  0x43   : > { %1386 = vmatpush.bf16.msrb.mxu0 %v2228_v55  ;;  %v2293_v55 = vld [vmem:[%s2478_s6 + $0x328] sm:$0xff] }
  0x44   : > { %1399 = vmatpush.bf16.msrb.mxu1 %v2236_v56  ;;  %v2301_v56 = vld [vmem:[%s2478_s6 + $0x368] sm:$0xff] }
  0x45   : > { %1412 = vmatpush.bf16.msrb.mxu2 %v2244_v57  ;;  %v2309_v57 = vld [vmem:[%s2478_s6 + $0x3a8] sm:$0xff] }
  0x46   : > { %1425 = vmatpush.bf16.msrb.mxu3 %v2252_v58  ;;  %v2317_v58 = vld [vmem:[%s2478_s6 + $0x3e8] sm:$0xff] }
  0x47   : > { %1387 = vmatpush.bf16.msrb.mxu0 %v2227_v59  ;;  %v2292_v59 = vld [vmem:[%s2478_s6 + $0x320] sm:$0xff] }
  0x48   : > { %1400 = vmatpush.bf16.msrb.mxu1 %v2235_v60  ;;  %v2300_v60 = vld [vmem:[%s2478_s6 + $0x360] sm:$0xff] }
  0x49   : > { %1413 = vmatpush.bf16.msrb.mxu2 %v2243_v61  ;;  %v2308_v61 = vld [vmem:[%s2478_s6 + $0x3a0] sm:$0xff] }
  0x4a   : > { %1426 = vmatpush.bf16.msrb.mxu3 %v2251_v62  ;;  %v2316_v62 = vld [vmem:[%s2478_s6 + $0x3e0] sm:$0xff] }
  0x4b   : > { %1388 = vmatpush.bf16.msrb.mxu0 %v2226_v63  ;;  %v2291_v63 = vld [vmem:[%s2478_s6 + $0x318] sm:$0xff] }
  0x4c   : > { %1401 = vmatpush.bf16.msrb.mxu1 %v2234_v0  ;;  %v2299_v0 = vld [vmem:[%s2478_s6 + $0x358] sm:$0xff] }
  0x4d   : > { %1414 = vmatpush.bf16.msrb.mxu2 %v2242_v1  ;;  %v2307_v1 = vld [vmem:[%s2478_s6 + $0x398] sm:$0xff] }
  0x4e   : > { %1427 = vmatpush.bf16.msrb.mxu3 %v2250_v2  ;;  %v2315_v2 = vld [vmem:[%s2478_s6 + $0x3d8] sm:$0xff] }
  0x4f   : > { %1389 = vmatpush.bf16.msrb.mxu0 %v2225_v3  ;;  %v2290_v3 = vld [vmem:[%s2478_s6 + $0x310] sm:$0xff] }
  0x50   : > { %1402 = vmatpush.bf16.msrb.mxu1 %v2233_v4  ;;  %v2298_v4 = vld [vmem:[%s2478_s6 + $0x350] sm:$0xff] }
  0x51   : > { %1415 = vmatpush.bf16.msrb.mxu2 %v2241_v5  ;;  %v2306_v5 = vld [vmem:[%s2478_s6 + $0x390] sm:$0xff] }
  0x52   : > { %1428 = vmatpush.bf16.msrb.mxu3 %v2249_v6  ;;  %v2314_v6 = vld [vmem:[%s2478_s6 + $0x3d0] sm:$0xff] }
  0x53   : > { %1390 = vmatpush.bf16.msrb.mxu0 %v2224_v7  ;;  %v2289_v7 = vld [vmem:[%s2478_s6 + $0x308] sm:$0xff] }
  0x54   : > { %1403 = vmatpush.bf16.msrb.mxu1 %v2232_v8  ;;  %v2297_v8 = vld [vmem:[%s2478_s6 + $0x348] sm:$0xff] }
  0x55   : > { %1416 = vmatpush.bf16.msrb.mxu2 %v2240_v9  ;;  %v2305_v9 = vld [vmem:[%s2478_s6 + $0x388] sm:$0xff] }
  0x56   : > { %1429 = vmatpush.bf16.msrb.mxu3 %v2248_v10  ;;  %1391 = vmatmul.bf16.vlgmr.msrb.gmra.mxu0 %v533_v51  ;;  %v2294_v51 = vld [vmem:[%s2478_s6 + $0x330] sm:$0xff]  ;;  %v2313_v10 = vld [vmem:[%s2478_s6 + $0x3c8] sm:$0xff] }
  0x57   : > { %1435 = vmatpush.bf16.msra.mxu0 %v2263_v11  ;;  %1404 = vmatmul.bf16.vlgmr.msrb.gmra.mxu1 %v534_v54  ;;  %v2318_v54 = vld [vmem:[%s2478_s6 + $0x3f0] sm:$0xff]  ;;  %v2288_v11 = vld [vmem:[%s2478_s6 + $0x300] sm:$0xff] }
  0x58   : > { %1448 = vmatpush.bf16.msra.mxu1 %v2271_v12  ;;  %1417 = vmatmul.bf16.vlgmr.msrb.gmra.mxu2 %v535_v50  ;;  %v542_v50 = vld [vmem:[#allocation1 + $0x1b] sm:$0xff] }
  0x59   : > { %1461 = vmatpush.bf16.msra.mxu2 %v2279_v13  ;;  %1430 = vmatmul.bf16.vlgmr.msrb.gmra.mxu3 %v536_v52  ;;  %v2302_v52 = vld [vmem:[%s2478_s6 + $0x370] sm:$0xff]  ;;  %v2296_v12 = vld [vmem:[%s2478_s6 + $0x340] sm:$0xff] }
  0x5a   : > { %1474 = vmatpush.bf16.msra.mxu3 %v2287_v14  ;;  %v2304_v13 = vld [vmem:[%s2478_s6 + $0x380] sm:$0xff] }
  0x5b   : > { %1436 = vmatpush.bf16.msra.mxu0 %v2262_v15  ;;  %v2312_v14 = vld [vmem:[%s2478_s6 + $0x3c0] sm:$0xff] }
  0x5c   : > { %1449 = vmatpush.bf16.msra.mxu1 %v2270_v16  ;;  %v543_v15 = vld [vmem:[#allocation1 + $0x24] sm:$0xff]  ;;  %v544_v16 = vld [vmem:[#allocation1 + $0x2d] sm:$0xff] }
  0x5d   : > { %1462 = vmatpush.bf16.msra.mxu2 %v2278_v17  ;;  %v545_v17 = vld [vmem:[#allocation1 + $0x36] sm:$0xff] }
  0x5e   : > { %1475 = vmatpush.bf16.msra.mxu3 %v2286_v18  ;;  %v546_v18 = vld [vmem:[#allocation1 + $0x3f] sm:$0xff] }
  0x5f   : > { %1437 = vmatpush.bf16.msra.mxu0 %v2261_v19 }
  0x60   : > { %1450 = vmatpush.bf16.msra.mxu1 %v2269_v20 }
  0x61   : > { %1463 = vmatpush.bf16.msra.mxu2 %v2277_v21 }
  0x62   : > { %1476 = vmatpush.bf16.msra.mxu3 %v2285_v22 }
  0x63   : > { %1438 = vmatpush.bf16.msra.mxu0 %v2260_v23 }
  0x64   : > { %1451 = vmatpush.bf16.msra.mxu1 %v2268_v24 }
  0x65   : > { %1464 = vmatpush.bf16.msra.mxu2 %v2276_v25 }
  0x66   : > { %1477 = vmatpush.bf16.msra.mxu3 %v2284_v26 }
  0x67   : > { %1439 = vmatpush.bf16.msra.mxu0 %v2259_v27 }
  0x68   : > { %1452 = vmatpush.bf16.msra.mxu1 %v2267_v28 }
  0x69   : > { %1465 = vmatpush.bf16.msra.mxu2 %v2275_v29 }
  0x6a   : > { %1478 = vmatpush.bf16.msra.mxu3 %v2283_v30 }
  0x6b   : > { %1440 = vmatpush.bf16.msra.mxu0 %v2258_v31 }
  0x6c   : > { %1453 = vmatpush.bf16.msra.mxu1 %v2266_v32 }
  0x6d   : > { %1466 = vmatpush.bf16.msra.mxu2 %v2274_v33 }
  0x6e   : > { %1479 = vmatpush.bf16.msra.mxu3 %v2282_v34 }
  0x6f   : > { %1441 = vmatpush.bf16.msra.mxu0 %v2257_v35 }
  0x70   : > { %1454 = vmatpush.bf16.msra.mxu1 %v2265_v36 }
  0x71   : > { %1467 = vmatpush.bf16.msra.mxu2 %v2273_v37 }
  0x72   : > { %1480 = vmatpush.bf16.msra.mxu3 %v2281_v38 }
  0x73   : > { %1442 = vmatpush.bf16.msra.mxu0 %v2256_v39 }
  0x74   : > { %1455 = vmatpush.bf16.msra.mxu1 %v2264_v40 }
  0x75   : > { %1468 = vmatpush.bf16.msra.mxu2 %v2272_v41 }
  0x76   : > { %1481 = vmatpush.bf16.msra.mxu3 %v2280_v42  ;;  %1443 = vmatmul.bf16.vlgmr.msra.gmra.mxu0 %v539_v47 }
  0x77   : > { %1487 = vmatpush.bf16.msrb.mxu0 %v2295_v43  ;;  %1456 = vmatmul.bf16.vlgmr.msra.gmra.mxu1 %v540_v49 }
  0x78   : > { %1500 = vmatpush.bf16.msrb.mxu1 %v2303_v44  ;;  %1469 = vmatmul.bf16.vlgmr.msra.gmra.mxu2 %v541_v48 }
  0x79   : > { %1513 = vmatpush.bf16.msrb.mxu2 %v2311_v45  ;;  %1482 = vmatmul.bf16.vlgmr.msra.gmra.mxu3 %v542_v50 }
  0x7a   : > { %1526 = vmatpush.bf16.msrb.mxu3 %v2319_v46 }
  0x7b   : > { %1488 = vmatpush.bf16.msrb.mxu0 %v2294_v51 }
  0x7c   : > { %1501 = vmatpush.bf16.msrb.mxu1 %v2302_v52 }
  0x7d   : > { %1514 = vmatpush.bf16.msrb.mxu2 %v2310_v53 }
  0x7e   : > { %1527 = vmatpush.bf16.msrb.mxu3 %v2318_v54 }
  0x7f   : > { %1489 = vmatpush.bf16.msrb.mxu0 %v2293_v55 }
  0x80   : > { %1502 = vmatpush.bf16.msrb.mxu1 %v2301_v56 }
  0x81   : > { %1515 = vmatpush.bf16.msrb.mxu2 %v2309_v57 }
  0x82   : > { %1528 = vmatpush.bf16.msrb.mxu3 %v2317_v58 }
  0x83   : > { %1490 = vmatpush.bf16.msrb.mxu0 %v2292_v59 }
  0x84   : > { %1503 = vmatpush.bf16.msrb.mxu1 %v2300_v60 }
  0x85   : > { %1516 = vmatpush.bf16.msrb.mxu2 %v2308_v61 }
  0x86   : > { %1529 = vmatpush.bf16.msrb.mxu3 %v2316_v62 }
  0x87   : > { %1491 = vmatpush.bf16.msrb.mxu0 %v2291_v63  ;;  %v268_v63 = vld [vmem:[#allocation2] sm:$0x3] }
  0x88   : > { %1504 = vmatpush.bf16.msrb.mxu1 %v2299_v0 }
  0x89   : > { %1517 = vmatpush.bf16.msrb.mxu2 %v2307_v1 }
  0x8a   : > { %1530 = vmatpush.bf16.msrb.mxu3 %v2315_v2 }
  0x8b   : > { %1492 = vmatpush.bf16.msrb.mxu0 %v2290_v3 }
  0x8c   : > { %1505 = vmatpush.bf16.msrb.mxu1 %v2298_v4 }
  0x8d   : > { %1518 = vmatpush.bf16.msrb.mxu2 %v2306_v5 }
  0x8e   : > { %1531 = vmatpush.bf16.msrb.mxu3 %v2314_v6 }
  0x8f   : > { %1493 = vmatpush.bf16.msrb.mxu0 %v2289_v7 }
  0x90   : > { %1506 = vmatpush.bf16.msrb.mxu1 %v2297_v8 }
  0x91   : > { %1519 = vmatpush.bf16.msrb.mxu2 %v2305_v9 }
  0x92   : > { %1532 = vmatpush.bf16.msrb.mxu3 %v2313_v10 }
  0x93   : > { %1494 = vmatpush.bf16.msrb.mxu0 %v2288_v11 }
  0x94   : > { %1507 = vmatpush.bf16.msrb.mxu1 %v2296_v12 }
  0x95   : > { %1520 = vmatpush.bf16.msrb.mxu2 %v2304_v13 }
  0x96   : > { %1533 = vmatpush.bf16.msrb.mxu3 %v2312_v14  ;;  %1495 = vmatmul.bf16.vlgmr.msrb.gmra.mxu0 %v543_v15 }
  0x97   : > { %1508 = vmatmul.bf16.vlgmr.msrb.gmra.mxu1 %v544_v16 }
  0x98   : > { %1521 = vmatmul.bf16.vlgmr.msrb.gmra.mxu2 %v545_v17 }
  0x99   : > { %1534 = vmatmul.bf16.vlgmr.msrb.gmra.mxu3 %v546_v18 }
  0xb3   : > { %v1340_v19 = vpop.f32.mrf.mxu0 }
  0xb4   : > { %v1353_v20 = vpop.f32.mrf.mxu1 }
  0xb5   : > { %v1354_v21 = vadd.f32 %v1353_v20, %v1340_v19 }
  0xbb   : > { %v1366_v22 = vpop.f32.mrf.mxu2  ;;  %v1342_v25 = vpop.f32.mrf.mxu0 }
  0xbc   : > { %v1367_v23 = vadd.f32 %v1366_v22, %v1354_v21  ;;  %v1379_v24 = vpop.f32.mrf.mxu3  ;;  %v1355_v27 = vpop.f32.mrf.mxu1 }
  0xbe   : > { %v1380_v26 = vadd.f32 %v1379_v24, %v1367_v23 }
  0xc3   : > { %v1368_v28 = vpop.f32.mrf.mxu2 }
  0xc4   : > { %v1381_v29 = vpop.f32.mrf.mxu3 }
  0xd3   : > { %v1392_v30 = vpop.f32.mrf.mxu0 }
  0xd4   : > { %v1405_v31 = vpop.f32.mrf.mxu1  ;;  %v1393_v40 = vadd.f32 %v1392_v30, %v1380_v26 }
  0xd6   : > { %v1406_v44 = vadd.f32 %v1405_v31, %v1393_v40 }
  0xdb   : > { %v1418_v32 = vpop.f32.mrf.mxu2  ;;  %v1394_v34 = vpop.f32.mrf.mxu0 }
  0xdc   : > { %v1431_v33 = vpop.f32.mrf.mxu3  ;;  %v1407_v35 = vpop.f32.mrf.mxu1  ;;  %v1419_v46 = vadd.f32 %v1418_v32, %v1406_v44 }
  0xde   : > { %v1432_v49 = vadd.f32 %v1431_v33, %v1419_v46 }
  0xe3   : > { %v1420_v36 = vpop.f32.mrf.mxu2 }
  0xe4   : > { %v1433_v37 = vpop.f32.mrf.mxu3 }
  0xf3   : > { %v1444_v38 = vpop.f32.mrf.mxu0 }
  0xf4   : > { %v1457_v39 = vpop.f32.mrf.mxu1  ;;  %v1445_v50 = vadd.f32 %v1444_v38, %v1432_v49 }
  0xf6   : > { %v1458_v51 = vadd.f32 %v1457_v39, %v1445_v50 }
  0xfb   : > { %v1470_v41 = vpop.f32.mrf.mxu2  ;;  %v1446_v43 = vpop.f32.mrf.mxu0 }
  0xfc   : > { %v1483_v42 = vpop.f32.mrf.mxu3  ;;  %v1459_v45 = vpop.f32.mrf.mxu1  ;;  %v1471_v52 = vadd.f32 %v1470_v41, %v1458_v51 }
  0xfe   : > { %v1484_v53 = vadd.f32 %v1483_v42, %v1471_v52 }
 0x103   : > { %v1472_v47 = vpop.f32.mrf.mxu2 }
 0x104   : > { %v1485_v48 = vpop.f32.mrf.mxu3 }
 0x113   : > { %v1496_v54 = vpop.f32.mrf.mxu0 }
 0x114   : > { %v1509_v55 = vpop.f32.mrf.mxu1  ;;  %v1497_v56 = vadd.f32 %v1496_v54, %v1484_v53 }
 0x116   : > { %v1510_v57 = vadd.f32 %v1509_v55, %v1497_v56 }
 0x11b   : > { %v1522_v58 = vpop.f32.mrf.mxu2  ;;  %v1498_v61 = vpop.f32.mrf.mxu0 }
 0x11c   : > { %v1535_v59 = vpop.f32.mrf.mxu3  ;;  %v1523_v60 = vadd.f32 %v1522_v58, %v1510_v57  ;;  %v1511_v62 = vpop.f32.mrf.mxu1 }
 0x11e   : > { %v1536_v0 = vadd.f32 %v1535_v59, %v1523_v60 }
 0x120   : > { %v1539_v1 = vadd.f32 %v1536_v0, %v268_v63  ;;  %1544 = sbr.rel (%p2187_p7) target bundleno = 578 (0x242), region = 48 }
 0x122   : > { %1540 = vst [vmem:[#allocation2] sm:$0x3] %v1539_v1 }
 0x123   : > { %v1524_v2 = vpop.f32.mrf.mxu2 }
 0x124   : > { %v1537_v3 = vpop.f32.mrf.mxu3 }
 0x125   : > { %v2352_v5 = vld [vmem:[%s2637_s2] ss:$0 sm:$0xff]  ;;  %v1551_v6 = vlaneseq  ;;  %vm1555_vm0 = vcmask 1041408  }
 0x126   : > { %v2353_v26 = vld [vmem:[%s2638_s3] ss:$0 sm:$0xff] }
 0x127   : > { %v1552_v8 = vand.u32 127, %v1551_v6  ;;  %v2354_v28 = vld [vmem:[%s2639_s4] ss:$0 sm:$0xff] }
 0x129   : > { %v1545_v4 = vld [vmem:[#allocation2] sm:$0x3]  ;;  %vm1553_vm1 = vcmp.lt.s32.totalorder %v1552_v8, 32 }
 0x12a   : > { %v1550_v7 = vadd.f32 %v2352_v5, %v1545_v4 }
 0x12c   : > { %v1554_v9 = vsel %vm1553_vm1, %v1550_v7, 0.0 }
 0x12d   : > { %v1556_v10 = vsel %vm1555_vm0, %v1554_v9, 0.0 }
 0x12e   : > { %1557 = vadd.xlane.f32.xlu0 %v1556_v10 }
 0x1a1   : > { %v1558_v11 = vpop.xlane.xlu0 %1557 }
 0x1a2   : > { %v1559_v12 = vmul.f32 0.03125, %v1558_v11 }
 0x1a4   : > { %v1560_v13 = vsub.f32 %v1550_v7, %v1559_v12 }
 0x1a6   : > { %v1561_v14 = vsel %vm1553_vm1, %v1560_v13, 0.0 }
 0x1a7   : > { %v1562_v15 = vmul.f32 %v1561_v14, %v1561_v14 }
 0x1a9   : > { %v1563_v16 = vsel %vm1555_vm0, %v1562_v15, 0.0 }
 0x1aa   : > { %1564 = vadd.xlane.f32.xlu0 %v1563_v16 }
 0x21d   : > { %v1565_v17 = vpop.xlane.xlu0 %1564 }
 0x21e   : > { %v1566_v18 = vmul.f32 0.03125, %v1565_v17 }
 0x220   : > { %v1567_v19 = vadd.f32 1e-05, %v1566_v18 }
 0x222   : > { %2355 = vrsqrt.f32 %v1567_v19  ;;  %vm1574_vm3 = vweird.f32 %v1567_v19 }
 0x228   : > { %v2356_v20 = vpop.eup %2355 }
 0x229   : > { %v1569_v21 = vmul.f32 %v2356_v20, %v1567_v19  ;;  %vm1575_vm2 = vweird.f32 %v2356_v20 }
 0x22a   : > { %vm1576_vm4 = vmor %vm1574_vm3, %vm1575_vm2 }
 0x22b   : > { %v1570_v22 = vmul.f32 %v2356_v20, %v1569_v21 }
 0x22d   : > { %v1571_v23 = vmul.f32 0.5, %v1570_v22 }
 0x22f   : > { %v1572_v24 = vsub.f32 1.5, %v1571_v23 }
 0x231   : > { %v1573_v25 = vmul.f32 %v2356_v20, %v1572_v24 }
 0x233   : > { %v1577_v27 = vsel %vm1576_vm4, %v2356_v20, %v1573_v25 }
 0x234   : > { %v1578_v29 = vmul.f32 %v1577_v27, %v1561_v14 }
 0x236   : > { %v1583_v30 = vmul.f32 %v2353_v26, %v1578_v29 }
 0x238   : > { %v1588_v31 = vadd.f32 %v2354_v28, %v1583_v30 }
 0x23a   : > { %2357 = vtanh.f32 %v1588_v31 }
 0x240   : > { %v2358_v32 = vpop.eup %2357 }
 0x241   : > { %1590 = vst [vmem:[#allocation3] sm:$0x3] %v2358_v32 }
 0x242 PF: > { %p2324_p8 = scmp.eq.s32.totalorder %s1667_s21, 7  ;;  %s1601_s15 = sshll.u32 %s2640_s5, 4  ;;  %s1602_s15 = int_to_ptr.hbm [resolvable:$true] %s1601_s15 }
 0x243   : > { %s2416_s16 = smov [#allocation3]  }
 0x244   : > { %s1599_s17 = sshll.u32 %s2416_s16, 4  ;;  %s1600_s17 = int_to_ptr.vmem [resolvable:$true] %s1599_s17 }
 0x245   : > { %2321 = dma.vmem_to_hbm [thread:$0]  (%p2324_p8), %s1600_s17, 32, %s1602_s15, [#allocation4]  }
 0x246   : > { %2400 = dma.done.wait (%p2324_p8), [#allocation4], 32  }
 0x247   : > { %2402 = vsyncadd (%p2324_p8), [#allocation4], 4294967264 }
 0x248 PF: > { %s16_s20 = sadd.s32 1, %s2413_s20   ;;  %s2641_s18 = smov %s2409_s19 }
 0x249   : > { %p13_p9 = scmp.ge.s32.totalorder %s16_s20, 10   ;;  %s2642_s19 = smov %s2644_s22 }
 0x24b   :  { %15 = sbr.rel (!%p13_p9) target bundleno = 2 (0x2), region = 79 }
 0x250   :  { %1615 = vsyncpa [#allocation4], 1 }
 0x251   :  { %1617 = vsyncpa [#allocation4 + $0x1], 1 }

// kernel: encoder_forward.2
= control target key start
LH: loop header
LB: loop body
LE: loop exit
PB: predicated region body
PF: predicated region fallthrough
CT: control target
= control target key end

     0   :  { %s2805_s18 = smov 0   ;;  %s3605_s0 = inlined_call_operand.vmem [shape: bf16[2,16,1024], index: 0, kind: input, shape index: {}]   ;;  %s3606_s1 = inlined_call_operand.vmem [shape: bf16[16,64], index: 1, kind: input, shape index: {}]   ;;  %s3607_s2 = inlined_call_operand.vmem [shape: f32[16,1], index: 2, kind: input, shape index: {}]   ;;  %s3608_s3 = inlined_call_operand.vmem [shape: bf16[16,144], index: 3, kind: input, shape index: {}]   ;;  %s3609_s4 = inlined_call_operand.vmem [shape: f32[16,1], index: 4, kind: input, shape index: {}]   ;;  %s3610_s5 = inlined_call_operand.vmem [shape: bf16[2,16,1024], index: 5, kind: output, shape index: {}]  }
   0x1 LB: > { %s2174_s19 = sadd.s32 4294967295, %s2764_s18   ;;  %p2178_p0 = scmp.ge.s32.totalorder %s2764_s18, 1  ;;  %s2764_s18 = sphi %s2805_s18, %s15_s18  }
   0x2   : > { %p187_p1 = scmp.lt.s32.totalorder %s2764_s18, 3 }
   0x4   : > { %p188_p2 = pnand %p2178_p0, %p187_p1 }
   0x5   : > { %p215_p3 = scmp.lt.s32.totalorder (!%p188_p2), %s2174_s19, 1  ;;  %s2766_s24 = smov (!%p188_p2), 95  }
   0x6   : > { %191 = sbr.rel (%p188_p2) target bundleno = 785 (0x311), region = 40  ;;  %s2767_s25 = smov (!%p188_p2), 96  }
   0x7   : > { %s2768_s26 = smov (!%p188_p2), 127   ;;  %s2770_s8 = smov (!%p188_p2), 63  }
   0x8   : > { %s2771_s9 = smov (!%p188_p2), 64   ;;  %s2772_s10 = smov (!%p188_p2), 94  }
   0x9   : > { %s2773_s11 = smov (!%p188_p2), 62   ;;  %s2774_s12 = smov (!%p188_p2), 126  }
   0xb   : > { %s3616_s19 = smov (!%p215_p3, %s2174_s19), 1  ;;  %vm237_vm0 = vcmask 1043456   ;;  %vm358_vm1 = vcmask 785408   ;;  %vm238_vm2 = vcmask 777220   ;;  %vm429_vm4 = vcmask 777216  }
   0xc   : > { %s2629_s20 = sshll.u32 %s3616_s19, 6  ;;  %vm2858_vm3 = vmor %vm238_vm2, %vm237_vm0  ;;  %vm287_vm5 = vcmask 1039360   ;;  %vm574_vm6 = vcmask 523264   ;;  %vm829_vm7 = vcmask 236548   ;;  %vm1300_vm9 = vcmask 515072  }
   0xd   : > { %s2821_s23 = scalar_lea.vmem %s3605_s0, %s2629_s20  ;;  %vm3053_vm8 = vmor %vm829_vm7, %vm237_vm0  ;;  %vm1158_vm10 = vcmask 769024   ;;  %vm947_vm11 = vcmask 1031168   ;;  %vm1371_vm12 = vcmask 506880   ;;  %vm1640_vm13 = vcmask 130048   ;;  %s3571_s30 = scalar_lea.vmem %s3610_s5, %s2629_s20 }
   0xe   : > { %v392_v0 = vld [vmem:[%s2821_s23 + $0x20] sm:$0xff]  ;;  %v389_v2 = vld [vmem:[%s2821_s23 + $0x8] sm:$0xff]  ;;  %v390_v4 = vld [vmem:[%s2821_s23 + $0x10] sm:$0xff]  ;;  %vm2116_vm14 = vcmask 1043688  }
   0xf   : > { %v388_v1 = vld [vmem:[%s2821_s23] sm:$0xff]  ;;  %412 = vrot.lane.b32.xlu1 %v392_v0, %s2766_s24  ;;  %241 = vst [vmem:[#allocation2 + $0x20] sm:$0xff] %v392_v0  ;;  %v393_v3 = vld [vmem:[%s2821_s23 + $0x28] sm:$0xff]  ;;  %v394_v5 = vld [vmem:[%s2821_s23 + $0x30] sm:$0xff] }
  0x10   : > { %404 = vrot.lane.b32.xlu0 %v388_v1, %s2766_s24  ;;  %234 = vst [vmem:[#allocation2] sm:$0xff] %v388_v1  ;;  %333 = vrot.lane.b32.xlu2 %v388_v1, %s2767_s25  ;;  %v395_v6 = vld [vmem:[%s2821_s23 + $0x38] sm:$0xff] }
  0x11   : > { %235 = vst [vmem:[#allocation2 + $0x8] sm:$0xff] %v389_v2  ;;  %v391_v7 = vld [vmem:[%s2821_s23 + $0x18] sm:$0xff] }
  0x12   : > { %242 = vst [vmem:[#allocation2 + $0x28] sm:$0xff] %v393_v3 }
  0x13   : > { %236 = vst [vmem:[#allocation2 + $0x10] sm:$0xff] %v390_v4 }
  0x14   : > { %243 = vst [vmem:[#allocation2 + $0x30] sm:$0xff] %v394_v5 }
  0x15   : > { %240 = vst.msk [vmem:[#allocation2 + $0x18] sm:$0xff] %vm2858_vm3, %v391_v7 }
  0x16   : > { %244 = vst.msk [vmem:[#allocation2 + $0x38] sm:$0xff] %vm2858_vm3, %v395_v6 }
  0x17   : > { %414 = vrot.lane.b32.xlu1 %v393_v3, %s2766_s24 }
  0x18   : > { %406 = vrot.lane.b32.xlu0 %v389_v2, %s2766_s24  ;;  %335 = vrot.lane.b32.xlu2 %v389_v2, %s2767_s25 }
  0x1f   : > { %343 = vrot.lane.b32.xlu1 %v393_v3, %s2767_s25 }
  0x20   : > { %341 = vrot.lane.b32.xlu0 %v392_v0, %s2767_s25  ;;  %261 = vrot.lane.b32.xlu2 %v388_v1, %s2768_s26 }
  0x27   : > { %269 = vrot.lane.b32.xlu1 %v392_v0, %s2768_s26 }
  0x28   : > { %263 = vrot.lane.b32.xlu0 %v389_v2, %s2768_s26  ;;  %271 = vrot.lane.b32.xlu2 %v393_v3, %s2768_s26 }
  0x2f   : > { %416 = vrot.lane.b32.xlu1 %v394_v5, %s2766_s24 }
  0x30   : > { %408 = vrot.lane.b32.xlu0 %v390_v4, %s2766_s24  ;;  %337 = vrot.lane.b32.xlu2 %v390_v4, %s2767_s25 }
  0x37   : > { %265 = vrot.lane.b32.xlu1 %v390_v4, %s2768_s26 }
  0x38   : > { %345 = vrot.lane.b32.xlu0 %v394_v5, %s2767_s25  ;;  %273 = vrot.lane.b32.xlu2 %v394_v5, %s2768_s26 }
  0x3f   : > { %418 = vrot.lane.b32.xlu1 %v395_v6, %s2766_s24 }
  0x40   : > { %410 = vrot.lane.b32.xlu0 %v391_v7, %s2766_s24  ;;  %339 = vrot.lane.b32.xlu2 %v391_v7, %s2767_s25 }
  0x47   : > { %267 = vrot.lane.b32.xlu1 %v391_v7, %s2768_s26 }
  0x48   : > { %347 = vrot.lane.b32.xlu0 %v395_v6, %s2767_s25  ;;  %275 = vrot.lane.b32.xlu2 %v395_v6, %s2768_s26  ;;  %v461_v6 = vld [vmem:[%s3607_s2] sm:$0xff] }
  0x6a   : > { %v334_v8 = vpop.permute.xlu2 %333 }
  0x6b   : > { %v349_v9 = vrot.slane %v334_v8, 4 }
  0x72   : > { %v336_v10 = vpop.permute.xlu2 %335 }
  0x73   : > { %v350_v11 = vrot.slane %v336_v10, 4 }
  0x75   : > { %v357_v12 = vsel %vm237_vm0, %v349_v9, %v350_v11  ;;  %v2769_v9 = vmov 0  }
  0x76   : > { %v359_v13 = vsel %vm358_vm1, %v334_v8, %v357_v12  ;;  %2755 = vset.pattern.permute.xlu0 %v2769_v9  ;;  %2756 = vset.pattern.permute.xlu1 %v2769_v9 }
  0x77   : > { %380 = vst [vmem:[#allocation2 + $0x80] sm:$0xff] %v359_v13  ;;  %481 = vperm.xlu0 %2755, %v461_v6   ;;  %2757 = vset.pattern.permute.xlu2 %v2769_v9 }
  0x7a   : > { %v262_v14 = vpop.permute.xlu2 %261 }
  0x7b   : > { %v277_v52 = vrot.slane %v262_v14, 4 }
  0x7e   : > { %v2221_v59 = vld [vmem:[#allocation2 + $0x80] sm:$0xf]  ;;  %v2640_v63 = vld [vmem:[#allocation2 + $0x84] sm:$0xf] }
  0x81   : > { %v413_v15 = vpop.permute.xlu1 %412 }
  0x82   : > { %v405_v16 = vpop.permute.xlu0 %404  ;;  %v272_v17 = vpop.permute.xlu2 %271  ;;  %v424_v21 = vrot.slane %v413_v15, 4 }
  0x83   : > { %v420_v22 = vrot.slane %v405_v16, 4  ;;  %v282_v33 = vrot.slane %v272_v17, 4 }
  0x89   : > { %v2862_v19 = vpop.permute.xlu1 %414 }
  0x8a   : > { %v2864_v20 = vpop.permute.xlu0 %406  ;;  %v425_v23 = vrot.slane %v2862_v19, 4  ;;  %v338_v25 = vpop.permute.xlu2 %337 }
  0x8b   : > { %v421_v24 = vrot.slane %v2864_v20, 4  ;;  %v351_v26 = vrot.slane %v338_v25, 4 }
  0x8c   : > { %v436_v27 = vsel %vm237_vm0, %v424_v21, %v425_v23  ;;  %v2634_v21 = vld [vmem:[#allocation2 + $0x1c] sm:$0xf0] }
  0x8d   : > { %v428_v28 = vsel %vm237_vm0, %v420_v22, %v421_v24  ;;  %v437_v29 = vsel %vm429_vm4, %v413_v15, %v436_v27  ;;  %v360_v31 = vsel %vm237_vm0, %v350_v11, %v351_v26  ;;  %v2632_v22 = vld [vmem:[#allocation2 + $0x4] sm:$0xf] }
  0x8e   : > { %v430_v30 = vsel %vm429_vm4, %v405_v16, %v428_v28  ;;  %455 = vst [vmem:[#allocation2 + $0xe0] sm:$0xff] %v437_v29  ;;  %v361_v32 = vsel %vm358_vm1, %v336_v10, %v360_v31  ;;  %v2191_v29 = vld [vmem:[#allocation2 + $0x20] sm:$0xf0] }
  0x8f   : > { %451 = vst [vmem:[#allocation2 + $0xc0] sm:$0xff] %v430_v30 }
  0x90   : > { %381 = vst [vmem:[#allocation2 + $0x88] sm:$0xff] %v361_v32 }
  0x91   : > { %v2882_v34 = vpop.permute.xlu1 %343 }
  0x92   : > { %v342_v35 = vpop.permute.xlu0 %341  ;;  %v354_v36 = vrot.slane %v2882_v34, 4  ;;  %v2885_v38 = vpop.permute.xlu2 %273 }
  0x93   : > { %v353_v37 = vrot.slane %v342_v35, 4  ;;  %v283_v39 = vrot.slane %v2885_v38, 4 }
  0x95   : > { %v365_v40 = vsel %vm237_vm0, %v353_v37, %v354_v36  ;;  %v296_v42 = vsel %vm237_vm0, %v282_v33, %v283_v39  ;;  %v2646_v43 = vld [vmem:[#allocation2 + $0xdc] sm:$0xf0]  ;;  %v2239_v44 = vld [vmem:[#allocation2 + $0xe0] sm:$0xf0] }
  0x96   : > { %v366_v41 = vsel %vm358_vm1, %v342_v35, %v365_v40  ;;  %v297_v45 = vsel %vm287_vm5, %v272_v17, %v296_v42  ;;  %v2237_v46 = vld [vmem:[#allocation2 + $0xc0] sm:$0xf]  ;;  %v2644_v47 = vld [vmem:[#allocation2 + $0xc4] sm:$0xf] }
  0x97   : > { %384 = vst [vmem:[#allocation2 + $0xa0] sm:$0xff] %v366_v41  ;;  %v2238_v48 = vor.u32 %v2646_v43, %v2237_v46  ;;  %v2242_v49 = vor.u32 %v2644_v47, %v2239_v44  ;;  %v2189_v17 = vld [vmem:[#allocation2] sm:$0xf] }
  0x98   : > { %314 = vst [vmem:[#allocation2 + $0x68] sm:$0xff] %v297_v45  ;;  %v2190_v37 = vor.u32 %v2634_v21, %v2189_v17  ;;  %v2960_v43 = vld [vmem:[%s3606_s1] sm:$0xff] }
  0x99   : > { %582 = vmatpush.bf16.msra.mxu3 %v2238_v48  ;;  %596 = vmatpush.bf16.msra.mxu1 %v2242_v49  ;;  %v270_v50 = vpop.permute.xlu1 %269 }
  0x9a   : > { %v2896_v51 = vpop.permute.xlu0 %263  ;;  %v281_v53 = vrot.slane %v270_v50, 4  ;;  %v340_v55 = vpop.permute.xlu2 %339 }
  0x9b   : > { %v278_v54 = vrot.slane %v2896_v51, 4  ;;  %v352_v56 = vrot.slane %v340_v55, 4 }
  0x9c   : > { %v294_v57 = vsel %vm237_vm0, %v281_v53, %v282_v33 }
  0x9d   : > { %v286_v58 = vsel %vm237_vm0, %v277_v52, %v278_v54  ;;  %v295_v60 = vsel %vm287_vm5, %v270_v50, %v294_v57  ;;  %v362_v1 = vsel %vm237_vm0, %v351_v26, %v352_v56  ;;  %v364_v5 = vsel %vm358_vm1, %v340_v55, %v352_v56 }
  0x9e   : > { %v288_v61 = vsel %vm287_vm5, %v262_v14, %v286_v58  ;;  %v2642_v62 = vld [vmem:[#allocation2 + $0x9c] sm:$0xf0]  ;;  %v2223_v0 = vld [vmem:[#allocation2 + $0xa0] sm:$0xf0]  ;;  %313 = vst [vmem:[#allocation2 + $0x60] sm:$0xff] %v295_v60  ;;  %v363_v4 = vsel %vm358_vm1, %v338_v25, %v362_v1  ;;  %v462_v14 = vld [vmem:[%s3607_s2 + $0x8] sm:$0xff] }
  0x9f   : > { %v2222_v2 = vor.u32 %v2642_v62, %v2221_v59  ;;  %v2226_v3 = vor.u32 %v2640_v63, %v2223_v0  ;;  %309 = vst [vmem:[#allocation2 + $0x40] sm:$0xff] %v288_v61  ;;  %486 = vperm.xlu1 %2756, %v462_v14   ;;  %v2229_v60 = vld [vmem:[#allocation2 + $0x88] sm:$0xf]  ;;  %v2641_v61 = vld [vmem:[#allocation2 + $0x8c] sm:$0xf] }
  0xa0   : > { %382 = vst [vmem:[#allocation2 + $0x90] sm:$0xff] %v363_v4  ;;  %v2215_v14 = vld [vmem:[#allocation2 + $0x68] sm:$0xf0] }
  0xa1   : > { %583 = vmatpush.bf16.msra.mxu3 %v2222_v2  ;;  %597 = vmatpush.bf16.msra.mxu1 %v2226_v3  ;;  %v2911_v7 = vpop.permute.xlu1 %416  ;;  %383 = vst.msk [vmem:[#allocation2 + $0x98] sm:$0xff] %vm2858_vm3, %v364_v5  ;;  %v2197_v2 = vld [vmem:[#allocation2 + $0x8] sm:$0xf] }
  0xa2   : > { %v2913_v8 = vpop.permute.xlu0 %408  ;;  %v426_v10 = vrot.slane %v2911_v7, 4  ;;  %v276_v12 = vpop.permute.xlu2 %275  ;;  %v2635_v3 = vld [vmem:[#allocation2 + $0x24] sm:$0xf0] }
  0xa3   : > { %v422_v11 = vrot.slane %v2913_v8, 4  ;;  %v284_v13 = vrot.slane %v276_v12, 4  ;;  %v2198_v17 = vor.u32 %v2635_v3, %v2197_v2 }
  0xa4   : > { %v438_v15 = vsel %vm237_vm0, %v425_v23, %v426_v10 }
  0xa5   : > { %v431_v16 = vsel %vm237_vm0, %v421_v24, %v422_v11  ;;  %v439_v25 = vsel %vm429_vm4, %v2862_v19, %v438_v15  ;;  %v2638_v27 = vld [vmem:[#allocation2 + $0x5c] sm:$0xf0]  ;;  %v2207_v28 = vld [vmem:[#allocation2 + $0x60] sm:$0xf0]  ;;  %v298_v23 = vsel %vm237_vm0, %v283_v39, %v284_v13  ;;  %v300_v32 = vsel %vm287_vm5, %v276_v12, %v284_v13  ;;  %v2639_v13 = vld [vmem:[#allocation2 + $0x64] sm:$0xf0] }
  0xa6   : > { %v432_v26 = vsel %vm429_vm4, %v2864_v20, %v431_v16  ;;  %456 = vst [vmem:[#allocation2 + $0xe8] sm:$0xff] %v439_v25  ;;  %v2205_v30 = vld [vmem:[#allocation2 + $0x40] sm:$0xf]  ;;  %v2636_v24 = vld [vmem:[#allocation2 + $0x44] sm:$0xf]  ;;  %v299_v31 = vsel %vm287_vm5, %v2885_v38, %v298_v23  ;;  %v2194_v39 = vor.u32 %v2632_v22, %v2191_v29 }
  0xa7   : > { %452 = vst [vmem:[#allocation2 + $0xc8] sm:$0xff] %v432_v26  ;;  %v2206_v19 = vor.u32 %v2638_v27, %v2205_v30  ;;  %v2210_v33 = vor.u32 %v2636_v24, %v2207_v28 }
  0xa8   : > { %315 = vst [vmem:[#allocation2 + $0x70] sm:$0xff] %v299_v31 }
  0xa9   : > { %584 = vmatpush.bf16.msra.mxu3 %v2206_v19  ;;  %598 = vmatpush.bf16.msra.mxu1 %v2210_v33  ;;  %v2943_v20 = vpop.permute.xlu1 %265  ;;  %316 = vst.msk [vmem:[#allocation2 + $0x78] sm:$0xff] %vm2858_vm3, %v300_v32 }
  0xaa   : > { %v2945_v35 = vpop.permute.xlu0 %345  ;;  %v279_v40 = vrot.slane %v2943_v20, 4 }
  0xab   : > { %v355_v38 = vrot.slane %v2945_v35, 4 }
  0xac   : > { %v289_v41 = vsel %vm237_vm0, %v278_v54, %v279_v40 }
  0xad   : > { %v367_v42 = vsel %vm237_vm0, %v354_v36, %v355_v38  ;;  %v290_v44 = vsel %vm287_vm5, %v2896_v51, %v289_v41  ;;  %585 = vmatpush.bf16.msra.mxu3 %v2190_v37  ;;  %599 = vmatpush.bf16.msra.mxu1 %v2194_v39  ;;  %v2647_v46 = vld [vmem:[#allocation2 + $0xe4] sm:$0xf0]  ;;  %v2247_v47 = vld [vmem:[#allocation2 + $0xe8] sm:$0xf0]  ;;  %v2656_v41 = vld [vmem:[#allocation2 + $0x94] sm:$0xf] }
  0xae   : > { %v368_v45 = vsel %vm358_vm1, %v2882_v34, %v367_v42  ;;  %310 = vst [vmem:[#allocation2 + $0x48] sm:$0xff] %v290_v44  ;;  %v2245_v48 = vld [vmem:[#allocation2 + $0xc8] sm:$0xf]  ;;  %v2645_v49 = vld [vmem:[#allocation2 + $0xcc] sm:$0xf] }
  0xaf   : > { %385 = vst [vmem:[#allocation2 + $0xa8] sm:$0xff] %v368_v45  ;;  %v2246_v36 = vor.u32 %v2647_v46, %v2245_v48  ;;  %v2250_v50 = vor.u32 %v2645_v49, %v2247_v47  ;;  %v2297_v42 = vld [vmem:[#allocation2 + $0x98] sm:$0xf]  ;;  %v2657_v44 = vld [vmem:[#allocation2 + $0x9c] sm:$0xf] }
  0xb0   : > { %2251 = vmatmul.msk.bf16.vlgmr.msra.gmra.mxu3 %vm574_vm6, %v2960_v43  ;;  %2252 = vmatmul.msk.bf16.vlgmr.msra.gmra.mxu1 %vm574_vm6, %v2960_v43  ;;  %v2655_v45 = vld [vmem:[#allocation2 + $0x74] sm:$0xf0]  ;;  %v2283_v46 = vld [vmem:[#allocation2 + $0x78] sm:$0xf0] }
  0xb1   : > { %610 = vmatpush.bf16.msra.mxu2 %v2246_v36  ;;  %624 = vmatpush.bf16.msrb.mxu3 %v2250_v50  ;;  %v419_v34 = vpop.permute.xlu1 %418 }
  0xb2   : > { %v411_v51 = vpop.permute.xlu0 %410  ;;  %v427_v52 = vrot.slane %v419_v34, 4 }
  0xb3   : > { %v423_v53 = vrot.slane %v411_v51, 4 }
  0xb4   : > { %v440_v54 = vsel %vm237_vm0, %v426_v10, %v427_v52  ;;  %v442_v55 = vsel %vm429_vm4, %v419_v34, %v427_v52  ;;  %v2199_v10 = vld [vmem:[#allocation2 + $0x28] sm:$0xf0] }
  0xb5   : > { %v433_v56 = vsel %vm237_vm0, %v422_v11, %v423_v53  ;;  %v441_v57 = vsel %vm429_vm4, %v2911_v7, %v440_v54  ;;  %458 = vst.msk [vmem:[#allocation2 + $0xf8] sm:$0xff] %vm2858_vm3, %v442_v55  ;;  %v435_v59 = vsel %vm429_vm4, %v411_v51, %v423_v53  ;;  %v2213_v4 = vld [vmem:[#allocation2 + $0x48] sm:$0xf]  ;;  %v2637_v5 = vld [vmem:[#allocation2 + $0x4c] sm:$0xf] }
  0xb6   : > { %v434_v58 = vsel %vm429_vm4, %v2913_v8, %v433_v56  ;;  %457 = vst [vmem:[#allocation2 + $0xf0] sm:$0xff] %v441_v57  ;;  %v2643_v62 = vld [vmem:[#allocation2 + $0xa4] sm:$0xf0]  ;;  %v2231_v63 = vld [vmem:[#allocation2 + $0xa8] sm:$0xf0]  ;;  %v2214_v15 = vor.u32 %v2639_v13, %v2213_v4  ;;  %v2218_v16 = vor.u32 %v2637_v5, %v2215_v14 }
  0xb7   : > { %453 = vst [vmem:[#allocation2 + $0xd0] sm:$0xff] %v434_v58  ;;  %v2230_v0 = vor.u32 %v2643_v62, %v2229_v60  ;;  %v2234_v1 = vor.u32 %v2641_v61, %v2231_v63  ;;  %v2633_v8 = vld [vmem:[#allocation2 + $0xc] sm:$0xf]  ;;  %v2654_v56 = vld [vmem:[#allocation2 + $0x6c] sm:$0xf0] }
  0xb8   : > { %454 = vst.msk [vmem:[#allocation2 + $0xd8] sm:$0xff] %vm2858_vm3, %v435_v59  ;;  %v2202_v26 = vor.u32 %v2633_v8, %v2199_v10  ;;  %v2275_v58 = vld [vmem:[#allocation2 + $0x70] sm:$0xf0]  ;;  %v2257_v59 = vld [vmem:[#allocation2 + $0x10] sm:$0xf] }
  0xb9   : > { %611 = vmatpush.bf16.msra.mxu2 %v2230_v0  ;;  %625 = vmatpush.bf16.msrb.mxu3 %v2234_v1  ;;  %v268_v6 = vpop.permute.xlu1 %267  ;;  %v2650_v60 = vld [vmem:[#allocation2 + $0x2c] sm:$0xf0]  ;;  %v2648_v63 = vld [vmem:[#allocation2 + $0x14] sm:$0xf]  ;;  %v2265_v1 = vld [vmem:[#allocation2 + $0x18] sm:$0xf] }
  0xba   : > { %v348_v7 = vpop.permute.xlu0 %347  ;;  %v280_v11 = vrot.slane %v268_v6, 4  ;;  %v2259_v0 = vld [vmem:[#allocation2 + $0x30] sm:$0xf0]  ;;  %v2651_v4 = vld [vmem:[#allocation2 + $0x34] sm:$0xf0] }
  0xbb   : > { %v356_v12 = vrot.slane %v348_v7, 4  ;;  %v2649_v5 = vld [vmem:[#allocation2 + $0x1c] sm:$0xf]  ;;  %v2262_v8 = vor.u32 %v2648_v63, %v2259_v0  ;;  %v2266_v10 = vor.u32 %v2651_v4, %v2265_v1 }
  0xbc   : > { %v291_v21 = vsel %vm237_vm0, %v279_v40, %v280_v11  ;;  %v293_v22 = vsel %vm287_vm5, %v268_v6, %v280_v11  ;;  %v2663_v27 = vld [vmem:[#allocation2 + $0xf4] sm:$0xf0]  ;;  %v2315_v28 = vld [vmem:[#allocation2 + $0xf8] sm:$0xf0] }
  0xbd   : > { %v369_v25 = vsel %vm237_vm0, %v355_v38, %v356_v12  ;;  %v292_v23 = vsel %vm287_vm5, %v2943_v20, %v291_v21  ;;  %312 = vst.msk [vmem:[#allocation2 + $0x58] sm:$0xff] %vm2858_vm3, %v293_v22  ;;  %v371_v30 = vsel %vm358_vm1, %v348_v7, %v356_v12  ;;  %612 = vmatpush.bf16.msra.mxu2 %v2214_v15  ;;  %v2662_v24 = vld [vmem:[#allocation2 + $0xec] sm:$0xf0]  ;;  %v2307_v31 = vld [vmem:[#allocation2 + $0xf0] sm:$0xf0] }
  0xbe   : > { %v370_v29 = vsel %vm358_vm1, %v2945_v35, %v369_v25  ;;  %626 = vmatpush.bf16.msrb.mxu3 %v2218_v16  ;;  %311 = vst [vmem:[#allocation2 + $0x50] sm:$0xff] %v292_v23  ;;  %v2305_v32 = vld [vmem:[#allocation2 + $0xd0] sm:$0xf]  ;;  %v2660_v19 = vld [vmem:[#allocation2 + $0xd4] sm:$0xf]  ;;  %v2258_v7 = vor.u32 %v2650_v60, %v2257_v59 }
  0xbf   : > { %386 = vst [vmem:[#allocation2 + $0xb0] sm:$0xff] %v370_v29  ;;  %v2306_v33 = vor.u32 %v2662_v24, %v2305_v32  ;;  %v2310_v37 = vor.u32 %v2660_v19, %v2307_v31  ;;  %v2313_v39 = vld [vmem:[#allocation2 + $0xd8] sm:$0xf]  ;;  %v2661_v20 = vld [vmem:[#allocation2 + $0xdc] sm:$0xf] }
  0xc0   : > { %387 = vst.msk [vmem:[#allocation2 + $0xb8] sm:$0xff] %vm2858_vm3, %v371_v30  ;;  %v2314_v35 = vor.u32 %v2663_v27, %v2313_v39  ;;  %v2318_v40 = vor.u32 %v2661_v20, %v2315_v28  ;;  %v2289_v38 = vld [vmem:[#allocation2 + $0x90] sm:$0xf]  ;;  %v2267_v6 = vld [vmem:[#allocation2 + $0x38] sm:$0xf0] }
  0xc1   : > { %613 = vmatpush.bf16.msra.mxu2 %v2198_v17  ;;  %750 = vmatpush.bf16.msra.mxu0 %v2306_v33  ;;  %v2270_v11 = vor.u32 %v2649_v5, %v2267_v6 }
  0xc2   : > { %627 = vmatpush.bf16.msrb.mxu3 %v2202_v26  ;;  %764 = vmatpush.bf16.msrb.mxu1 %v2310_v37 }
  0xc4   : > { %2253 = vmatmul.msk.bf16.vlgmr.msra.gmra.mxu2 %vm574_vm6, %v2960_v43  ;;  %v2281_v49 = vld [vmem:[#allocation2 + $0x58] sm:$0xf]  ;;  %v2653_v52 = vld [vmem:[#allocation2 + $0x5c] sm:$0xf] }
  0xc5   : > { %778 = vmatpush.bf16.msrb.mxu2 %v2314_v35  ;;  %2254 = vmatmul.msk.bf16.vlgmr.msrb.gmra.mxu3 %vm574_vm6, %v2960_v43  ;;  %v2273_v55 = vld [vmem:[#allocation2 + $0x50] sm:$0xf]  ;;  %v2652_v57 = vld [vmem:[#allocation2 + $0x54] sm:$0xf]  ;;  %v2282_v61 = vor.u32 %v2655_v45, %v2281_v49  ;;  %v2286_v62 = vor.u32 %v2653_v52, %v2283_v46 }
  0xc6   : > { %792 = vmatpush.bf16.msra.mxu3 %v2318_v40  ;;  %v2658_v47 = vld [vmem:[#allocation2 + $0xac] sm:$0xf0]  ;;  %v2291_v48 = vld [vmem:[#allocation2 + $0xb0] sm:$0xf0]  ;;  %v2274_v2 = vor.u32 %v2654_v56, %v2273_v55  ;;  %v2278_v3 = vor.u32 %v2652_v57, %v2275_v58 }
  0xc7   : > { %v2659_v36 = vld [vmem:[#allocation2 + $0xb4] sm:$0xf0]  ;;  %v2299_v50 = vld [vmem:[#allocation2 + $0xb8] sm:$0xf0]  ;;  %v2290_v34 = vor.u32 %v2658_v47, %v2289_v38  ;;  %v2294_v51 = vor.u32 %v2656_v41, %v2291_v48 }
  0xc8   : > { %v2298_v53 = vor.u32 %v2659_v36, %v2297_v42  ;;  %v2302_v54 = vor.u32 %v2657_v44, %v2299_v50 }
  0xc9   : > { %751 = vmatpush.bf16.msra.mxu0 %v2290_v34  ;;  %765 = vmatpush.bf16.msrb.mxu1 %v2294_v51 }
  0xca   : > { %779 = vmatpush.bf16.msrb.mxu2 %v2298_v53  ;;  %793 = vmatpush.bf16.msra.mxu3 %v2302_v54 }
  0xcd   : > { %752 = vmatpush.bf16.msra.mxu0 %v2274_v2  ;;  %766 = vmatpush.bf16.msrb.mxu1 %v2278_v3 }
  0xce   : > { %780 = vmatpush.bf16.msrb.mxu2 %v2282_v61  ;;  %794 = vmatpush.bf16.msra.mxu3 %v2286_v62 }
  0xd1   : > { %753 = vmatpush.bf16.msra.mxu0 %v2258_v7  ;;  %767 = vmatpush.bf16.msrb.mxu1 %v2262_v8 }
  0xd2   : > { %781 = vmatpush.bf16.msrb.mxu2 %v2266_v10  ;;  %795 = vmatpush.bf16.msra.mxu3 %v2270_v11 }
  0xd4   : > { %2319 = vmatmul.msk.bf16.vlgmr.msra.gmra.mxu0 %vm574_vm6, %v2960_v43  ;;  %2320 = vmatmul.msk.bf16.vlgmr.msrb.gmra.mxu1 %vm574_vm6, %v2960_v43 }
  0xd5   : > { %2321 = vmatmul.msk.bf16.vlgmr.msrb.gmra.mxu2 %vm574_vm6, %v2960_v43  ;;  %2322 = vmatmul.msk.bf16.vlgmr.msra.gmra.mxu3 %vm574_vm6, %v2960_v43 }
  0xe9   : > { %v482_v13 = vpop.permute.xlu0 %481 }
 0x111   : > { %v3008_v22 = vpop.permute.xlu1 %486 }
 0x12d   : > { %v601_v12 = vpop.f32.mrf.mxu1 }
 0x12e   : > { %v602_v14 = vadd.f32 %v601_v12, %v482_v13 }
 0x130   : > { %v635_v17 = vmax.f32 %v602_v14, 0.0 }
 0x133   : > { %v587_v15 = vpop.f32.mrf.mxu3 }
 0x134   : > { %v588_v16 = vadd.f32 %v587_v15, %v482_v13 }
 0x135   : > { %v603_v25 = vpop.f32.mrf.mxu1 }
 0x136   : > { %v634_v21 = vmax.f32 %v588_v16, 0.0  ;;  %v604_v27 = vadd.f32 %v603_v25, %v3008_v22 }
 0x138   : > { %v642_v26 = vpack.c.bf16 %v635_v17, %v634_v21  ;;  %v639_v23 = vmax.f32 %v604_v27, 0.0 }
 0x13a   : > { %1275 = vrot.lane.b32.xlu2 %v642_v26, %s2770_s8  ;;  %1204 = vrot.lane.b32.xlu1 %v642_v26, %s2771_s9  ;;  %826 = vst [vmem:[#allocation2] sm:$0xff] %v642_v26 }
 0x13b   : > { %v589_v43 = vpop.f32.mrf.mxu3  ;;  %1063 = vrot.lane.b32.xlu0 %v642_v26, %s2766_s24 }
 0x13c   : > { %v590_v28 = vadd.f32 %v589_v43, %v3008_v22 }
 0x13e   : > { %v638_v29 = vmax.f32 %v590_v28, 0.0 }
 0x140   : > { %v644_v30 = vpack.c.bf16 %v639_v23, %v638_v29 }
 0x142   : > { %1133 = vrot.lane.b32.xlu2 %v642_v26, %s2772_s10  ;;  %993 = vrot.lane.b32.xlu1 %v642_v26, %s2767_s25  ;;  %832 = vst [vmem:[#allocation2 + $0x20] sm:$0xff] %v644_v30 }
 0x143   : > { %1212 = vrot.lane.b32.xlu0 %v644_v30, %s2771_s9 }
 0x147   : > { %v615_v24 = vpop.f32.mrf.mxu2 }
 0x148   : > { %v629_v31 = vpop.f32.mrf.mxu3  ;;  %v616_v32 = vadd.f32 %v615_v24, %v482_v13 }
 0x149   : > { %v630_v19 = vadd.f32 %v629_v31, %v482_v13 }
 0x14a   : > { %v636_v33 = vmax.f32 %v616_v32, 0.0  ;;  %1346 = vrot.lane.b32.xlu1 %v642_v26, %s2773_s11  ;;  %922 = vrot.lane.b32.xlu2 %v642_v26, %s2774_s12 }
 0x14b   : > { %v637_v37 = vmax.f32 %v630_v19, 0.0  ;;  %1001 = vrot.lane.b32.xlu0 %v644_v30, %s2767_s25 }
 0x14d   : > { %v3021_v39 = vpack.c.bf16 %v637_v37, %v636_v33 }
 0x14f   : > { %827 = vst [vmem:[#allocation2 + $0x8] sm:$0xff] %v3021_v39  ;;  %v617_v20 = vpop.f32.mrf.mxu2 }
 0x150   : > { %v631_v35 = vpop.f32.mrf.mxu3  ;;  %v618_v40 = vadd.f32 %v617_v20, %v3008_v22 }
 0x151   : > { %v632_v38 = vadd.f32 %v631_v35, %v3008_v22  ;;  %v755_v41 = vpop.f32.mrf.mxu0  ;;  %v769_v42 = vpop.f32.mrf.mxu1 }
 0x152   : > { %v640_v44 = vmax.f32 %v618_v40, 0.0  ;;  %v756_v46 = vadd.f32 %v755_v41, %v482_v13  ;;  %v770_v47 = vadd.f32 %v769_v42, %v482_v13  ;;  %1141 = vrot.lane.b32.xlu1 %v644_v30, %s2772_s10  ;;  %852 = vrot.lane.b32.xlu2 %v642_v26, %s2768_s26  ;;  %v1403_v41 = vld [vmem:[%s3609_s4] sm:$0xff] }
 0x153   : > { %v641_v45 = vmax.f32 %v632_v38, 0.0  ;;  %1354 = vrot.lane.b32.xlu0 %v644_v30, %s2773_s11 }
 0x154   : > { %v802_v49 = vmax.f32 %v756_v46, 0.0  ;;  %v803_v36 = vmax.f32 %v770_v47, 0.0 }
 0x155   : > { %v3029_v48 = vpack.c.bf16 %v641_v45, %v640_v44 }
 0x156   : > { %v3031_v50 = vpack.c.bf16 %v803_v36, %v802_v49 }
 0x157   : > { %833 = vst [vmem:[#allocation2 + $0x28] sm:$0xff] %v3029_v48 }
 0x158   : > { %v783_v34 = vpop.f32.mrf.mxu2  ;;  %v797_v51 = vpop.f32.mrf.mxu3  ;;  %828 = vst [vmem:[#allocation2 + $0x10] sm:$0xff] %v3031_v50 }
 0x159   : > { %v784_v52 = vadd.f32 %v783_v34, %v482_v13  ;;  %v798_v53 = vadd.f32 %v797_v51, %v482_v13  ;;  %v757_v54 = vpop.f32.mrf.mxu0  ;;  %v771_v55 = vpop.f32.mrf.mxu1 }
 0x15a   : > { %v758_v56 = vadd.f32 %v757_v54, %v3008_v22  ;;  %v772_v57 = vadd.f32 %v771_v55, %v3008_v22  ;;  %930 = vrot.lane.b32.xlu1 %v644_v30, %s2774_s12  ;;  %1283 = vrot.lane.b32.xlu2 %v644_v30, %s2770_s8 }
 0x15b   : > { %v804_v58 = vmax.f32 %v784_v52, 0.0  ;;  %v805_v59 = vmax.f32 %v798_v53, 0.0  ;;  %1279 = vrot.lane.b32.xlu0 %v3031_v50, %s2770_s8 }
 0x15c   : > { %v806_v60 = vmax.f32 %v758_v56, 0.0  ;;  %v807_v61 = vmax.f32 %v772_v57, 0.0 }
 0x15d   : > { %v811_v62 = vpack.c.bf16 %v805_v59, %v804_v58 }
 0x15e   : > { %v3041_v63 = vpack.c.bf16 %v807_v61, %v806_v60 }
 0x15f   : > { %815 = vst.msk [vmem:[#allocation3 + $0x18] sm:$0xff] %vm2858_vm3, %v811_v62 }
 0x160   : > { %v785_v0 = vpop.f32.mrf.mxu2  ;;  %v799_v1 = vpop.f32.mrf.mxu3  ;;  %834 = vst [vmem:[#allocation2 + $0x30] sm:$0xff] %v3041_v63 }
 0x161   : > { %v786_v2 = vadd.f32 %v785_v0, %v3008_v22  ;;  %v800_v3 = vadd.f32 %v799_v1, %v3008_v22 }
 0x162   : > { %860 = vrot.lane.b32.xlu1 %v644_v30, %s2768_s26  ;;  %1071 = vrot.lane.b32.xlu2 %v644_v30, %s2766_s24 }
 0x163   : > { %v808_v4 = vmax.f32 %v786_v2, 0.0  ;;  %v809_v5 = vmax.f32 %v800_v3, 0.0  ;;  %1208 = vrot.lane.b32.xlu0 %v3031_v50, %s2771_s9 }
 0x165   : > { %v813_v6 = vpack.c.bf16 %v809_v5, %v808_v4 }
 0x166   : > { %v3057_v8 = vld [vmem:[#allocation3 + $0x18] sm:$0xff] }
 0x167   : > { %817 = vst.msk [vmem:[#allocation3 + $0x38] sm:$0xff] %vm2858_vm3, %v813_v6 }
 0x168   : > { %831 = vst.msk [vmem:[#allocation2 + $0x18] sm:$0xff] %vm3053_vm8, %v3057_v8 }
 0x16a   : > { %926 = vrot.lane.b32.xlu1 %v3031_v50, %s2774_s12  ;;  %1137 = vrot.lane.b32.xlu2 %v3031_v50, %s2772_s10 }
 0x16b   : > { %997 = vrot.lane.b32.xlu0 %v3031_v50, %s2767_s25 }
 0x16e   : > { %v3070_v10 = vld [vmem:[#allocation3 + $0x38] sm:$0xff] }
 0x16f   : > { %835 = vst.msk [vmem:[#allocation2 + $0x38] sm:$0xff] %vm3053_vm8, %v3070_v10 }
 0x172   : > { %1277 = vrot.lane.b32.xlu1 %v3021_v39, %s2770_s8  ;;  %1067 = vrot.lane.b32.xlu2 %v3031_v50, %s2766_s24 }
 0x173   : > { %1135 = vrot.lane.b32.xlu0 %v3021_v39, %s2772_s10 }
 0x17a   : > { %1065 = vrot.lane.b32.xlu1 %v3021_v39, %s2766_s24  ;;  %856 = vrot.lane.b32.xlu2 %v3031_v50, %s2768_s26 }
 0x17b   : > { %924 = vrot.lane.b32.xlu0 %v3021_v39, %s2774_s12 }
 0x182   : > { %1287 = vrot.lane.b32.xlu1 %v3041_v63, %s2770_s8  ;;  %1206 = vrot.lane.b32.xlu2 %v3021_v39, %s2771_s9 }
 0x183   : > { %854 = vrot.lane.b32.xlu0 %v3021_v39, %s2768_s26 }
 0x18a   : > { %1216 = vrot.lane.b32.xlu1 %v3041_v63, %s2771_s9  ;;  %995 = vrot.lane.b32.xlu2 %v3021_v39, %s2767_s25 }
 0x18b   : > { %1145 = vrot.lane.b32.xlu0 %v3041_v63, %s2772_s10 }
 0x192   : > { %1005 = vrot.lane.b32.xlu1 %v3041_v63, %s2767_s25  ;;  %1348 = vrot.lane.b32.xlu2 %v3021_v39, %s2773_s11 }
 0x193   : > { %1075 = vrot.lane.b32.xlu0 %v3041_v63, %s2766_s24 }
 0x194   : > { %v3105_v18 = vpop.permute.xlu2 %1275 }
 0x195   : > { %v1291_v45 = vrot.slane %v3105_v18, 4 }
 0x19a   : > { %1214 = vrot.lane.b32.xlu1 %v3029_v48, %s2771_s9  ;;  %934 = vrot.lane.b32.xlu2 %v3041_v63, %s2774_s12 }
 0x19b   : > { %1285 = vrot.lane.b32.xlu0 %v3029_v48, %s2770_s8 }
 0x19c   : > { %v3113_v11 = vpop.permute.xlu2 %1133 }
 0x19d   : > { %v1149_v46 = vrot.slane %v3113_v11, 4 }
 0x1a2   : > { %1003 = vrot.lane.b32.xlu1 %v3029_v48, %s2767_s25  ;;  %1143 = vrot.lane.b32.xlu2 %v3029_v48, %s2772_s10 }
 0x1a3   : > { %1073 = vrot.lane.b32.xlu0 %v3029_v48, %s2766_s24 }
 0x1a4   : > { %v3121_v12 = vpop.permute.xlu2 %922 }
 0x1aa   : > { %1356 = vrot.lane.b32.xlu1 %v3029_v48, %s2773_s11  ;;  %932 = vrot.lane.b32.xlu2 %v3029_v48, %s2774_s12 }
 0x1ab   : > { %864 = vrot.lane.b32.xlu0 %v3041_v63, %s2768_s26 }
 0x1ac   : > { %v1205_v13 = vpop.permute.xlu1 %1204  ;;  %v3129_v14 = vpop.permute.xlu2 %852 }
 0x1ad   : > { %v3131_v15 = vpop.permute.xlu0 %1063  ;;  %v1220_v37 = vrot.slane %v1205_v13, 4 }
 0x1ae   : > { %v1079_v3 = vrot.slane %v3131_v15, 4 }
 0x1b2   : > { %1281 = vrot.lane.b32.xlu1 %v3057_v8, %s2770_s8  ;;  %862 = vrot.lane.b32.xlu2 %v3029_v48, %s2768_s26 }
 0x1b3   : > { %1139 = vrot.lane.b32.xlu0 %v3057_v8, %s2772_s10 }
 0x1b4   : > { %v3139_v16 = vpop.permute.xlu1 %993  ;;  %v3141_v17 = vpop.permute.xlu2 %1283 }
 0x1b5   : > { %v3143_v21 = vpop.permute.xlu0 %1212  ;;  %v1009_v47 = vrot.slane %v3139_v16, 4 }
 0x1ba   : > { %1069 = vrot.lane.b32.xlu1 %v3057_v8, %s2766_s24  ;;  %1210 = vrot.lane.b32.xlu2 %v3057_v8, %s2771_s9 }
 0x1bb   : > { %1218 = vrot.lane.b32.xlu0 %v3070_v10, %s2771_s9 }
 0x1bc   : > { %v3151_v22 = vpop.permute.xlu1 %1346  ;;  %v3153_v25 = vpop.permute.xlu2 %1071 }
 0x1bd   : > { %v3155_v26 = vpop.permute.xlu0 %1001  ;;  %v1362_v6 = vrot.slane %v3151_v22, 4 }
 0x1c2   : > { %1358 = vrot.lane.b32.xlu1 %v3041_v63, %s2773_s11  ;;  %1289 = vrot.lane.b32.xlu2 %v3070_v10, %s2770_s8 }
 0x1c3   : > { %1350 = vrot.lane.b32.xlu0 %v3031_v50, %s2773_s11 }
 0x1c4   : > { %v3163_v27 = vpop.permute.xlu1 %1141  ;;  %v3165_v43 = vpop.permute.xlu2 %1137 }
 0x1c5   : > { %v3167_v28 = vpop.permute.xlu0 %1354  ;;  %v1151_v52 = vrot.slane %v3165_v43, 4 }
 0x1ca   : > { %1147 = vrot.lane.b32.xlu1 %v3070_v10, %s2772_s10  ;;  %999 = vrot.lane.b32.xlu2 %v3057_v8, %s2767_s25 }
 0x1cb   : > { %1007 = vrot.lane.b32.xlu0 %v3070_v10, %s2767_s25 }
 0x1cc   : > { %v3175_v23 = vpop.permute.xlu1 %930  ;;  %v3177_v29 = vpop.permute.xlu2 %1067 }
 0x1cd   : > { %v3179_v30 = vpop.permute.xlu0 %1279 }
 0x1ce   : > { %v1293_v36 = vrot.slane %v3179_v30, 4 }
 0x1d2   : > { %928 = vrot.lane.b32.xlu1 %v3057_v8, %s2774_s12  ;;  %1077 = vrot.lane.b32.xlu2 %v3070_v10, %s2766_s24 }
 0x1d3   : > { %858 = vrot.lane.b32.xlu0 %v3057_v8, %s2768_s26 }
 0x1d4   : > { %v3187_v24 = vpop.permute.xlu1 %860  ;;  %v3189_v31 = vpop.permute.xlu2 %856 }
 0x1d5   : > { %v3191_v32 = vpop.permute.xlu0 %1208 }
 0x1d6   : > { %v1222_v39 = vrot.slane %v3191_v32, 4 }
 0x1da   : > { %866 = vrot.lane.b32.xlu1 %v3070_v10, %s2768_s26  ;;  %936 = vrot.lane.b32.xlu2 %v3070_v10, %s2774_s12 }
 0x1db   : > { %1360 = vrot.lane.b32.xlu0 %v3070_v10, %s2773_s11 }
 0x1dc   : > { %v3199_v19 = vpop.permute.xlu1 %926  ;;  %v1207_v33 = vpop.permute.xlu2 %1206 }
 0x1dd   : > { %v3202_v20 = vpop.permute.xlu0 %997  ;;  %v1221_v35 = vrot.slane %v1207_v33, 4 }
 0x1de   : > { %v1011_v53 = vrot.slane %v3202_v20, 4 }
 0x1df   : > { %v1228_v40 = vsel %vm237_vm0, %v1220_v37, %v1221_v35  ;;  %v1231_v38 = vsel %vm237_vm0, %v1221_v35, %v1222_v39 }
 0x1e0   : > { %v1230_v42 = vsel %vm574_vm6, %v1205_v13, %v1228_v40  ;;  %v1232_v44 = vsel %vm574_vm6, %v1207_v33, %v1231_v38  ;;  %v938_v13 = vrot.slane %v3121_v12, 4 }
 0x1e1   : > { %1251 = vst [vmem:[#allocation2 + $0x180] sm:$0xff] %v1230_v42 }
 0x1e2   : > { %1252 = vst [vmem:[#allocation2 + $0x188] sm:$0xff] %v1232_v44  ;;  %1443 = vperm.xlu1 %2756, %v1403_v41   ;;  %1352 = vrot.lane.b32.xlu2 %v3057_v8, %s2773_s11  ;;  %v1081_v8 = vrot.slane %v3177_v29, 4 }
 0x1e4   : > { %v1278_v48 = vpop.permute.xlu1 %1277  ;;  %v996_v49 = vpop.permute.xlu2 %995 }
 0x1e5   : > { %v1136_v50 = vpop.permute.xlu0 %1135  ;;  %v1292_v34 = vrot.slane %v1278_v48, 4  ;;  %v1010_v51 = vrot.slane %v996_v49, 4 }
 0x1e6   : > { %v1150_v54 = vrot.slane %v1136_v50, 4 }
 0x1e7   : > { %v1299_v55 = vsel %vm237_vm0, %v1291_v45, %v1292_v34  ;;  %v1302_v56 = vsel %vm237_vm0, %v1292_v34, %v1293_v36  ;;  %v1017_v57 = vsel %vm237_vm0, %v1009_v47, %v1010_v51  ;;  %v1019_v61 = vsel %vm237_vm0, %v1010_v51, %v1011_v53 }
 0x1e8   : > { %v1157_v58 = vsel %vm237_vm0, %v1149_v46, %v1150_v54  ;;  %v1160_v59 = vsel %vm237_vm0, %v1150_v54, %v1151_v52  ;;  %v1301_v60 = vsel %vm1300_vm9, %v3105_v18, %v1299_v55  ;;  %v1303_v0 = vsel %vm1300_vm9, %v1278_v48, %v1302_v56 }
 0x1e9   : > { %v1159_v62 = vsel %vm1158_vm10, %v3113_v11, %v1157_v58  ;;  %v1161_v63 = vsel %vm1158_vm10, %v1136_v50, %v1160_v59  ;;  %1322 = vst [vmem:[#allocation2 + $0x1c0] sm:$0xff] %v1301_v60  ;;  %v1018_v1 = vsel %vm358_vm1, %v3139_v16, %v1017_v57  ;;  %v1020_v2 = vsel %vm358_vm1, %v996_v49, %v1019_v61 }
 0x1ea   : > { %1180 = vst [vmem:[#allocation2 + $0x140] sm:$0xff] %v1159_v62  ;;  %v940_v16 = vrot.slane %v3199_v19, 4  ;;  %v868_v50 = vrot.slane %v3129_v14, 4  ;;  %v1153_v58 = vrot.slane %v3163_v27, 4 }
 0x1eb   : > { %1181 = vst [vmem:[#allocation2 + $0x148] sm:$0xff] %v1161_v63 }
 0x1ec   : > { %1323 = vst [vmem:[#allocation2 + $0x1c8] sm:$0xff] %v1303_v0  ;;  %v1066_v4 = vpop.permute.xlu1 %1065  ;;  %v3243_v5 = vpop.permute.xlu2 %1348 }
 0x1ed   : > { %1039 = vst [vmem:[#allocation2 + $0xc0] sm:$0xff] %v1018_v1  ;;  %v925_v10 = vpop.permute.xlu0 %924  ;;  %v1080_v18 = vrot.slane %v1066_v4, 4  ;;  %v1363_v11 = vrot.slane %v3243_v5, 4 }
 0x1ee   : > { %1040 = vst [vmem:[#allocation2 + $0xc8] sm:$0xff] %v1020_v2  ;;  %v939_v33 = vrot.slane %v925_v10, 4 }
 0x1ef   : > { %v1087_v37 = vsel %vm237_vm0, %v1079_v3, %v1080_v18  ;;  %v1089_v35 = vsel %vm237_vm0, %v1080_v18, %v1081_v8  ;;  %v1370_v40 = vsel %vm237_vm0, %v1362_v6, %v1363_v11  ;;  %v942_v3 = vrot.slane %v3175_v23, 4 }
 0x1f0   : > { %v946_v38 = vsel %vm237_vm0, %v938_v13, %v939_v33  ;;  %v949_v41 = vsel %vm237_vm0, %v939_v33, %v940_v16  ;;  %v1088_v42 = vsel %vm429_vm4, %v3131_v15, %v1087_v37  ;;  %v1090_v46 = vsel %vm429_vm4, %v1066_v4, %v1089_v35 }
 0x1f1   : > { %v948_v44 = vsel %vm947_vm11, %v3121_v12, %v946_v38  ;;  %v950_v45 = vsel %vm947_vm11, %v925_v10, %v949_v41  ;;  %1109 = vst [vmem:[#allocation2 + $0x100] sm:$0xff] %v1088_v42  ;;  %v1372_v47 = vsel %vm1371_vm12, %v3151_v22, %v1370_v40  ;;  %v870_v12 = vrot.slane %v3189_v31, 4 }
 0x1f2   : > { %969 = vst [vmem:[#allocation2 + $0x80] sm:$0xff] %v948_v44  ;;  %v1224_v37 = vrot.slane %v3143_v21, 4  ;;  %v872_v38 = vrot.slane %v3187_v24, 4 }
 0x1f3   : > { %970 = vst [vmem:[#allocation2 + $0x88] sm:$0xff] %v950_v45 }
 0x1f4   : > { %1110 = vst [vmem:[#allocation2 + $0x108] sm:$0xff] %v1090_v46  ;;  %v3269_v48 = vpop.permute.xlu1 %1287  ;;  %v3271_v49 = vpop.permute.xlu2 %934  ;;  %v1295_v46 = vrot.slane %v3141_v17, 4 }
 0x1f5   : > { %1393 = vst [vmem:[#allocation2 + $0x200] sm:$0xff] %v1372_v47  ;;  %v855_v15 = vpop.permute.xlu0 %854  ;;  %v944_v4 = vrot.slane %v3271_v49, 4 }
 0x1f6   : > { %v869_v34 = vrot.slane %v855_v15, 4 }
 0x1f8   : > { %v876_v51 = vsel %vm237_vm0, %v868_v50, %v869_v34  ;;  %v878_v54 = vsel %vm237_vm0, %v869_v34, %v870_v12 }
 0x1f9   : > { %v877_v22 = vsel %vm287_vm5, %v3129_v14, %v876_v51  ;;  %v879_v55 = vsel %vm287_vm5, %v855_v15, %v878_v54 }
 0x1fa   : > { %898 = vst [vmem:[#allocation2 + $0x40] sm:$0xff] %v877_v22 }
 0x1fb   : > { %899 = vst [vmem:[#allocation2 + $0x48] sm:$0xff] %v879_v55 }
 0x1fc   : > { %v3282_v56 = vpop.permute.xlu1 %1216  ;;  %v1144_v57 = vpop.permute.xlu2 %1143 }
 0x1fd   : > { %v3285_v59 = vpop.permute.xlu0 %1145  ;;  %v1154_v60 = vrot.slane %v1144_v57, 4  ;;  %v1226_v41 = vrot.slane %v3282_v56, 4 }
 0x1fe   : > { %v1155_v61 = vrot.slane %v3285_v59, 4 }
 0x1ff   : > { %v1165_v62 = vsel %vm237_vm0, %v1153_v58, %v1154_v60 }
 0x200   : > { %v1166_v63 = vsel %vm1158_vm10, %v3163_v27, %v1165_v62  ;;  %v1167_v14 = vsel %vm237_vm0, %v1154_v60, %v1155_v61 }
 0x201   : > { %v1168_v0 = vsel %vm1158_vm10, %v1144_v57, %v1167_v14  ;;  %1184 = vst [vmem:[#allocation2 + $0x160] sm:$0xff] %v1166_v63  ;;  %v1013_v14 = vrot.slane %v3155_v26, 4 }
 0x202   : > { %1185 = vst [vmem:[#allocation2 + $0x168] sm:$0xff] %v1168_v0 }
 0x204   : > { %v3295_v1 = vpop.permute.xlu1 %1005  ;;  %v933_v2 = vpop.permute.xlu2 %932 }
 0x205   : > { %v3299_v6 = vpop.permute.xlu0 %1075  ;;  %v943_v10 = vrot.slane %v933_v2, 4 }
 0x207   : > { %v954_v27 = vsel %vm237_vm0, %v942_v3, %v943_v10  ;;  %v956_v18 = vsel %vm237_vm0, %v943_v10, %v944_v4  ;;  %v1083_v3 = vrot.slane %v3153_v25, 4  ;;  %v1085_v10 = vrot.slane %v3299_v6, 4 }
 0x208   : > { %v955_v13 = vsel %vm947_vm11, %v3175_v23, %v954_v27  ;;  %v957_v33 = vsel %vm947_vm11, %v933_v2, %v956_v18  ;;  %v1297_v23 = vrot.slane %v3269_v48, 4 }
 0x209   : > { %973 = vst [vmem:[#allocation2 + $0xa0] sm:$0xff] %v955_v13 }
 0x20a   : > { %974 = vst [vmem:[#allocation2 + $0xa8] sm:$0xff] %v957_v33 }
 0x20c   : > { %v1215_v35 = vpop.permute.xlu1 %1214  ;;  %v3309_v40 = vpop.permute.xlu2 %862 }
 0x20d   : > { %v1286_v42 = vpop.permute.xlu0 %1285  ;;  %v1225_v44 = vrot.slane %v1215_v35, 4  ;;  %v873_v45 = vrot.slane %v3309_v40, 4 }
 0x20e   : > { %v1296_v47 = vrot.slane %v1286_v42, 4 }
 0x20f   : > { %v1236_v15 = vsel %vm237_vm0, %v1224_v37, %v1225_v44  ;;  %v1238_v50 = vsel %vm237_vm0, %v1225_v44, %v1226_v41  ;;  %v883_v34 = vsel %vm237_vm0, %v872_v38, %v873_v45  ;;  %v2694_v44 = vld [vmem:[#allocation2 + $0x1c4] sm:$0xf] }
 0x210   : > { %v1307_v51 = vsel %vm237_vm0, %v1295_v46, %v1296_v47  ;;  %v1309_v54 = vsel %vm237_vm0, %v1296_v47, %v1297_v23  ;;  %v1237_v22 = vsel %vm574_vm6, %v3143_v21, %v1236_v15  ;;  %v1239_v58 = vsel %vm574_vm6, %v1215_v35, %v1238_v50 }
 0x211   : > { %v1308_v55 = vsel %vm1300_vm9, %v3141_v17, %v1307_v51  ;;  %v1310_v57 = vsel %vm1300_vm9, %v1286_v42, %v1309_v54  ;;  %1255 = vst [vmem:[#allocation2 + $0x1a0] sm:$0xff] %v1237_v22  ;;  %v884_v60 = vsel %vm287_vm5, %v3187_v24, %v883_v34  ;;  %v1015_v21 = vrot.slane %v3295_v1, 4  ;;  %v2445_v42 = vld [vmem:[#allocation2 + $0x1c0] sm:$0xf] }
 0x212   : > { %1326 = vst [vmem:[#allocation2 + $0x1e0] sm:$0xff] %v1308_v55 }
 0x213   : > { %1327 = vst [vmem:[#allocation2 + $0x1e8] sm:$0xff] %v1310_v57  ;;  %v2429_v57 = vld [vmem:[#allocation2 + $0x180] sm:$0xf] }
 0x214   : > { %1256 = vst [vmem:[#allocation2 + $0x1a8] sm:$0xff] %v1239_v58  ;;  %v1004_v62 = vpop.permute.xlu1 %1003  ;;  %v1211_v63 = vpop.permute.xlu2 %1210  ;;  %v1366_v58 = vrot.slane %v3167_v28, 4 }
 0x215   : > { %902 = vst [vmem:[#allocation2 + $0x60] sm:$0xff] %v884_v60  ;;  %v1074_v0 = vpop.permute.xlu0 %1073  ;;  %v1014_v17 = vrot.slane %v1004_v62, 4  ;;  %v1223_v2 = vrot.slane %v1211_v63, 4 }
 0x216   : > { %v1084_v27 = vrot.slane %v1074_v0, 4 }
 0x217   : > { %v1024_v18 = vsel %vm237_vm0, %v1013_v14, %v1014_v17  ;;  %v1026_v24 = vsel %vm237_vm0, %v1014_v17, %v1015_v21  ;;  %v1233_v13 = vsel %vm237_vm0, %v1222_v39, %v1223_v2  ;;  %v1235_v33 = vsel %vm574_vm6, %v1211_v63, %v1223_v2  ;;  %v2690_v63 = vld [vmem:[#allocation2 + $0x184] sm:$0xf] }
 0x218   : > { %v1094_v37 = vsel %vm237_vm0, %v1083_v3, %v1084_v27  ;;  %v1096_v35 = vsel %vm237_vm0, %v1084_v27, %v1085_v10  ;;  %v1025_v38 = vsel %vm358_vm1, %v3155_v26, %v1024_v18  ;;  %1254 = vst.msk [vmem:[#allocation2 + $0x198] sm:$0xff] %vm3053_vm8, %v1235_v33  ;;  %v1027_v47 = vsel %vm358_vm1, %v1004_v62, %v1026_v24  ;;  %v2692_v54 = vld [vmem:[#allocation2 + $0x19c] sm:$0xf0]  ;;  %v2431_v22 = vld [vmem:[#allocation2 + $0x1a0] sm:$0xf0] }
 0x219   : > { %v1095_v46 = vsel %vm429_vm4, %v3153_v25, %v1094_v37  ;;  %v1097_v39 = vsel %vm429_vm4, %v1074_v0, %v1096_v35  ;;  %1043 = vst [vmem:[#allocation2 + $0xe0] sm:$0xff] %v1025_v38  ;;  %v2696_v15 = vld [vmem:[#allocation2 + $0x1dc] sm:$0xf0]  ;;  %v2447_v50 = vld [vmem:[#allocation2 + $0x1e0] sm:$0xf0]  ;;  %v1234_v34 = vsel %vm574_vm6, %v3191_v32, %v1233_v13  ;;  %v2430_v0 = vor.u32 %v2692_v54, %v2429_v57 }
 0x21a   : > { %1113 = vst [vmem:[#allocation2 + $0x120] sm:$0xff] %v1095_v46  ;;  %v2446_v26 = vor.u32 %v2696_v15, %v2445_v42  ;;  %v2450_v51 = vor.u32 %v2694_v44, %v2447_v50  ;;  %v2434_v17 = vor.u32 %v2690_v63, %v2431_v22  ;;  %v2688_v18 = vld [vmem:[#allocation2 + $0x15c] sm:$0xf0]  ;;  %v2415_v24 = vld [vmem:[#allocation2 + $0x160] sm:$0xf0] }
 0x21b   : > { %1114 = vst [vmem:[#allocation2 + $0x128] sm:$0xff] %v1097_v39  ;;  %v2413_v35 = vld [vmem:[#allocation2 + $0x140] sm:$0xf]  ;;  %v2686_v38 = vld [vmem:[#allocation2 + $0x144] sm:$0xf] }
 0x21c   : > { %1044 = vst [vmem:[#allocation2 + $0xe8] sm:$0xff] %v1027_v47  ;;  %1644 = vmatpush.bf16.msrb.mxu0 %v2446_v26  ;;  %1672 = vmatpush.bf16.msra.mxu2 %v2450_v51  ;;  %v3361_v25 = vpop.permute.xlu1 %1356  ;;  %v1290_v55 = vpop.permute.xlu2 %1289  ;;  %v2414_v42 = vor.u32 %v2688_v18, %v2413_v35  ;;  %v2397_v50 = vld [vmem:[#allocation2 + $0x100] sm:$0xf]  ;;  %v2698_v54 = vld [vmem:[#allocation2 + $0x204] sm:$0xf] }
 0x21d   : > { %1253 = vst [vmem:[#allocation2 + $0x190] sm:$0xff] %v1234_v34  ;;  %v3364_v60 = vpop.permute.xlu0 %864  ;;  %v1367_v62 = vrot.slane %v3361_v25, 4  ;;  %v1298_v32 = vrot.slane %v1290_v55, 4  ;;  %v2682_v34 = vld [vmem:[#allocation2 + $0x104] sm:$0xf] }
 0x21e   : > { %v874_v14 = vrot.slane %v3364_v60, 4  ;;  %v2461_v51 = vld [vmem:[#allocation2 + $0x200] sm:$0xf]  ;;  %v2697_v22 = vld [vmem:[#allocation2 + $0x1e4] sm:$0xf0] }
 0x21f   : > { %v1378_v2 = vsel %vm237_vm0, %v1366_v58, %v1367_v62  ;;  %v1311_v3 = vsel %vm237_vm0, %v1297_v23, %v1298_v32  ;;  %v1313_v27 = vsel %vm1300_vm9, %v1290_v55, %v1298_v32  ;;  %v2664_v55 = vld [vmem:[%s3608_s3 + $0x4] sm:$0xf] }
 0x220   : > { %v885_v13 = vsel %vm237_vm0, %v873_v45, %v874_v14  ;;  %v1379_v33 = vsel %vm1371_vm12, %v3167_v28, %v1378_v2  ;;  %v1312_v37 = vsel %vm1300_vm9, %v3269_v48, %v1311_v3  ;;  %1329 = vst.msk [vmem:[#allocation2 + $0x1f8] sm:$0xff] %vm3053_vm8, %v1313_v27  ;;  %1645 = vmatpush.bf16.msrb.mxu0 %v2430_v0  ;;  %v2680_v0 = vld [vmem:[#allocation2 + $0xdc] sm:$0xf0]  ;;  %v2327_v2 = vld [vmem:[%s3608_s3 + $0x8] sm:$0xf0] }
 0x221   : > { %1673 = vmatpush.bf16.msra.mxu2 %v2434_v17  ;;  %v886_v23 = vsel %vm287_vm5, %v3309_v40, %v885_v13  ;;  %1397 = vst [vmem:[#allocation2 + $0x220] sm:$0xff] %v1379_v33  ;;  %v2418_v45 = vor.u32 %v2686_v38, %v2415_v24  ;;  %v2684_v44 = vld [vmem:[#allocation2 + $0x11c] sm:$0xf0]  ;;  %v2399_v46 = vld [vmem:[#allocation2 + $0x120] sm:$0xf0] }
 0x222   : > { %903 = vst [vmem:[#allocation2 + $0x68] sm:$0xff] %v886_v23  ;;  %v2398_v40 = vor.u32 %v2684_v44, %v2397_v50  ;;  %v2402_v63 = vor.u32 %v2682_v34, %v2399_v46  ;;  %v2383_v17 = vld [vmem:[#allocation2 + $0xe0] sm:$0xf0]  ;;  %v2381_v23 = vld [vmem:[#allocation2 + $0xc0] sm:$0xf] }
 0x223   : > { %1328 = vst [vmem:[#allocation2 + $0x1f0] sm:$0xff] %v1312_v37  ;;  %v2453_v37 = vld [vmem:[#allocation2 + $0x1c8] sm:$0xf]  ;;  %v2678_v35 = vld [vmem:[#allocation2 + $0xc4] sm:$0xf] }
 0x224   : > { %1646 = vmatpush.bf16.msrb.mxu0 %v2414_v42  ;;  %v1282_v28 = vpop.permute.xlu1 %1281  ;;  %v1000_v48 = vpop.permute.xlu2 %999  ;;  %v2454_v38 = vor.u32 %v2697_v22, %v2453_v37  ;;  %v2382_v42 = vor.u32 %v2680_v0, %v2381_v23  ;;  %v2365_v46 = vld [vmem:[#allocation2 + $0x80] sm:$0xf]  ;;  %v2693_v50 = vld [vmem:[#allocation2 + $0x1a4] sm:$0xf0]  ;;  %v2455_v37 = vld [vmem:[#allocation2 + $0x1e8] sm:$0xf0] }
 0x225   : > { %1674 = vmatpush.bf16.msra.mxu2 %v2418_v45  ;;  %v1140_v39 = vpop.permute.xlu0 %1139  ;;  %v1294_v47 = vrot.slane %v1282_v28, 4  ;;  %v1012_v15 = vrot.slane %v1000_v48, 4  ;;  %v2676_v45 = vld [vmem:[#allocation2 + $0x9c] sm:$0xf0] }
 0x226   : > { %v1152_v26 = vrot.slane %v1140_v39, 4  ;;  %v2672_v0 = vld [vmem:[#allocation2 + $0x5c] sm:$0xf0] }
 0x227   : > { %v1304_v57 = vsel %vm237_vm0, %v1293_v36, %v1294_v47  ;;  %v1306_v58 = vsel %vm1300_vm9, %v1282_v28, %v1294_v47  ;;  %v1021_v32 = vsel %vm237_vm0, %v1011_v53, %v1012_v15 }
 0x228   : > { %v1162_v3 = vsel %vm237_vm0, %v1151_v52, %v1152_v26  ;;  %v1164_v27 = vsel %vm1158_vm10, %v1140_v39, %v1152_v26  ;;  %v1305_v36 = vsel %vm1300_vm9, %v3179_v30, %v1304_v57  ;;  %1325 = vst.msk [vmem:[#allocation2 + $0x1d8] sm:$0xff] %vm3053_vm8, %v1306_v58  ;;  %v1022_v53 = vsel %vm358_vm1, %v3202_v20, %v1021_v32  ;;  %v2700_v18 = vld [vmem:[#allocation2 + $0x21c] sm:$0xf0]  ;;  %v2463_v24 = vld [vmem:[#allocation2 + $0x220] sm:$0xf0] }
 0x229   : > { %v1163_v13 = vsel %vm1158_vm10, %v3165_v43, %v1162_v3  ;;  %1183 = vst.msk [vmem:[#allocation2 + $0x158] sm:$0xff] %vm3053_vm8, %v1164_v27  ;;  %1647 = vmatpush.bf16.msrb.mxu0 %v2398_v40  ;;  %1675 = vmatpush.bf16.msra.mxu2 %v2402_v63  ;;  %v2462_v52 = vor.u32 %v2700_v18, %v2461_v51  ;;  %v2367_v39 = vld [vmem:[#allocation2 + $0xa0] sm:$0xf0]  ;;  %v2437_v57 = vld [vmem:[#allocation2 + $0x188] sm:$0xf] }
 0x22a   : > { %v2466_v33 = vor.u32 %v2698_v54, %v2463_v24  ;;  %1182 = vst [vmem:[#allocation2 + $0x150] sm:$0xff] %v1163_v13  ;;  %v1023_v30 = vsel %vm358_vm1, %v1000_v48, %v1012_v15  ;;  %v3416_v20 = vor.u32 %v2664_v55, %v2327_v2  ;;  %v2386_v43 = vor.u32 %v2678_v35, %v2383_v17  ;;  %v2674_v40 = vld [vmem:[#allocation2 + $0x84] sm:$0xf]  ;;  %v2421_v2 = vld [vmem:[#allocation2 + $0x148] sm:$0xf] }
 0x22b   : > { %1324 = vst [vmem:[#allocation2 + $0x1d0] sm:$0xff] %v1305_v36  ;;  %1665 = vmatpush.bf16.msra.mxu1 %v2462_v52  ;;  %v2366_v26 = vor.u32 %v2676_v45, %v2365_v46  ;;  %v2370_v55 = vor.u32 %v2674_v40, %v2367_v39  ;;  %v2351_v17 = vld [vmem:[#allocation2 + $0x60] sm:$0xf0]  ;;  %v2689_v3 = vld [vmem:[#allocation2 + $0x164] sm:$0xf0] }
 0x22c   : > { %1693 = vmatpush.bf16.msrb.mxu3 %v2466_v33  ;;  %1041 = vst [vmem:[#allocation2 + $0xd0] sm:$0xff] %v1022_v53  ;;  %v1070_v44 = vpop.permute.xlu1 %1069  ;;  %v1078_v28 = vpop.permute.xlu2 %1077  ;;  %v2335_v27 = vld [vmem:[#allocation2 + $0x20] sm:$0xf0]  ;;  %v2349_v53 = vld [vmem:[#allocation2 + $0x40] sm:$0xf] }
 0x22d   : > { %1042 = vst.msk [vmem:[#allocation2 + $0xd8] sm:$0xff] %vm3053_vm8, %v1023_v30  ;;  %1648 = vmatpush.bf16.msrb.mxu0 %v2382_v42  ;;  %1676 = vmatpush.bf16.msra.mxu2 %v2386_v43  ;;  %v1219_v48 = vpop.permute.xlu0 %1218  ;;  %v1082_v47 = vrot.slane %v1070_v44, 4  ;;  %v1086_v15 = vrot.slane %v1078_v28, 4  ;;  %v2670_v18 = vld [vmem:[#allocation2 + $0x44] sm:$0xf]  ;;  %v2422_v30 = vor.u32 %v2689_v3, %v2421_v2 }
 0x22e   : > { %v1227_v34 = vrot.slane %v1219_v48, 4  ;;  %2475 = vmatmul.msk.bf16.vlgmr.msra.gmra.mxu1 %vm1640_vm13, %v3416_v20  ;;  %v2354_v24 = vor.u32 %v2670_v18, %v2351_v17  ;;  %v2333_v13 = vld [vmem:[#allocation2] sm:$0xf]  ;;  %v2666_v52 = vld [vmem:[#allocation2 + $0x4] sm:$0xf] }
 0x22f   : > { %1700 = vmatpush.bf16.msrb.mxu1 %v2454_v38  ;;  %2476 = vmatmul.msk.bf16.vlgmr.msrb.gmra.mxu3 %vm1640_vm13, %v3416_v20  ;;  %v1091_v51 = vsel %vm237_vm0, %v1081_v8, %v1082_v47  ;;  %v1093_v54 = vsel %vm429_vm4, %v1070_v44, %v1082_v47  ;;  %v1098_v22 = vsel %vm237_vm0, %v1085_v10, %v1086_v15  ;;  %v2695_v33 = vld [vmem:[#allocation2 + $0x1cc] sm:$0xf]  ;;  %v2325_v35 = vld [vmem:[%s3608_s3] sm:$0xf]  ;;  %v2665_v38 = vld [vmem:[%s3608_s3 + $0x4] sm:$0xf0] }
 0x230   : > { %v1240_v58 = vsel %vm237_vm0, %v1226_v41, %v1227_v34  ;;  %v1242_v32 = vsel %vm574_vm6, %v1219_v48, %v1227_v34  ;;  %v1092_v63 = vsel %vm429_vm4, %v3177_v29, %v1091_v51  ;;  %1112 = vst.msk [vmem:[#allocation2 + $0x118] sm:$0xff] %vm3053_vm8, %v1093_v54  ;;  %v2438_v8 = vor.u32 %v2693_v50, %v2437_v57  ;;  %v2668_v29 = vld [vmem:[#allocation2 + $0x1c] sm:$0xf0]  ;;  %v2685_v44 = vld [vmem:[#allocation2 + $0x124] sm:$0xf0] }
 0x231   : > { %v1241_v10 = vsel %vm574_vm6, %v3282_v56, %v1240_v58  ;;  %1258 = vst.msk [vmem:[#allocation2 + $0x1b8] sm:$0xff] %vm3053_vm8, %v1242_v32  ;;  %v1099_v41 = vsel %vm429_vm4, %v3299_v6, %v1098_v22  ;;  %1649 = vmatpush.bf16.msrb.mxu0 %v2366_v26  ;;  %1677 = vmatpush.bf16.msra.mxu2 %v2370_v55  ;;  %v2405_v34 = vld [vmem:[#allocation2 + $0x108] sm:$0xf]  ;;  %v2439_v55 = vld [vmem:[#allocation2 + $0x1a8] sm:$0xf0] }
 0x232   : > { %1257 = vst [vmem:[#allocation2 + $0x1b0] sm:$0xff] %v1241_v10  ;;  %v1100_v36 = vsel %vm429_vm4, %v1078_v28, %v1086_v15  ;;  %v2350_v56 = vor.u32 %v2672_v0, %v2349_v53  ;;  %v2334_v46 = vor.u32 %v2668_v29, %v2333_v13  ;;  %v2338_v39 = vor.u32 %v2666_v52, %v2335_v27  ;;  %v2681_v22 = vld [vmem:[#allocation2 + $0xe4] sm:$0xf0]  ;;  %v2687_v2 = vld [vmem:[#allocation2 + $0x14c] sm:$0xf] }
 0x233   : > { %1701 = vmatpush.bf16.msrb.mxu1 %v2438_v8  ;;  %1111 = vst [vmem:[#allocation2 + $0x110] sm:$0xff] %v1092_v63  ;;  %v2458_v48 = vor.u32 %v2695_v33, %v2455_v37  ;;  %v3469_v26 = vor.u32 %v2665_v38, %v2325_v35  ;;  %v2677_v17 = vld [vmem:[#allocation2 + $0xa4] sm:$0xf0]  ;;  %v2407_v18 = vld [vmem:[#allocation2 + $0x128] sm:$0xf0] }
 0x234   : > { %1115 = vst [vmem:[#allocation2 + $0x130] sm:$0xff] %v1099_v41  ;;  %v3446_v6 = vpop.permute.xlu1 %1358  ;;  %v937_v23 = vpop.permute.xlu2 %936  ;;  %v2373_v41 = vld [vmem:[#allocation2 + $0x88] sm:$0xf] }
 0x235   : > { %1116 = vst.msk [vmem:[#allocation2 + $0x138] sm:$0xff] %vm3053_vm8, %v1100_v36  ;;  %1650 = vmatpush.bf16.msrb.mxu0 %v2350_v56  ;;  %1678 = vmatpush.bf16.msra.mxu2 %v2354_v24  ;;  %v3456_v42 = vpop.permute.xlu0 %1350  ;;  %v1368_v43 = vrot.slane %v3446_v6, 4  ;;  %v945_v45 = vrot.slane %v937_v23, 4  ;;  %v2673_v53 = vld [vmem:[#allocation2 + $0x64] sm:$0xf0] }
 0x236   : > { %v1364_v28 = vrot.slane %v3456_v42, 4  ;;  %v2593_v56 = vld [vmem:[#allocation2 + $0x1d0] sm:$0xf]  ;;  %v2730_v24 = vld [vmem:[#allocation2 + $0x1d4] sm:$0xf] }
 0x237   : > { %1702 = vmatpush.bf16.msrb.mxu1 %v2422_v30  ;;  %v1380_v47 = vsel %vm237_vm0, %v1367_v62, %v1368_v43  ;;  %v958_v15 = vsel %vm237_vm0, %v944_v4, %v945_v45  ;;  %v960_v50 = vsel %vm947_vm11, %v937_v23, %v945_v45  ;;  %v2406_v62 = vor.u32 %v2685_v44, %v2405_v34  ;;  %v2669_v45 = vld [vmem:[#allocation2 + $0x24] sm:$0xf0] }
 0x238   : > { %v1373_v40 = vsel %vm237_vm0, %v1363_v11, %v1364_v28  ;;  %v1381_v51 = vsel %vm1371_vm12, %v3361_v25, %v1380_v47  ;;  %v959_v54 = vsel %vm947_vm11, %v3271_v49, %v958_v15  ;;  %976 = vst.msk [vmem:[#allocation2 + $0xb8] sm:$0xff] %vm3053_vm8, %v960_v50  ;;  %v2389_v11 = vld [vmem:[#allocation2 + $0xc8] sm:$0xf]  ;;  %v2691_v25 = vld [vmem:[#allocation2 + $0x18c] sm:$0xf] }
 0x239   : > { %v1374_v4 = vsel %vm1371_vm12, %v3243_v5, %v1373_v40  ;;  %1398 = vst [vmem:[#allocation2 + $0x228] sm:$0xff] %v1381_v51  ;;  %1651 = vmatpush.bf16.msrb.mxu0 %v2334_v46  ;;  %1679 = vmatpush.bf16.msra.mxu2 %v2338_v39  ;;  %v2390_v57 = vor.u32 %v2681_v22, %v2389_v11  ;;  %v2423_v5 = vld [vmem:[#allocation2 + $0x168] sm:$0xf0]  ;;  %v2732_v46 = vld [vmem:[#allocation2 + $0x1ec] sm:$0xf0] }
 0x23a   : > { %1394 = vst [vmem:[#allocation2 + $0x208] sm:$0xff] %v1374_v4  ;;  %v2442_v32 = vor.u32 %v2691_v25, %v2439_v55  ;;  %v2426_v36 = vor.u32 %v2687_v2, %v2423_v5  ;;  %v2595_v39 = vld [vmem:[#allocation2 + $0x1f0] sm:$0xf0]  ;;  %v2594_v47 = vor.u32 %v2732_v46, %v2593_v56  ;;  %v2728_v40 = vld [vmem:[#allocation2 + $0x1ac] sm:$0xf0] }
 0x23b   : > { %1703 = vmatpush.bf16.msrb.mxu1 %v2406_v62  ;;  %975 = vst [vmem:[#allocation2 + $0xb0] sm:$0xff] %v959_v54  ;;  %v2598_v15 = vor.u32 %v2730_v24, %v2595_v39  ;;  %v2579_v51 = vld [vmem:[#allocation2 + $0x1b0] sm:$0xf0]  ;;  %v2341_v4 = vld [vmem:[#allocation2 + $0x8] sm:$0xf] }
 0x23c   : > { %1652 = vmatmul.bf16.vlgmr.msrb.gmra.mxu0 %v3469_v26  ;;  %1680 = vmatmul.bf16.vlgmr.msra.gmra.mxu2 %v3469_v26  ;;  %v1148_v49 = vpop.permute.xlu1 %1147  ;;  %v1353_v58 = vpop.permute.xlu2 %1352  ;;  %v2391_v22 = vld [vmem:[#allocation2 + $0xe8] sm:$0xf0]  ;;  %v2342_v11 = vor.u32 %v2669_v45, %v2341_v4  ;;  %v2577_v25 = vld [vmem:[#allocation2 + $0x190] sm:$0xf] }
 0x23d   : > { %1728 = vmatpush.bf16.msra.mxu0 %v2458_v48  ;;  %v1008_v63 = vpop.permute.xlu0 %1007  ;;  %v1156_v8 = vrot.slane %v1148_v49, 4  ;;  %v1365_v0 = vrot.slane %v1353_v58, 4  ;;  %v2683_v48 = vld [vmem:[#allocation2 + $0x10c] sm:$0xf]  ;;  %v2578_v5 = vor.u32 %v2728_v40, %v2577_v25  ;;  %v2561_v2 = vld [vmem:[#allocation2 + $0x150] sm:$0xf] }
 0x23e   : > { %v1016_v10 = vrot.slane %v1008_v63, 4  ;;  %v2410_v34 = vor.u32 %v2683_v48, %v2407_v18  ;;  %v2359_v56 = vld [vmem:[#allocation2 + $0x68] sm:$0xf0]  ;;  %v2545_v24 = vld [vmem:[#allocation2 + $0x110] sm:$0xf] }
 0x23f   : > { %1704 = vmatpush.bf16.msrb.mxu1 %v2390_v57  ;;  %v1169_v3 = vsel %vm237_vm0, %v1155_v61, %v1156_v8  ;;  %v1171_v29 = vsel %vm1158_vm10, %v1148_v49, %v1156_v8  ;;  %v1375_v27 = vsel %vm237_vm0, %v1364_v28, %v1365_v0  ;;  %v2374_v61 = vor.u32 %v2677_v17, %v2373_v41  ;;  %v2726_v49 = vld [vmem:[#allocation2 + $0x194] sm:$0xf]  ;;  %v2731_v25 = vld [vmem:[#allocation2 + $0x1dc] sm:$0xf] }
 0x240   : > { %v1028_v13 = vsel %vm237_vm0, %v1015_v21, %v1016_v10  ;;  %v1030_v52 = vsel %vm358_vm1, %v1008_v63, %v1016_v10  ;;  %v1170_v33 = vsel %vm1158_vm10, %v3285_v59, %v1169_v3  ;;  %1187 = vst.msk [vmem:[#allocation2 + $0x178] sm:$0xff] %vm3053_vm8, %v1171_v29  ;;  %v2701_v37 = vld [vmem:[#allocation2 + $0x224] sm:$0xf0]  ;;  %v2471_v30 = vld [vmem:[#allocation2 + $0x228] sm:$0xf0]  ;;  %v1376_v21 = vsel %vm1371_vm12, %v3456_v42, %v1375_v27 }
 0x241   : > { %1729 = vmatpush.bf16.msra.mxu0 %v2442_v32  ;;  %v1029_v23 = vsel %vm358_vm1, %v3295_v1, %v1028_v13  ;;  %1046 = vst.msk [vmem:[#allocation2 + $0xf8] sm:$0xff] %vm3053_vm8, %v1030_v52  ;;  %v2469_v35 = vld [vmem:[#allocation2 + $0x208] sm:$0xf]  ;;  %v2699_v38 = vld [vmem:[#allocation2 + $0x20c] sm:$0xf]  ;;  %v1377_v59 = vsel %vm1371_vm12, %v1353_v58, %v1365_v0  ;;  %v2582_v63 = vor.u32 %v2726_v49, %v2579_v51 }
 0x242   : > { %1045 = vst [vmem:[#allocation2 + $0xf0] sm:$0xff] %v1029_v23  ;;  %v2470_v44 = vor.u32 %v2701_v37, %v2469_v35  ;;  %v2474_v28 = vor.u32 %v2699_v38, %v2471_v30  ;;  %v2357_v1 = vld [vmem:[#allocation2 + $0x48] sm:$0xf]  ;;  %v2679_v32 = vld [vmem:[#allocation2 + $0xcc] sm:$0xf] }
 0x243   : > { %1705 = vmatpush.bf16.msrb.mxu1 %v2374_v61  ;;  %1186 = vst [vmem:[#allocation2 + $0x170] sm:$0xff] %v1170_v33  ;;  %v2358_v50 = vor.u32 %v2673_v53, %v2357_v1  ;;  %v2375_v10 = vld [vmem:[#allocation2 + $0xa8] sm:$0xf0]  ;;  %v2720_v13 = vld [vmem:[#allocation2 + $0x12c] sm:$0xf0] }
 0x244   : > { %1395 = vst [vmem:[#allocation2 + $0x210] sm:$0xff] %v1376_v21  ;;  %1721 = vmatpush.bf16.msra.mxu3 %v2470_v44  ;;  %1749 = vmatpush.bf16.msrb.mxu2 %v2474_v28  ;;  %v929_v42 = vpop.permute.xlu1 %928  ;;  %v1404_v29 = vld [vmem:[%s3609_s4 + $0x8] sm:$0xff]  ;;  %v2718_v61 = vld [vmem:[#allocation2 + $0x114] sm:$0xf]  ;;  %v2546_v45 = vor.u32 %v2720_v13, %v2545_v24  ;;  %v2727_v13 = vld [vmem:[#allocation2 + $0x19c] sm:$0xf] }
 0x245   : > { %1730 = vmatpush.bf16.msra.mxu0 %v2426_v36  ;;  %1396 = vst.msk [vmem:[#allocation2 + $0x218] sm:$0xff] %vm3053_vm8, %v1377_v59  ;;  %v859_v54 = vpop.permute.xlu0 %858  ;;  %v941_v62 = vrot.slane %v929_v42, 4  ;;  %v2675_v27 = vld [vmem:[#allocation2 + $0x8c] sm:$0xf]  ;;  %1448 = vperm.xlu2 %2757, %v1404_v29   ;;  %v2547_v37 = vld [vmem:[#allocation2 + $0x130] sm:$0xf0] }
 0x246   : > { %v871_v55 = vrot.slane %v859_v54, 4  ;;  %v2378_v18 = vor.u32 %v2675_v27, %v2375_v10  ;;  %v2671_v23 = vld [vmem:[#allocation2 + $0x4c] sm:$0xf]  ;;  %v2550_v46 = vor.u32 %v2718_v61, %v2547_v37  ;;  %v2483_v29 = vld [vmem:[#allocation2 + $0x30] sm:$0xf0] }
 0x247   : > { %1706 = vmatpush.bf16.msrb.mxu1 %v2358_v50  ;;  %v951_v57 = vsel %vm237_vm0, %v940_v16, %v941_v62  ;;  %v953_v58 = vsel %vm947_vm11, %v929_v42, %v941_v62  ;;  %2477 = vmatmul.msk.bf16.vlgmr.msra.gmra.mxu3 %vm1640_vm13, %v3416_v20  ;;  %v2394_v16 = vor.u32 %v2679_v32, %v2391_v22  ;;  %v2343_v1 = vld [vmem:[#allocation2 + $0x28] sm:$0xf0]  ;;  %v2601_v62 = vld [vmem:[#allocation2 + $0x1d8] sm:$0xf]  ;;  %v2587_v27 = vld [vmem:[#allocation2 + $0x1b8] sm:$0xf0] }
 0x248   : > { %1988 = vmatpush.bf16.msrb.mxu3 %v2594_v47  ;;  %2016 = vmatpush.bf16.msra.mxu2 %v2598_v15  ;;  %v880_v8 = vsel %vm237_vm0, %v870_v12, %v871_v55  ;;  %v882_v0 = vsel %vm287_vm5, %v859_v54, %v871_v55  ;;  %v952_v17 = vsel %vm947_vm11, %v3199_v19, %v951_v57  ;;  %v2722_v12 = vld [vmem:[#allocation2 + $0x154] sm:$0xf] }
 0x249   : > { %1731 = vmatpush.bf16.msra.mxu0 %v2410_v34  ;;  %972 = vst.msk [vmem:[#allocation2 + $0x98] sm:$0xff] %vm3053_vm8, %v953_v58  ;;  %v881_v41 = vsel %vm287_vm5, %v3189_v31, %v880_v8  ;;  %v2362_v38 = vor.u32 %v2671_v23, %v2359_v56  ;;  %v2716_v39 = vld [vmem:[#allocation2 + $0xec] sm:$0xf0]  ;;  %v2531_v48 = vld [vmem:[#allocation2 + $0xf0] sm:$0xf0] }
 0x24a   : > { %901 = vst.msk [vmem:[#allocation2 + $0x58] sm:$0xff] %vm3053_vm8, %v882_v0  ;;  %v2724_v3 = vld [vmem:[#allocation2 + $0x16c] sm:$0xf0]  ;;  %v2563_v19 = vld [vmem:[#allocation2 + $0x170] sm:$0xf0] }
 0x24b   : > { %900 = vst [vmem:[#allocation2 + $0x50] sm:$0xff] %v881_v41  ;;  %1707 = vmatpush.bf16.msrb.mxu1 %v2342_v11  ;;  %v2562_v36 = vor.u32 %v2724_v3, %v2561_v2  ;;  %v2566_v31 = vor.u32 %v2722_v12, %v2563_v19  ;;  %v2714_v15 = vld [vmem:[#allocation2 + $0xd4] sm:$0xf]  ;;  %v2609_v22 = vld [vmem:[#allocation2 + $0x210] sm:$0xf] }
 0x24c   : > { %1989 = vmatpush.bf16.msrb.mxu3 %v2578_v5  ;;  %2017 = vmatpush.bf16.msra.mxu2 %v2582_v63  ;;  %971 = vst [vmem:[#allocation2 + $0x90] sm:$0xff] %v952_v17  ;;  %v867_v53 = vpop.permute.xlu1 %866  ;;  %v2534_v50 = vor.u32 %v2714_v15, %v2531_v48  ;;  %v2515_v54 = vld [vmem:[#allocation2 + $0xb0] sm:$0xf0]  ;;  %v2733_v11 = vld [vmem:[#allocation2 + $0x1f4] sm:$0xf0] }
 0x24d   : > { %1732 = vmatpush.bf16.msra.mxu0 %v2394_v16  ;;  %2478 = vmatmul.msk.bf16.vlgmr.msrb.gmra.mxu2 %vm1640_vm13, %v3416_v20  ;;  %v1361_v52 = vpop.permute.xlu0 %1360  ;;  %v875_v33 = vrot.slane %v867_v53, 4  ;;  %v2734_v55 = vld [vmem:[#allocation2 + $0x214] sm:$0xf]  ;;  %v2602_v10 = vor.u32 %v2733_v11, %v2601_v62  ;;  %v2603_v41 = vld [vmem:[#allocation2 + $0x1f8] sm:$0xf0] }
 0x24e   : > { %1708 = vmatmul.bf16.vlgmr.msrb.gmra.mxu1 %v3469_v26  ;;  %v1369_v30 = vrot.slane %v1361_v52, 4  ;;  %v2606_v2 = vor.u32 %v2731_v25, %v2603_v41  ;;  %v2704_v12 = vld [vmem:[#allocation2 + $0x2c] sm:$0xf0]  ;;  %v2729_v3 = vld [vmem:[#allocation2 + $0x1b4] sm:$0xf0] }
 0x24f   : > { %v887_v21 = vsel %vm237_vm0, %v874_v14, %v875_v33  ;;  %v889_v35 = vsel %vm287_vm5, %v867_v53, %v875_v33  ;;  %v2481_v19 = vld [vmem:[#allocation2 + $0x10] sm:$0xf]  ;;  %v2702_v56 = vld [vmem:[#allocation2 + $0x14] sm:$0xf]  ;;  %v2590_v33 = vor.u32 %v2727_v13, %v2587_v27  ;;  %v2617_v61 = vld [vmem:[#allocation2 + $0x218] sm:$0xf] }
 0x250   : > { %1990 = vmatpush.bf16.msrb.mxu3 %v2562_v36  ;;  %2018 = vmatpush.bf16.msra.mxu2 %v2566_v31  ;;  %v1382_v59 = vsel %vm237_vm0, %v1368_v43, %v1369_v30  ;;  %v1384_v44 = vsel %vm1371_vm12, %v1361_v52, %v1369_v30  ;;  %v888_v28 = vsel %vm287_vm5, %v3364_v60, %v887_v21  ;;  %v2529_v43 = vld [vmem:[#allocation2 + $0xd0] sm:$0xf]  ;;  %v2667_v60 = vld [vmem:[#allocation2 + $0xc] sm:$0xf]  ;;  %v2585_v36 = vld [vmem:[#allocation2 + $0x198] sm:$0xf] }
 0x251   : > { %1733 = vmatpush.bf16.msra.mxu0 %v2378_v18  ;;  %905 = vst.msk [vmem:[#allocation2 + $0x78] sm:$0xff] %vm3053_vm8, %v889_v35  ;;  %v1383_v14 = vsel %vm1371_vm12, %v3446_v6, %v1382_v59  ;;  %v2530_v47 = vor.u32 %v2716_v39, %v2529_v43  ;;  %v2346_v42 = vor.u32 %v2667_v60, %v2343_v1  ;;  %v2712_v6 = vld [vmem:[#allocation2 + $0xac] sm:$0xf0]  ;;  %v2735_v37 = vld [vmem:[#allocation2 + $0x21c] sm:$0xf] }
 0x252   : > { %1400 = vst.msk [vmem:[#allocation2 + $0x238] sm:$0xff] %vm3053_vm8, %v1384_v44  ;;  %v2497_v58 = vld [vmem:[#allocation2 + $0x50] sm:$0xf]  ;;  %v2706_v8 = vld [vmem:[#allocation2 + $0x54] sm:$0xf]  ;;  %v2482_v18 = vor.u32 %v2704_v12, %v2481_v19  ;;  %v2586_v24 = vor.u32 %v2729_v3, %v2585_v36  ;;  %v2486_v52 = vor.u32 %v2702_v56, %v2483_v29 }
 0x253   : > { %1399 = vst [vmem:[#allocation2 + $0x230] sm:$0xff] %v1383_v14  ;;  %v2513_v34 = vld [vmem:[#allocation2 + $0x90] sm:$0xf]  ;;  %v2710_v40 = vld [vmem:[#allocation2 + $0x94] sm:$0xf] }
 0x254   : > { %1991 = vmatpush.bf16.msrb.mxu3 %v2546_v45  ;;  %2019 = vmatpush.bf16.msra.mxu2 %v2550_v46  ;;  %904 = vst [vmem:[#allocation2 + $0x70] sm:$0xff] %v888_v28  ;;  %v2514_v51 = vor.u32 %v2712_v6, %v2513_v34  ;;  %v2518_v4 = vor.u32 %v2710_v40, %v2515_v54  ;;  %v2725_v30 = vld [vmem:[#allocation2 + $0x174] sm:$0xf0]  ;;  %v2571_v35 = vld [vmem:[#allocation2 + $0x178] sm:$0xf0] }
 0x255   : > { %1734 = vmatpush.bf16.msra.mxu0 %v2362_v38  ;;  %v2569_v38 = vld [vmem:[#allocation2 + $0x158] sm:$0xf]  ;;  %v2723_v59 = vld [vmem:[#allocation2 + $0x15c] sm:$0xf] }
 0x256   : > { %v2570_v45 = vor.u32 %v2725_v30, %v2569_v38  ;;  %v2574_v44 = vor.u32 %v2723_v59, %v2571_v35  ;;  %v2553_v28 = vld [vmem:[#allocation2 + $0x118] sm:$0xf]  ;;  %v2719_v39 = vld [vmem:[#allocation2 + $0x11c] sm:$0xf] }
 0x257   : > { %v2721_v46 = vld [vmem:[#allocation2 + $0x134] sm:$0xf0]  ;;  %v2555_v14 = vld [vmem:[#allocation2 + $0x138] sm:$0xf0] }
 0x258   : > { %1992 = vmatpush.bf16.msrb.mxu3 %v2530_v47  ;;  %2020 = vmatpush.bf16.msra.mxu2 %v2534_v50  ;;  %v2554_v1 = vor.u32 %v2721_v46, %v2553_v28  ;;  %v2558_v48 = vor.u32 %v2719_v39, %v2555_v14  ;;  %v2717_v43 = vld [vmem:[#allocation2 + $0xf4] sm:$0xf0]  ;;  %v2539_v60 = vld [vmem:[#allocation2 + $0xf8] sm:$0xf0] }
 0x259   : > { %1735 = vmatpush.bf16.msra.mxu0 %v2346_v42  ;;  %v2737_v31 = vld [vmem:[#allocation2 + $0x234] sm:$0xf0]  ;;  %v2619_v53 = vld [vmem:[#allocation2 + $0x238] sm:$0xf0] }
 0x25a   : > { %v2736_v49 = vld [vmem:[#allocation2 + $0x22c] sm:$0xf0]  ;;  %v2611_v57 = vld [vmem:[#allocation2 + $0x230] sm:$0xf0]  ;;  %v2618_v23 = vor.u32 %v2737_v31, %v2617_v61  ;;  %v2622_v21 = vor.u32 %v2735_v37, %v2619_v53  ;;  %v2537_v47 = vld [vmem:[#allocation2 + $0xd8] sm:$0xf] }
 0x25b   : > { %v2610_v32 = vor.u32 %v2736_v49, %v2609_v22  ;;  %v2614_v5 = vor.u32 %v2734_v55, %v2611_v57  ;;  %v2708_v63 = vld [vmem:[#allocation2 + $0x6c] sm:$0xf0]  ;;  %v2499_v0 = vld [vmem:[#allocation2 + $0x70] sm:$0xf0]  ;;  %v2538_v15 = vor.u32 %v2717_v43, %v2537_v47  ;;  %v2715_v42 = vld [vmem:[#allocation2 + $0xdc] sm:$0xf] }
 0x25c   : > { %1736 = vmatmul.bf16.vlgmr.msra.gmra.mxu0 %v3469_v26  ;;  %1993 = vmatpush.bf16.msrb.mxu3 %v2514_v51  ;;  %v2498_v17 = vor.u32 %v2708_v63, %v2497_v58  ;;  %v2502_v16 = vor.u32 %v2706_v8, %v2499_v0  ;;  %v2542_v50 = vor.u32 %v2715_v42, %v2539_v60  ;;  %v2521_v34 = vld [vmem:[#allocation2 + $0x98] sm:$0xf]  ;;  %v2711_v40 = vld [vmem:[#allocation2 + $0x9c] sm:$0xf] }
 0x25d   : > { %2021 = vmatpush.bf16.msra.mxu2 %v2518_v4  ;;  %2009 = vmatpush.bf16.msra.mxu1 %v2610_v32  ;;  %v2713_v6 = vld [vmem:[#allocation2 + $0xb4] sm:$0xf0]  ;;  %v2523_v54 = vld [vmem:[#allocation2 + $0xb8] sm:$0xf0] }
 0x25e   : > { %2037 = vmatpush.bf16.msrb.mxu0 %v2614_v5  ;;  %v2522_v51 = vor.u32 %v2713_v6, %v2521_v34  ;;  %v2526_v62 = vor.u32 %v2711_v40, %v2523_v54  ;;  %v2709_v4 = vld [vmem:[#allocation2 + $0x74] sm:$0xf0]  ;;  %v2507_v22 = vld [vmem:[#allocation2 + $0x78] sm:$0xf0] }
 0x25f   : > { %v2505_v55 = vld [vmem:[#allocation2 + $0x58] sm:$0xf]  ;;  %v2707_v25 = vld [vmem:[#allocation2 + $0x5c] sm:$0xf] }
 0x260   : > { %1994 = vmatpush.bf16.msrb.mxu3 %v2498_v17  ;;  %2623 = vmatmul.msk.bf16.vlgmr.msra.gmra.mxu1 %vm1640_vm13, %v3416_v20  ;;  %v2506_v11 = vor.u32 %v2709_v4, %v2505_v55  ;;  %v2510_v49 = vor.u32 %v2707_v25, %v2507_v22  ;;  %v2705_v57 = vld [vmem:[#allocation2 + $0x34] sm:$0xf0]  ;;  %v2491_v58 = vld [vmem:[#allocation2 + $0x38] sm:$0xf0]  ;;  %v3559_v17 = vpop.permute.xlu1 %1443 }
 0x261   : > { %2044 = vmatpush.bf16.msrb.mxu1 %v2602_v10  ;;  %2022 = vmatpush.bf16.msra.mxu2 %v2502_v16  ;;  %v2489_v32 = vld [vmem:[#allocation2 + $0x18] sm:$0xf]  ;;  %v2703_v63 = vld [vmem:[#allocation2 + $0x1c] sm:$0xf] }
 0x262   : > { %2072 = vmatpush.bf16.msra.mxu0 %v2606_v2  ;;  %v2490_v5 = vor.u32 %v2705_v57, %v2489_v32  ;;  %v2494_v8 = vor.u32 %v2703_v63, %v2491_v58 }
 0x264   : > { %1995 = vmatpush.bf16.msrb.mxu3 %v2482_v18 }
 0x265   : > { %2045 = vmatpush.bf16.msrb.mxu1 %v2586_v24  ;;  %2023 = vmatpush.bf16.msra.mxu2 %v2486_v52 }
 0x266   : > { %2073 = vmatpush.bf16.msra.mxu0 %v2590_v33 }
 0x267   : > { %1996 = vmatmul.bf16.vlgmr.msrb.gmra.mxu3 %v3469_v26 }
 0x268   : > { %2065 = vmatpush.bf16.msra.mxu3 %v2618_v23  ;;  %2024 = vmatmul.bf16.vlgmr.msra.gmra.mxu2 %v3469_v26 }
 0x269   : > { %2093 = vmatpush.bf16.msrb.mxu2 %v2622_v21  ;;  %2046 = vmatpush.bf16.msrb.mxu1 %v2570_v45 }
 0x26a   : > { %2074 = vmatpush.bf16.msra.mxu0 %v2574_v44 }
 0x26c   : > { %2624 = vmatmul.msk.bf16.vlgmr.msrb.gmra.mxu0 %vm1640_vm13, %v3416_v20 }
 0x26d   : > { %2047 = vmatpush.bf16.msrb.mxu1 %v2554_v1 }
 0x26e   : > { %2075 = vmatpush.bf16.msra.mxu0 %v2558_v48 }
 0x271   : > { %2048 = vmatpush.bf16.msrb.mxu1 %v2538_v15 }
 0x272   : > { %2076 = vmatpush.bf16.msra.mxu0 %v2542_v50 }
 0x275   : > { %2049 = vmatpush.bf16.msrb.mxu1 %v2522_v51 }
 0x276   : > { %2077 = vmatpush.bf16.msra.mxu0 %v2526_v62 }
 0x277   : > { %2625 = vmatmul.msk.bf16.vlgmr.msra.gmra.mxu3 %vm1640_vm13, %v3416_v20 }
 0x278   : > { %2626 = vmatmul.msk.bf16.vlgmr.msrb.gmra.mxu2 %vm1640_vm13, %v3416_v20 }
 0x279   : > { %2050 = vmatpush.bf16.msrb.mxu1 %v2506_v11 }
 0x27a   : > { %2078 = vmatpush.bf16.msra.mxu0 %v2510_v49 }
 0x27d   : > { %2051 = vmatpush.bf16.msrb.mxu1 %v2490_v5 }
 0x27e   : > { %2079 = vmatpush.bf16.msra.mxu0 %v2494_v8 }
 0x280   : > { %2052 = vmatmul.bf16.vlgmr.msrb.gmra.mxu1 %v3469_v26 }
 0x281   : > { %2080 = vmatmul.bf16.vlgmr.msra.gmra.mxu0 %v3469_v26 }
 0x29f   : > { %v3562_v10 = vpop.permute.xlu2 %1448 }
 0x2ab   : > { %v1667_v16 = vpop.f32.mrf.mxu1 }
 0x2b2   : > { %v1695_v41 = vpop.f32.mrf.mxu3 }
 0x2b3   : > { %v1669_v26 = vpop.f32.mrf.mxu1 }
 0x2b9   : > { %v1653_v0 = vpop.f32.mrf.mxu0 }
 0x2ba   : > { %v1654_v20 = vadd.f32 %v1653_v0, %v3559_v17  ;;  %v1697_v13 = vpop.f32.mrf.mxu3 }
 0x2bc   : > { %v1668_v12 = vadd.f32 %v1667_v16, %v1654_v20 }
 0x2be   : > { %v1756_v36 = vmax.f32 %v1668_v12, 0.0 }
 0x2bf   : > { %v1681_v2 = vpop.f32.mrf.mxu2 }
 0x2c0   : > { %v1682_v3 = vadd.f32 %v1681_v2, %v3559_v17 }
 0x2c1   : > { %v1655_v19 = vpop.f32.mrf.mxu0 }
 0x2c2   : > { %v1696_v29 = vadd.f32 %v1695_v41, %v1682_v3  ;;  %v1656_v27 = vadd.f32 %v1655_v19, %v3562_v10 }
 0x2c4   : > { %v1757_v31 = vmax.f32 %v1696_v29, 0.0  ;;  %v1670_v18 = vadd.f32 %v1669_v26, %v1656_v27 }
 0x2c6   : > { %v1764_v53 = vpack.c.bf16 %v1757_v31, %v1756_v36  ;;  %v1760_v52 = vmax.f32 %v1670_v18, 0.0 }
 0x2c7   : > { %v1683_v56 = vpop.f32.mrf.mxu2 }
 0x2c8   : > { %1768 = vst [vmem:[%s3571_s30] sm:$0xff] %v1764_v53  ;;  %v1684_v24 = vadd.f32 %v1683_v56, %v3562_v10 }
 0x2ca   : > { %v1698_v33 = vadd.f32 %v1697_v13, %v1684_v24  ;;  %v1723_v21 = vpop.f32.mrf.mxu3 }
 0x2cb   : > { %v1709_v30 = vpop.f32.mrf.mxu1 }
 0x2cc   : > { %v1761_v61 = vmax.f32 %v1698_v33, 0.0  ;;  %v1710_v23 = vadd.f32 %v1709_v30, %v3559_v17 }
 0x2ce   : > { %v1766_v37 = vpack.c.bf16 %v1761_v61, %v1760_v52  ;;  %v1724_v45 = vadd.f32 %v1723_v21, %v1710_v23 }
 0x2d0   : > { %1770 = vst [vmem:[%s3571_s30 + $0x20] sm:$0xff] %v1766_v37  ;;  %v1751_v35 = vpop.f32.mrf.mxu2  ;;  %v1758_v46 = vmax.f32 %v1724_v45, 0.0 }
 0x2d2   : > { %v1725_v1 = vpop.f32.mrf.mxu3 }
 0x2d3   : > { %v1711_v44 = vpop.f32.mrf.mxu1 }
 0x2d4   : > { %v1712_v14 = vadd.f32 %v1711_v44, %v3562_v10 }
 0x2d6   : > { %v1726_v60 = vadd.f32 %v1725_v1, %v1712_v14 }
 0x2d8   : > { %v1753_v15 = vpop.f32.mrf.mxu2  ;;  %v1762_v50 = vmax.f32 %v1726_v60, 0.0 }
 0x2d9   : > { %v1737_v38 = vpop.f32.mrf.mxu0 }
 0x2da   : > { %v1738_v59 = vadd.f32 %v1737_v38, %v3559_v17 }
 0x2dc   : > { %v1752_v28 = vadd.f32 %v1751_v35, %v1738_v59 }
 0x2dd   : > { %v2011_v6 = vpop.f32.mrf.mxu1 }
 0x2de   : > { %v1759_v39 = vmax.f32 %v1752_v28, 0.0 }
 0x2e0   : > { %v1765_v48 = vpack.c.bf16 %v1759_v39, %v1758_v46 }
 0x2e1   : > { %v1739_v43 = vpop.f32.mrf.mxu0 }
 0x2e2   : > { %1769 = vst [vmem:[%s3571_s30 + $0x8] sm:$0xff] %v1765_v48  ;;  %v1740_v47 = vadd.f32 %v1739_v43, %v3562_v10 }
 0x2e4   : > { %v1754_v42 = vadd.f32 %v1753_v15, %v1740_v47 }
 0x2e5   : > { %v2013_v63 = vpop.f32.mrf.mxu1 }
 0x2e6   : > { %v1763_v34 = vmax.f32 %v1754_v42, 0.0 }
 0x2e8   : > { %v1767_v40 = vpack.c.bf16 %v1763_v34, %v1762_v50 }
 0x2e9   : > { %v2039_v54 = vpop.f32.mrf.mxu0 }
 0x2ea   : > { %1771 = vst [vmem:[%s3571_s30 + $0x28] sm:$0xff] %v1767_v40  ;;  %v1997_v51 = vpop.f32.mrf.mxu3 }
 0x2eb   : > { %v1998_v62 = vadd.f32 %v1997_v51, %v3559_v17  ;;  %v2025_v4 = vpop.f32.mrf.mxu2 }
 0x2ec   : > { %v2026_v22 = vadd.f32 %v2025_v4, %v3559_v17 }
 0x2ed   : > { %v2012_v55 = vadd.f32 %v2011_v6, %v1998_v62 }
 0x2ee   : > { %v2040_v11 = vadd.f32 %v2039_v54, %v2026_v22 }
 0x2ef   : > { %v2100_v25 = vmax.f32 %v2012_v55, 0.0 }
 0x2f0   : > { %v2101_v49 = vmax.f32 %v2040_v11, 0.0 }
 0x2f1   : > { %v2041_v0 = vpop.f32.mrf.mxu0 }
 0x2f2   : > { %v2108_v57 = vpack.c.bf16 %v2101_v49, %v2100_v25  ;;  %v1999_v58 = vpop.f32.mrf.mxu3 }
 0x2f3   : > { %v2000_v32 = vadd.f32 %v1999_v58, %v3562_v10  ;;  %v2027_v5 = vpop.f32.mrf.mxu2 }
 0x2f4   : > { %2112 = vst [vmem:[%s3571_s30 + $0x10] sm:$0xff] %v2108_v57  ;;  %v2028_v8 = vadd.f32 %v2027_v5, %v3562_v10 }
 0x2f5   : > { %v2014_v16 = vadd.f32 %v2013_v63, %v2000_v32 }
 0x2f6   : > { %v2042_v20 = vadd.f32 %v2041_v0, %v2028_v8 }
 0x2f7   : > { %v2104_v41 = vmax.f32 %v2014_v16, 0.0 }
 0x2f8   : > { %v2105_v2 = vmax.f32 %v2042_v20, 0.0 }
 0x2fa   : > { %v2110_v12 = vpack.c.bf16 %v2105_v2, %v2104_v41  ;;  %v2067_v3 = vpop.f32.mrf.mxu3 }
 0x2fb   : > { %v2095_v29 = vpop.f32.mrf.mxu2 }
 0x2fc   : > { %2114 = vst [vmem:[%s3571_s30 + $0x30] sm:$0xff] %v2110_v12 }
 0x2fd   : > { %v2053_v19 = vpop.f32.mrf.mxu1 }
 0x2fe   : > { %v2054_v27 = vadd.f32 %v2053_v19, %v3559_v17  ;;  %v2081_v36 = vpop.f32.mrf.mxu0 }
 0x2ff   : > { %v2082_v31 = vadd.f32 %v2081_v36, %v3559_v17 }
 0x300   : > { %v2068_v26 = vadd.f32 %v2067_v3, %v2054_v27 }
 0x301   : > { %v2096_v53 = vadd.f32 %v2095_v29, %v2082_v31 }
 0x302   : > { %v2102_v18 = vmax.f32 %v2068_v26, 0.0  ;;  %v2069_v61 = vpop.f32.mrf.mxu3 }
 0x303   : > { %v2103_v56 = vmax.f32 %v2096_v53, 0.0  ;;  %v2097_v17 = vpop.f32.mrf.mxu2 }
 0x305   : > { %v2109_v24 = vpack.c.bf16 %v2103_v56, %v2102_v18  ;;  %v2055_v13 = vpop.f32.mrf.mxu1 }
 0x306   : > { %v2056_v52 = vadd.f32 %v2055_v13, %v3562_v10  ;;  %v2083_v33 = vpop.f32.mrf.mxu0 }
 0x307   : > { %2113 = vst.msk [vmem:[%s3571_s30 + $0x18] sm:$0xff] %vm3053_vm8, %v2109_v24  ;;  %v2084_v37 = vadd.f32 %v2083_v33, %v3562_v10 }
 0x308   : > { %2117 = vst.msk [vmem:[%s3571_s30 + $0x1c] sm:$0xf] %vm2116_vm14, %v2769_v9  ;;  %v2070_v30 = vadd.f32 %v2069_v61, %v2056_v52 }
 0x309   : > { %v2098_v23 = vadd.f32 %v2097_v17, %v2084_v37 }
 0x30a   : > { %v2106_v21 = vmax.f32 %v2070_v30, 0.0 }
 0x30b   : > { %v2107_v35 = vmax.f32 %v2098_v23, 0.0 }
 0x30d   : > { %v2111_v38 = vpack.c.bf16 %v2107_v35, %v2106_v21 }
 0x30f   : > { %2115 = vst.msk [vmem:[%s3571_s30 + $0x38] sm:$0xff] %vm3053_vm8, %v2111_v38 }
 0x310   : > { %2118 = vst.msk [vmem:[%s3571_s30 + $0x3c] sm:$0xf] %vm2116_vm14, %v2769_v9 }
 0x311 PF: > { %s15_s18 = sadd.s32 1, %s2764_s18  }
 0x312   : > { %p12_p4 = scmp.ge.s32.totalorder %s15_s18, 4  }
 0x314   :  { %14 = sbr.rel (!%p12_p4) target bundleno = 1 (0x1), region = 70 }

</bundles_post_ra>
